<compile_context>
chip_gen: v7x
topology: tpu7x:2x2x1
jax: 0.10.0
libtpu: 0.0.40
codegen_flags: <defaults>
</compile_context>

<pallas_src>
import functools

import jax
import jax.numpy as jnp
from jax.experimental import pallas as pl
from jax.experimental.pallas import tpu as pltpu


def _hp_kernel(xph_ref, w_ref, b_ref, out_ref, *, Ho, Wo, C):
    """Fused HP forward for one batch element.

    xph_ref : (1, 2, 2, Ho, Wo, C)  polyphase input
    w_ref   : (3, 3, C, C)          conv weights, HWIO
    b_ref   : (1, C)                conv bias
    out_ref : (1, 2, Ho, Wo, C)     [0] = maxpool half, [1] = padded-conv half
    """
    Hc, Wc = Ho - 1, Wo - 1            # valid stride-2 conv output (H, W even)
    xph = xph_ref[0]                   # (2, 2, Ho, Wo, C)

    # ---- MaxPool2d(2): elementwise max of the four polyphase components ----
    pool = jnp.maximum(jnp.maximum(xph[0, 0], xph[0, 1]),
                       jnp.maximum(xph[1, 0], xph[1, 1]))
    out_ref[0, 0] = pool.astype(out_ref.dtype)

    # ---- Conv2d(C, C, 3, stride=2, pad=0): 9 taps, f32 accumulation --------
    # Tap (dy, dx) of the stride-2 conv is a contiguous slice of polyphase
    # component (dy % 2, dx % 2).
    w = w_ref[...].astype(jnp.float32)                 # (3, 3, Cin, Cout)
    acc = jnp.zeros((Hc, Wc, C), jnp.float32)
    for dy in range(3):
        for dx in range(3):
            ph = xph[dy % 2, dx % 2]                   # (Ho, Wo, C)
            patch = ph[dy // 2:dy // 2 + Hc, dx // 2:dx // 2 + Wc, :]
            acc = acc + jnp.einsum(
                "hwc,cd->hwd", patch.astype(jnp.float32), w[dy, dx],
                preferred_element_type=jnp.float32)
    acc = acc + b_ref[...].astype(jnp.float32).reshape(1, 1, C)

    # ---- pad2same: zero-pad conv (Hc, Wc) -> (Ho, Wo) (1 row / col) ---------
    # TODO(synk): pad2same is not defined in the provided spec; assumed to be
    # the usual zero F.pad to the pool's spatial size (split pad; identical to
    # right/bottom padding for the 1-pixel mismatch produced here).
    out_ref[0, 1] = jnp.zeros((Ho, Wo, C), out_ref.dtype)
    out_ref[0, 1, :Hc, :Wc, :] = acc.astype(out_ref.dtype)


@jax.jit
def hp_forward(x_nchw, w_oihw, bias):
    """HP forward.  x_nchw: (N, C, H, W)  ->  (N, 2C, H//2, W//2)."""
    N, C, H, W = x_nchw.shape
    assert H % 2 == 0 and W % 2 == 0, "HP kernel assumes even H, W"
    Ho, Wo = H // 2, W // 2

    # Single wrapper transpose -> polyphase channel-last layout.
    xph = x_nchw.reshape(N, C, Ho, 2, Wo, 2).transpose(0, 3, 5, 2, 4, 1)
    w_hwio = jnp.transpose(w_oihw, (2, 3, 1, 0))        # OIHW -> HWIO
    b2d = bias.reshape(1, C)

    kernel = functools.partial(_hp_kernel, Ho=Ho, Wo=Wo, C=C)

    out = pl.pallas_call(
        kernel,
        out_shape=jax.ShapeDtypeStruct((N, 2, Ho, Wo, C), x_nchw.dtype),
        grid_spec=pltpu.PrefetchScalarGridSpec(
            num_scalar_prefetch=0,
            grid=(N,),
            in_specs=[
                pl.BlockSpec((1, 2, 2, Ho, Wo, C),
                             lambda n: (n, 0, 0, 0, 0, 0)),
                pl.BlockSpec((3, 3, C, C), lambda n: (0, 0, 0, 0)),
                pl.BlockSpec((1, C), lambda n: (0, 0)),
            ],
            out_specs=pl.BlockSpec((1, 2, Ho, Wo, C),
                                   lambda n: (n, 0, 0, 0, 0)),
        ),
        compiler_params=pltpu.CompilerParams(
            dimension_semantics=("parallel",)),
    )(xph, w_hwio, b2d)

    # (N, 2, Ho, Wo, C) -> (N, 2C, Ho, Wo); channel order = [pool, conv].
    return out.transpose(0, 1, 4, 2, 3).reshape(N, 2 * C, Ho, Wo)


def _hp_reference(x_nchw, w_oihw, bias):
    """Pure-JAX reference mirroring the PyTorch module (for validation)."""
    pool = jax.lax.reduce_window(
        x_nchw, -jnp.inf, jax.lax.max,
        window_dimensions=(1, 1, 2, 2), window_strides=(1, 1, 2, 2),
        padding="VALID")
    conv = jax.lax.conv_general_dilated(
        x_nchw, w_oihw, window_strides=(2, 2), padding="VALID",
        dimension_numbers=("NCHW", "OIHW", "NCHW"),
    ) + bias.reshape(1, -1, 1, 1)
    dh = pool.shape[2] - conv.shape[2]
    dw = pool.shape[3] - conv.shape[3]
    conv = jnp.pad(conv, ((0, 0), (0, 0),
                          (dh // 2, dh - dh // 2), (dw // 2, dw - dw // 2)))
    return jnp.concatenate([pool, conv], axis=1)


if __name__ == "__main__":
    N, C, H, W = 2, 4, 16, 16

    key = jax.random.PRNGKey(0)
    kx, kw, kb = jax.random.split(key, 3)

    # Deterministic synthetic params for Conv2d(C, C, 3, stride=2).
    x = jax.random.normal(kx, (N, C, H, W), dtype=jnp.float32)
    w = jax.random.normal(kw, (C, C, 3, 3), dtype=jnp.float32) * 0.1   # OIHW
    b = jax.random.normal(kb, (C,), dtype=jnp.float32) * 0.1

    out = jax.block_until_ready(hp_forward(x, w, b))
    ref = jax.block_until_ready(_hp_reference(x, w, b))

    assert out.shape == (N, 2 * C, H // 2, W // 2)
    assert jnp.allclose(out, ref, atol=1e-4, rtol=1e-4)
    print("KERNEL_OK")
</pallas_src>

<mosaic_0001>
module attributes {stable_mosaic.version = 11 : i64} {
  func.func @_hp_kernel(%arg0: i32, %arg1: memref<1x2x2x8x8x4xf32, #tpu.memory_space<vmem>>, %arg2: memref<3x3x4x4xf32, #tpu.memory_space<vmem>>, %arg3: memref<1x4xf32, #tpu.memory_space<vmem>>, %arg4: memref<1x2x8x8x4xf32, #tpu.memory_space<vmem>>) attributes {dimension_semantics = [#tpu.dimension_semantics<parallel>], iteration_bounds = array<i64: 2>, scalar_prefetch = 0 : i64, scratch_operands = 0 : i64, tpu.core_type = #tpu.core_type<tc>, window_params = [{transform_indices = @transform_0, window_bounds = array<i64: 1, 2, 2, 8, 8, 4>}, {pipeline_mode = #tpu.pipeline_mode<synchronous>, transform_indices = @transform_1, window_bounds = array<i64: 3, 3, 4, 4>}, {pipeline_mode = #tpu.pipeline_mode<synchronous>, transform_indices = @transform_2, window_bounds = array<i64: 1, 4>}, {transform_indices = @transform_3, window_bounds = array<i64: 1, 2, 8, 8, 4>}]} {
    %c0 = arith.constant 0 : index
    %c0_0 = arith.constant 0 : index
    %c0_1 = arith.constant 0 : index
    %c0_2 = arith.constant 0 : index
    %c0_3 = arith.constant 0 : index
    %c0_4 = arith.constant 0 : index
    %0 = vector.load %arg1[%c0, %c0_0, %c0_1, %c0_2, %c0_3, %c0_4] : memref<1x2x2x8x8x4xf32, #tpu.memory_space<vmem>>, vector<1x2x2x8x8x4xf32>
    %1 = vector.shape_cast %0 : vector<1x2x2x8x8x4xf32> to vector<2x2x8x8x4xf32>
    %2 = vector.extract_strided_slice %1 {offsets = [0, 0, 0, 0, 0], sizes = [1, 1, 8, 8, 4], strides = [1, 1, 1, 1, 1]} : vector<2x2x8x8x4xf32> to vector<1x1x8x8x4xf32>
    %3 = vector.shape_cast %2 : vector<1x1x8x8x4xf32> to vector<8x8x4xf32>
    %4 = vector.extract_strided_slice %1 {offsets = [0, 1, 0, 0, 0], sizes = [1, 1, 8, 8, 4], strides = [1, 1, 1, 1, 1]} : vector<2x2x8x8x4xf32> to vector<1x1x8x8x4xf32>
    %5 = vector.shape_cast %4 : vector<1x1x8x8x4xf32> to vector<8x8x4xf32>
    %6 = arith.maximumf %3, %5 : vector<8x8x4xf32>
    %7 = vector.extract_strided_slice %1 {offsets = [1, 0, 0, 0, 0], sizes = [1, 1, 8, 8, 4], strides = [1, 1, 1, 1, 1]} : vector<2x2x8x8x4xf32> to vector<1x1x8x8x4xf32>
    %8 = vector.shape_cast %7 : vector<1x1x8x8x4xf32> to vector<8x8x4xf32>
    %9 = vector.extract_strided_slice %1 {offsets = [1, 1, 0, 0, 0], sizes = [1, 1, 8, 8, 4], strides = [1, 1, 1, 1, 1]} : vector<2x2x8x8x4xf32> to vector<1x1x8x8x4xf32>
    %10 = vector.shape_cast %9 : vector<1x1x8x8x4xf32> to vector<8x8x4xf32>
    %11 = arith.maximumf %8, %10 : vector<8x8x4xf32>
    %12 = arith.maximumf %6, %11 : vector<8x8x4xf32>
    %c0_5 = arith.constant 0 : index
    %c0_6 = arith.constant 0 : index
    %c0_7 = arith.constant 0 : index
    %c0_8 = arith.constant 0 : index
    %c0_9 = arith.constant 0 : index
    %13 = vector.load %arg4[%c0_5, %c0_6, %c0_7, %c0_8, %c0_9] : memref<1x2x8x8x4xf32, #tpu.memory_space<vmem>>, vector<1x1x8x8x4xf32>
    %14 = vector.shape_cast %13 : vector<1x1x8x8x4xf32> to vector<8x8x4xf32>
    %15 = vector.shape_cast %12 : vector<8x8x4xf32> to vector<1x1x8x8x4xf32>
    tpu.vector_store %arg4[%c0_5, %c0_6, %c0_7, %c0_8, %c0_9], %15 {strides = array<i32>} : memref<1x2x8x8x4xf32, #tpu.memory_space<vmem>>, vector<1x1x8x8x4xf32>,
    %c0_10 = arith.constant 0 : index
    %c0_11 = arith.constant 0 : index
    %c0_12 = arith.constant 0 : index
    %c0_13 = arith.constant 0 : index
    %16 = vector.load %arg2[%c0_10, %c0_11, %c0_12, %c0_13] : memref<3x3x4x4xf32, #tpu.memory_space<vmem>>, vector<3x3x4x4xf32>
    %cst = arith.constant 0.000000e+00 : f32
    %17 = vector.broadcast %cst : f32 to vector<7x7x4xf32>
    %18 = vector.extract_strided_slice %1 {offsets = [0, 0, 0, 0, 0], sizes = [1, 1, 8, 8, 4], strides = [1, 1, 1, 1, 1]} : vector<2x2x8x8x4xf32> to vector<1x1x8x8x4xf32>
    %19 = vector.shape_cast %18 : vector<1x1x8x8x4xf32> to vector<8x8x4xf32>
    %20 = vector.extract_strided_slice %19 {offsets = [0, 0, 0], sizes = [7, 7, 4], strides = [1, 1, 1]} : vector<8x8x4xf32> to vector<7x7x4xf32>
    %21 = vector.extract_strided_slice %16 {offsets = [0, 0, 0, 0], sizes = [1, 1, 4, 4], strides = [1, 1, 1, 1]} : vector<3x3x4x4xf32> to vector<1x1x4x4xf32>
    %22 = vector.shape_cast %21 : vector<1x1x4x4xf32> to vector<4x4xf32>
    "tpu.trace_start"() <{level = 10 : i32, message = "hwc,cd->hwd"}> : () -> ()
    %cst_14 = arith.constant dense<0.000000e+00> : vector<7x7x4xf32>
    %23 = tpu.matmul %20, %22, %cst_14 {dimension_numbers = #tpu.dot_dimension_numbers<[2], [0], [0, 1], [1], [0, 0, 0, 1, 1, 1], [], []>} : vector<7x7x4xf32>, vector<4x4xf32>, vector<7x7x4xf32> -> vector<7x7x4xf32>
    "tpu.trace_stop"() : () -> ()
    %24 = arith.addf %17, %23 : vector<7x7x4xf32>
    %25 = vector.extract_strided_slice %1 {offsets = [0, 1, 0, 0, 0], sizes = [1, 1, 8, 8, 4], strides = [1, 1, 1, 1, 1]} : vector<2x2x8x8x4xf32> to vector<1x1x8x8x4xf32>
    %26 = vector.shape_cast %25 : vector<1x1x8x8x4xf32> to vector<8x8x4xf32>
    %27 = vector.extract_strided_slice %26 {offsets = [0, 0, 0], sizes = [7, 7, 4], strides = [1, 1, 1]} : vector<8x8x4xf32> to vector<7x7x4xf32>
    %28 = vector.extract_strided_slice %16 {offsets = [0, 1, 0, 0], sizes = [1, 1, 4, 4], strides = [1, 1, 1, 1]} : vector<3x3x4x4xf32> to vector<1x1x4x4xf32>
    %29 = vector.shape_cast %28 : vector<1x1x4x4xf32> to vector<4x4xf32>
    "tpu.trace_start"() <{level = 10 : i32, message = "hwc,cd->hwd"}> : () -> ()
    %cst_15 = arith.constant dense<0.000000e+00> : vector<7x7x4xf32>
    %30 = tpu.matmul %27, %29, %cst_15 {dimension_numbers = #tpu.dot_dimension_numbers<[2], [0], [0, 1], [1], [0, 0, 0, 1, 1, 1], [], []>} : vector<7x7x4xf32>, vector<4x4xf32>, vector<7x7x4xf32> -> vector<7x7x4xf32>
    "tpu.trace_stop"() : () -> ()
    %31 = arith.addf %24, %30 : vector<7x7x4xf32>
    %32 = vector.extract_strided_slice %1 {offsets = [0, 0, 0, 0, 0], sizes = [1, 1, 8, 8, 4], strides = [1, 1, 1, 1, 1]} : vector<2x2x8x8x4xf32> to vector<1x1x8x8x4xf32>
    %33 = vector.shape_cast %32 : vector<1x1x8x8x4xf32> to vector<8x8x4xf32>
    %34 = vector.extract_strided_slice %33 {offsets = [0, 1, 0], sizes = [7, 7, 4], strides = [1, 1, 1]} : vector<8x8x4xf32> to vector<7x7x4xf32>
    %35 = vector.extract_strided_slice %16 {offsets = [0, 2, 0, 0], sizes = [1, 1, 4, 4], strides = [1, 1, 1, 1]} : vector<3x3x4x4xf32> to vector<1x1x4x4xf32>
    %36 = vector.shape_cast %35 : vector<1x1x4x4xf32> to vector<4x4xf32>
    "tpu.trace_start"() <{level = 10 : i32, message = "hwc,cd->hwd"}> : () -> ()
    %cst_16 = arith.constant dense<0.000000e+00> : vector<7x7x4xf32>
    %37 = tpu.matmul %34, %36, %cst_16 {dimension_numbers = #tpu.dot_dimension_numbers<[2], [0], [0, 1], [1], [0, 0, 0, 1, 1, 1], [], []>} : vector<7x7x4xf32>, vector<4x4xf32>, vector<7x7x4xf32> -> vector<7x7x4xf32>
    "tpu.trace_stop"() : () -> ()
    %38 = arith.addf %31, %37 : vector<7x7x4xf32>
    %39 = vector.extract_strided_slice %1 {offsets = [1, 0, 0, 0, 0], sizes = [1, 1, 8, 8, 4], strides = [1, 1, 1, 1, 1]} : vector<2x2x8x8x4xf32> to vector<1x1x8x8x4xf32>
    %40 = vector.shape_cast %39 : vector<1x1x8x8x4xf32> to vector<8x8x4xf32>
    %41 = vector.extract_strided_slice %40 {offsets = [0, 0, 0], sizes = [7, 7, 4], strides = [1, 1, 1]} : vector<8x8x4xf32> to vector<7x7x4xf32>
    %42 = vector.extract_strided_slice %16 {offsets = [1, 0, 0, 0], sizes = [1, 1, 4, 4], strides = [1, 1, 1, 1]} : vector<3x3x4x4xf32> to vector<1x1x4x4xf32>
    %43 = vector.shape_cast %42 : vector<1x1x4x4xf32> to vector<4x4xf32>
    "tpu.trace_start"() <{level = 10 : i32, message = "hwc,cd->hwd"}> : () -> ()
    %cst_17 = arith.constant dense<0.000000e+00> : vector<7x7x4xf32>
    %44 = tpu.matmul %41, %43, %cst_17 {dimension_numbers = #tpu.dot_dimension_numbers<[2], [0], [0, 1], [1], [0, 0, 0, 1, 1, 1], [], []>} : vector<7x7x4xf32>, vector<4x4xf32>, vector<7x7x4xf32> -> vector<7x7x4xf32>
    "tpu.trace_stop"() : () -> ()
    %45 = arith.addf %38, %44 : vector<7x7x4xf32>
    %46 = vector.extract_strided_slice %1 {offsets = [1, 1, 0, 0, 0], sizes = [1, 1, 8, 8, 4], strides = [1, 1, 1, 1, 1]} : vector<2x2x8x8x4xf32> to vector<1x1x8x8x4xf32>
    %47 = vector.shape_cast %46 : vector<1x1x8x8x4xf32> to vector<8x8x4xf32>
    %48 = vector.extract_strided_slice %47 {offsets = [0, 0, 0], sizes = [7, 7, 4], strides = [1, 1, 1]} : vector<8x8x4xf32> to vector<7x7x4xf32>
    %49 = vector.extract_strided_slice %16 {offsets = [1, 1, 0, 0], sizes = [1, 1, 4, 4], strides = [1, 1, 1, 1]} : vector<3x3x4x4xf32> to vector<1x1x4x4xf32>
    %50 = vector.shape_cast %49 : vector<1x1x4x4xf32> to vector<4x4xf32>
    "tpu.trace_start"() <{level = 10 : i32, message = "hwc,cd->hwd"}> : () -> ()
    %cst_18 = arith.constant dense<0.000000e+00> : vector<7x7x4xf32>
    %51 = tpu.matmul %48, %50, %cst_18 {dimension_numbers = #tpu.dot_dimension_numbers<[2], [0], [0, 1], [1], [0, 0, 0, 1, 1, 1], [], []>} : vector<7x7x4xf32>, vector<4x4xf32>, vector<7x7x4xf32> -> vector<7x7x4xf32>
    "tpu.trace_stop"() : () -> ()
    %52 = arith.addf %45, %51 : vector<7x7x4xf32>
    %53 = vector.extract_strided_slice %1 {offsets = [1, 0, 0, 0, 0], sizes = [1, 1, 8, 8, 4], strides = [1, 1, 1, 1, 1]} : vector<2x2x8x8x4xf32> to vector<1x1x8x8x4xf32>
    %54 = vector.shape_cast %53 : vector<1x1x8x8x4xf32> to vector<8x8x4xf32>
    %55 = vector.extract_strided_slice %54 {offsets = [0, 1, 0], sizes = [7, 7, 4], strides = [1, 1, 1]} : vector<8x8x4xf32> to vector<7x7x4xf32>
    %56 = vector.extract_strided_slice %16 {offsets = [1, 2, 0, 0], sizes = [1, 1, 4, 4], strides = [1, 1, 1, 1]} : vector<3x3x4x4xf32> to vector<1x1x4x4xf32>
    %57 = vector.shape_cast %56 : vector<1x1x4x4xf32> to vector<4x4xf32>
    "tpu.trace_start"() <{level = 10 : i32, message = "hwc,cd->hwd"}> : () -> ()
    %cst_19 = arith.constant dense<0.000000e+00> : vector<7x7x4xf32>
    %58 = tpu.matmul %55, %57, %cst_19 {dimension_numbers = #tpu.dot_dimension_numbers<[2], [0], [0, 1], [1], [0, 0, 0, 1, 1, 1], [], []>} : vector<7x7x4xf32>, vector<4x4xf32>, vector<7x7x4xf32> -> vector<7x7x4xf32>
    "tpu.trace_stop"() : () -> ()
    %59 = arith.addf %52, %58 : vector<7x7x4xf32>
    %60 = vector.extract_strided_slice %1 {offsets = [0, 0, 0, 0, 0], sizes = [1, 1, 8, 8, 4], strides = [1, 1, 1, 1, 1]} : vector<2x2x8x8x4xf32> to vector<1x1x8x8x4xf32>
    %61 = vector.shape_cast %60 : vector<1x1x8x8x4xf32> to vector<8x8x4xf32>
    %62 = vector.extract_strided_slice %61 {offsets = [1, 0, 0], sizes = [7, 7, 4], strides = [1, 1, 1]} : vector<8x8x4xf32> to vector<7x7x4xf32>
    %63 = vector.extract_strided_slice %16 {offsets = [2, 0, 0, 0], sizes = [1, 1, 4, 4], strides = [1, 1, 1, 1]} : vector<3x3x4x4xf32> to vector<1x1x4x4xf32>
    %64 = vector.shape_cast %63 : vector<1x1x4x4xf32> to vector<4x4xf32>
    "tpu.trace_start"() <{level = 10 : i32, message = "hwc,cd->hwd"}> : () -> ()
    %cst_20 = arith.constant dense<0.000000e+00> : vector<7x7x4xf32>
    %65 = tpu.matmul %62, %64, %cst_20 {dimension_numbers = #tpu.dot_dimension_numbers<[2], [0], [0, 1], [1], [0, 0, 0, 1, 1, 1], [], []>} : vector<7x7x4xf32>, vector<4x4xf32>, vector<7x7x4xf32> -> vector<7x7x4xf32>
    "tpu.trace_stop"() : () -> ()
    %66 = arith.addf %59, %65 : vector<7x7x4xf32>
    %67 = vector.extract_strided_slice %1 {offsets = [0, 1, 0, 0, 0], sizes = [1, 1, 8, 8, 4], strides = [1, 1, 1, 1, 1]} : vector<2x2x8x8x4xf32> to vector<1x1x8x8x4xf32>
    %68 = vector.shape_cast %67 : vector<1x1x8x8x4xf32> to vector<8x8x4xf32>
    %69 = vector.extract_strided_slice %68 {offsets = [1, 0, 0], sizes = [7, 7, 4], strides = [1, 1, 1]} : vector<8x8x4xf32> to vector<7x7x4xf32>
    %70 = vector.extract_strided_slice %16 {offsets = [2, 1, 0, 0], sizes = [1, 1, 4, 4], strides = [1, 1, 1, 1]} : vector<3x3x4x4xf32> to vector<1x1x4x4xf32>
    %71 = vector.shape_cast %70 : vector<1x1x4x4xf32> to vector<4x4xf32>
    "tpu.trace_start"() <{level = 10 : i32, message = "hwc,cd->hwd"}> : () -> ()
    %cst_21 = arith.constant dense<0.000000e+00> : vector<7x7x4xf32>
    %72 = tpu.matmul %69, %71, %cst_21 {dimension_numbers = #tpu.dot_dimension_numbers<[2], [0], [0, 1], [1], [0, 0, 0, 1, 1, 1], [], []>} : vector<7x7x4xf32>, vector<4x4xf32>, vector<7x7x4xf32> -> vector<7x7x4xf32>
    "tpu.trace_stop"() : () -> ()
    %73 = arith.addf %66, %72 : vector<7x7x4xf32>
    %74 = vector.extract_strided_slice %1 {offsets = [0, 0, 0, 0, 0], sizes = [1, 1, 8, 8, 4], strides = [1, 1, 1, 1, 1]} : vector<2x2x8x8x4xf32> to vector<1x1x8x8x4xf32>
    %75 = vector.shape_cast %74 : vector<1x1x8x8x4xf32> to vector<8x8x4xf32>
    %76 = vector.extract_strided_slice %75 {offsets = [1, 1, 0], sizes = [7, 7, 4], strides = [1, 1, 1]} : vector<8x8x4xf32> to vector<7x7x4xf32>
    %77 = vector.extract_strided_slice %16 {offsets = [2, 2, 0, 0], sizes = [1, 1, 4, 4], strides = [1, 1, 1, 1]} : vector<3x3x4x4xf32> to vector<1x1x4x4xf32>
    %78 = vector.shape_cast %77 : vector<1x1x4x4xf32> to vector<4x4xf32>
    "tpu.trace_start"() <{level = 10 : i32, message = "hwc,cd->hwd"}> : () -> ()
    %cst_22 = arith.constant dense<0.000000e+00> : vector<7x7x4xf32>
    %79 = tpu.matmul %76, %78, %cst_22 {dimension_numbers = #tpu.dot_dimension_numbers<[2], [0], [0, 1], [1], [0, 0, 0, 1, 1, 1], [], []>} : vector<7x7x4xf32>, vector<4x4xf32>, vector<7x7x4xf32> -> vector<7x7x4xf32>
    "tpu.trace_stop"() : () -> ()
    %80 = arith.addf %73, %79 : vector<7x7x4xf32>
    %c0_23 = arith.constant 0 : index
    %c0_24 = arith.constant 0 : index
    %81 = vector.load %arg3[%c0_23, %c0_24] : memref<1x4xf32, #tpu.memory_space<vmem>>, vector<1x4xf32>
    %82 = vector.shape_cast %81 : vector<1x4xf32> to vector<1x1x4xf32>
    %83 = vector.broadcast %82 : vector<1x1x4xf32> to vector<7x7x4xf32>
    %84 = arith.addf %80, %83 : vector<7x7x4xf32>
    %cst_25 = arith.constant 0.000000e+00 : f32
    %85 = vector.broadcast %cst_25 : f32 to vector<8x8x4xf32>
    %c0_26 = arith.constant 0 : index
    %c1 = arith.constant 1 : index
    %c0_27 = arith.constant 0 : index
    %c0_28 = arith.constant 0 : index
    %c0_29 = arith.constant 0 : index
    %86 = vector.load %arg4[%c0_26, %c1, %c0_27, %c0_28, %c0_29] : memref<1x2x8x8x4xf32, #tpu.memory_space<vmem>>, vector<1x1x8x8x4xf32>
    %87 = vector.shape_cast %86 : vector<1x1x8x8x4xf32> to vector<8x8x4xf32>
    %88 = vector.shape_cast %85 : vector<8x8x4xf32> to vector<1x1x8x8x4xf32>
    tpu.vector_store %arg4[%c0_26, %c1, %c0_27, %c0_28, %c0_29], %88 {strides = array<i32>} : memref<1x2x8x8x4xf32, #tpu.memory_space<vmem>>, vector<1x1x8x8x4xf32>,
    %c0_30 = arith.constant 0 : index
    %c1_31 = arith.constant 1 : index
    %c0_32 = arith.constant 0 : index
    %c0_33 = arith.constant 0 : index
    %c0_34 = arith.constant 0 : index
    %89 = vector.load %arg4[%c0_30, %c1_31, %c0_32, %c0_33, %c0_34] : memref<1x2x8x8x4xf32, #tpu.memory_space<vmem>>, vector<1x1x7x7x4xf32>
    %90 = vector.shape_cast %89 : vector<1x1x7x7x4xf32> to vector<7x7x4xf32>
    %91 = vector.shape_cast %84 : vector<7x7x4xf32> to vector<1x1x7x7x4xf32>
    tpu.vector_store %arg4[%c0_30, %c1_31, %c0_32, %c0_33, %c0_34], %91 {strides = array<i32>} : memref<1x2x8x8x4xf32, #tpu.memory_space<vmem>>, vector<1x1x7x7x4xf32>,
    return
  }
  func.func @transform_0(%arg0: i32) -> (i32, i32, i32, i32, i32, i32) {
    %c0_i32 = arith.constant 0 : i32
    %c0_i32_0 = arith.constant 0 : i32
    %c0_i32_1 = arith.constant 0 : i32
    %c0_i32_2 = arith.constant 0 : i32
    %c0_i32_3 = arith.constant 0 : i32
    %c0_i32_4 = arith.constant 0 : i32
    return %arg0, %c0_i32, %c0_i32_0, %c0_i32_1, %c0_i32_2, %c0_i32_3 : i32, i32, i32, i32, i32, i32
  }
  func.func @transform_1(%arg0: i32) -> (i32, i32, i32, i32) {
    %c0_i32 = arith.constant 0 : i32
    %c0_i32_0 = arith.constant 0 : i32
    %c0_i32_1 = arith.constant 0 : i32
    %c0_i32_2 = arith.constant 0 : i32
    %c0_i32_3 = arith.constant 0 : i32
    return %c0_i32, %c0_i32_0, %c0_i32_1, %c0_i32_2 : i32, i32, i32, i32
  }
  func.func @transform_2(%arg0: i32) -> (i32, i32) {
    %c0_i32 = arith.constant 0 : i32
    %c0_i32_0 = arith.constant 0 : i32
    %c0_i32_1 = arith.constant 0 : i32
    return %c0_i32, %c0_i32_0 : i32, i32
  }
  func.func @transform_3(%arg0: i32) -> (i32, i32, i32, i32, i32) {
    %c0_i32 = arith.constant 0 : i32
    %c0_i32_0 = arith.constant 0 : i32
    %c0_i32_1 = arith.constant 0 : i32
    %c0_i32_2 = arith.constant 0 : i32
    %c0_i32_3 = arith.constant 0 : i32
    return %arg0, %c0_i32, %c0_i32_0, %c0_i32_1, %c0_i32_2 : i32, i32, i32, i32, i32
  }
}

</mosaic_0001>

<bundles_post_ra>
// kernel: hp_forward.1
= control target key start
LH: loop header
LB: loop body
LE: loop exit
PB: predicated region body
PF: predicated region fallthrough
CT: control target
= control target key end

     0   :  { %s9596_s12 = smov 0   ;;  %s12546_s0 = inlined_call_operand.vmem [shape: f32[2,2,2,8,8,4], index: 0, kind: input, shape index: {}]   ;;  %s12547_s1 = inlined_call_operand.vmem [shape: f32[3,3,4,4], index: 1, kind: input, shape index: {}]   ;;  %s12548_s2 = inlined_call_operand.vmem [shape: f32[1,4], index: 2, kind: input, shape index: {}]   ;;  %s12549_s3 = inlined_call_operand.vmem [shape: f32[2,2,8,8,4], index: 3, kind: output, shape index: {}]  }
   0x1 LB: > { %s9105_s13 = sadd.s32 4294967295, %s9571_s12   ;;  %p9109_p0 = scmp.ge.s32.totalorder %s9571_s12, 1  ;;  %s9571_s12 = sphi %s9596_s12, %s13_s12  }
   0x2   : > { %p137_p1 = scmp.lt.s32.totalorder %s9571_s12, 3 }
   0x4   : > { %p138_p2 = pnand %p9109_p0, %p137_p1 }
   0x6   : > { %141 = sbr.rel (%p138_p2) target bundleno = 621 (0x26d), region = 32 }
   0xd   : > { %v237_v0 = vld [vmem:[%s12547_s1 + $0x4] sm:$0xf]  ;;  %vm910_vm0 = vcmask 1043456   ;;  %p161_p3 = scmp.lt.s32.totalorder %s9105_s13, 1  ;;  %v256_v1 = vlaneseq  ;;  %v12550_v2 = vmov 0.0   ;;  %vm9575_vm1 = vmmov 0  }
   0xe   : > { %9314 = vmatprep.subr.mxu0 %v12550_v2  ;;  %9521 = vmatprep.subr.mxu1 %v12550_v2  ;;  %v9574_v3 = vmov 1966171168   ;;  %vm227_vm2 = vcmask 31744   ;;  %vm9042_vm3 = vcmask 30720  }
   0xf   : > { %9315 = vmatpush3.msk.msra.mxu0 %vm910_vm0, %v237_v0  ;;  %9522 = vmatpush3.msk.msra.mxu1 %vm910_vm0, %v237_v0  ;;  %s12893_s13 = smov (!%p161_p3, %s9105_s13), 1  ;;  %v254_v4 = vunpack.c.l.s4 %v9574_v3  ;;  %v257_v5 = vshrl.u32 %v256_v1, 7 }
  0x10   : > { %9316 = vmatprep.mubr.msk.f32.mxu0 %vm9575_vm1, %v12550_v2  ;;  %9328 = vmatprep.mubr.msk.f32.mxu1 %vm9575_vm1, %v12550_v2  ;;  %s9240_s16 = sshll.u32 %s12893_s13, 8  ;;  %s9241_s17 = sshll.u32 %s12893_s13, 7 }
  0x11   : > { %9337 = vmatprep.subr.mxu0 %v12550_v2  ;;  %v255_v6 = vunpack.c.0.s8 %v254_v4  ;;  %9360 = vmatprep.subr.mxu1 %v12550_v2  ;;  %s9620_s20 = scalar_lea.vmem %s12546_s0, %s9240_s16  ;;  %s9625_s23 = scalar_lea.vmem %s12549_s3, %s9241_s17 }
  0x12   : > { %v171_v7 = vld [vmem:[%s9620_s20] sm:$0xff]  ;;  %v9629_v8 = vld [vmem:[%s9620_s20 + $0x8] sm:$0xff]  ;;  %9230 = vst.msk [vmem:[%s9625_s23 + $0x78] sm:$0xff] %vm227_vm2, %v12550_v2  ;;  %9223 = vst.msk [vmem:[%s9625_s23 + $0x40] sm:$0xff] %vm227_vm2, %v12550_v2 }
  0x13   : > { %v179_v9 = vld [vmem:[%s9620_s20 + $0x40] sm:$0xff]  ;;  %v9632_v10 = vsub.s32 %v255_v6, %v257_v5  ;;  %9224 = vst.msk [vmem:[%s9625_s23 + $0x48] sm:$0xff] %vm227_vm2, %v12550_v2  ;;  %9225 = vst.msk [vmem:[%s9625_s23 + $0x50] sm:$0xff] %vm227_vm2, %v12550_v2  ;;  %v9659_v11 = vld [vmem:[%s9620_s20 + $0x48] sm:$0xff]  ;;  %v1021_v16 = vcombine.high %v171_v7, %v171_v7  ;;  %v1069_v17 = vcombine.high %v9629_v8, %v9629_v8 }
  0x14   : > { %9226 = vst.msk [vmem:[%s9625_s23 + $0x58] sm:$0xff] %vm227_vm2, %v12550_v2  ;;  %9227 = vst.msk [vmem:[%s9625_s23 + $0x60] sm:$0xff] %vm227_vm2, %v12550_v2  ;;  %v9662_v12 = vld [vmem:[%s9620_s20 + $0x80] sm:$0xff]  ;;  %v203_v14 = vmax.f32 %v171_v7, %v179_v9  ;;  %v252_v15 = vcombine.high %v179_v9, %v179_v9  ;;  %v184_v35 = vld [vmem:[%s9620_s20 + $0x68] sm:$0xff]  ;;  %v300_v51 = vcombine.high %v9659_v11, %v9659_v11 }
  0x15   : > { %9228 = vst.msk [vmem:[%s9625_s23 + $0x68] sm:$0xff] %vm227_vm2, %v12550_v2  ;;  %9229 = vst.msk [vmem:[%s9625_s23 + $0x70] sm:$0xff] %vm227_vm2, %v12550_v2  ;;  %v195_v13 = vld [vmem:[%s9620_s20 + $0xc0] sm:$0xff]  ;;  %v259_v20 = vrot.slane %v179_v9, %v9632_v10  ;;  %v307_v21 = vrot.slane %v9659_v11, %v9632_v10  ;;  %v1028_v23 = vrot.slane %v171_v7, %v9632_v10 }
  0x16   : > { %v211_v19 = vmax.f32 %v9662_v12, %v195_v13  ;;  %v266_v22 = vrot.slane %v252_v15, %v9632_v10  ;;  %v9676_v24 = vrot.slane %v1021_v16, %v9632_v10  ;;  %v9680_v25 = vrot.slane %v9629_v8, %v9632_v10  ;;  %v9683_v26 = vld [vmem:[%s9620_s20 + $0x60] sm:$0xff] }
  0x17   : > { %v267_v28 = vcombine.high %v259_v20, %v259_v20  ;;  %v275_v29 = vrot.slane %v259_v20, %v9632_v10  ;;  %v9687_v30 = vrot.slane %v307_v21, %v9632_v10  ;;  %v1036_v33 = vcombine.high %v1028_v23, %v1028_v23 }
  0x18   : > { %v219_v27 = vmax.f32 %v203_v14, %v211_v19  ;;  %v268_v31 = vcombine.high %v266_v22, %v266_v22  ;;  %v282_v32 = vrot.slane %v266_v22, %v9632_v10  ;;  %v9691_v34 = vrot.slane %v1028_v23, %v9632_v10  ;;  %v181_v22 = vld [vmem:[%s9620_s20 + $0x50] sm:$0xff] }
  0x19   : > { %12646 = vst [vmem:[#allocation2_spill] sm:$0xff] %v9687_v30  ;;  %v289_v36 = vrot.slane %v267_v28, %v9632_v10  ;;  %v1084_v37 = vcombine.high %v9680_v25, %v9680_v25  ;;  %v444_v39 = vcombine.high %v9683_v26, %v9683_v26  ;;  %v9705_v42 = vrot.slane %v1036_v33, %v9632_v10 }
  0x1a   : > { %228 = vst.msk [vmem:[%s9625_s23] sm:$0xff] %vm227_vm2, %v219_v27  ;;  %v296_v40 = vrot.slane %v268_v31, %v9632_v10  ;;  %v298_v41 = vcombine.high %v282_v32, %v282_v32  ;;  %v492_v43 = vcombine.high %v184_v35, %v184_v35  ;;  %v499_v47 = vrot.slane %v184_v35, %v9632_v10  ;;  %v236_v31 = vld [vmem:[%s12547_s1] sm:$0xf] }
  0x1b   : > { %v588_v44 = vcombine.low %v275_v29, %v289_v36  ;;  %v9114_v45 = vcombine.high %v275_v29, %v289_v36  ;;  %v458_v46 = vrot.slane %v444_v39, %v9632_v10  ;;  %v314_v4 = vrot.slane %v300_v51, %v9632_v10 }
  0x1c   : > { %v590_v48 = vcombine.low %v282_v32, %v296_v40  ;;  %v591_v49 = vcombine.low %v298_v41, %v9687_v30  ;;  %v506_v50 = vrot.slane %v492_v43, %v9632_v10  ;;  %v507_v58 = vcombine.high %v499_v47, %v499_v47 }
  0x1d   : > { %v598_v52 = vrot.slane %v588_v44, %v9632_v10  ;;  %v605_v53 = vrot.slane %v9114_v45, %v9632_v10  ;;  %v460_v54 = vcombine.high %v458_v46, %v458_v46  ;;  %v9716_v55 = vrot.slane %v458_v46, %v9632_v10 }
  0x1e   : > { %v612_v56 = vrot.slane %v590_v48, %v9632_v10  ;;  %v619_v57 = vrot.slane %v591_v49, %v9632_v10  ;;  %v9721_v59 = vrot.slane %v499_v47, %v9632_v10  ;;  %v9731_v63 = vrot.slane %v506_v50, %v9632_v10 }
  0x1f   : > { %12647 = vst [vmem:[#allocation3_spill] sm:$0xff] %v9716_v55  ;;  %v620_v60 = vcombine.low %v598_v52, %v605_v53  ;;  %v9724_v61 = vrot.slane %v460_v54, %v9632_v10  ;;  %v9728_v62 = vcombine.high %v9716_v55, %v9716_v55  ;;  %v9734_v1 = vrot.slane %v507_v58, %v9632_v10  ;;  %v185_v53 = vld [vmem:[%s9620_s20 + $0x70] sm:$0xff] }
  0x20   : > { %12648 = vst [vmem:[#allocation4_spill] sm:$0xff] %v9721_v59  ;;  %12651 = vst [vmem:[#allocation7_spill] sm:$0xff] %v9731_v63  ;;  %v621_v0 = vcombine.low %v612_v56, %v619_v57  ;;  %v537_v3 = vcombine.high %v9721_v59, %v9721_v59  ;;  %v315_v9 = vcombine.high %v307_v21, %v307_v21 }
  0x21   : > { %12649 = vst [vmem:[#allocation5_spill] sm:$0xff] %v9724_v61  ;;  %12650 = vst [vmem:[#allocation6_spill] sm:$0xff] %v9728_v62  ;;  %v628_v5 = vrot.slane %v620_v60, %v9632_v10  ;;  %v784_v6 = vcombine.low %v9716_v55, %v9724_v61  ;;  %v785_v7 = vcombine.low %v9728_v62, %v9721_v59 }
  0x22   : > { %12652 = vst [vmem:[#allocation8_spill] sm:$0xff] %v9734_v1  ;;  %v635_v13 = vrot.slane %v621_v0, %v9632_v10  ;;  %v539_v14 = vcombine.high %v9734_v1, %v9734_v1  ;;  %v786_v15 = vcombine.low %v9734_v1, %v537_v3  ;;  %v316_v16 = vcombine.high %v314_v4, %v314_v4 }
  0x23   : > { %v794_v19 = vrot.slane %v784_v6, %v9632_v10  ;;  %v801_v20 = vrot.slane %v785_v7, %v9632_v10  ;;  %v330_v23 = vrot.slane %v314_v4, %v9632_v10  ;;  %v9753_v27 = vrot.slane %v315_v9, %v9632_v10  ;;  %v182_v9 = vld [vmem:[%s9620_s20 + $0x58] sm:$0xff] }
  0x24   : > { %v636_v28 = vcombine.low %v628_v5, %v635_v13  ;;  %v787_v21 = vcombine.low %v539_v14, %v9731_v63  ;;  %v808_v29 = vrot.slane %v786_v15, %v9632_v10  ;;  %v344_v32 = vrot.slane %v316_v16, %v9632_v10  ;;  %v238_v14 = vld [vmem:[%s12547_s1 + $0x8] sm:$0xf] }
  0x25   : > { %12653 = vst [vmem:[#allocation9_spill] sm:$0xff] %v9753_v27  ;;  %v816_v33 = vcombine.low %v794_v19, %v801_v20  ;;  %v345_v35 = vcombine.high %v9687_v30, %v9687_v30  ;;  %v346_v36 = vcombine.high %v330_v23, %v330_v23  ;;  %v347_v39 = vcombine.high %v9753_v27, %v9753_v27 }
  0x26   : > { %9317 = vmatmul.mubr.msk.f32.vlgmr.msra.gmra.mrb[0].mxu0 %vm227_vm2, %v636_v28  ;;  %v815_v40 = vrot.slane %v787_v21, %v9632_v10  ;;  %v355_v41 = vrot.slane %v181_v22, %v9632_v10  ;;  %v7016_v43 = vcombine.low %v330_v23, %v344_v32  ;;  %v508_v44 = vcombine.high %v506_v50, %v506_v50 }
  0x27   : > { %v824_v45 = vrot.slane %v816_v33, %v9632_v10  ;;  %9338 = vmatpush3.msk.msra.mxu0 %vm910_vm0, %v236_v31  ;;  %9319 = vmatprep.mubr.msk.f32.mxu0 %vm9575_vm1, %v12550_v2  ;;  %v637_v46 = vcombine.low %v9753_v27, %v345_v35  ;;  %v638_v47 = vcombine.low %v347_v39, %v330_v23 }
  0x28   : > { %v817_v48 = vcombine.low %v808_v29, %v815_v40  ;;  %v363_v49 = vcombine.high %v355_v41, %v355_v41  ;;  %v9774_v51 = vrot.slane %v355_v41, %v9632_v10  ;;  %v639_v52 = vcombine.low %v344_v32, %v346_v36  ;;  %9406 = vmatprep.subr.mxu0 %v12550_v2 }
  0x29   : > { %v647_v50 = vrot.slane %v637_v46, %v9632_v10  ;;  %v654_v54 = vrot.slane %v638_v47, %v9632_v10  ;;  %v9781_v56 = vrot.slane %v7016_v43, %v9632_v10  ;;  %v9784_v57 = vrot.slane %v508_v44, %v9632_v10 }
  0x2a   : > { %12654 = vst [vmem:[#allocation10_spill] sm:$0xff] %v9774_v51  ;;  %v831_v58 = vrot.slane %v817_v48, %v9632_v10  ;;  %v9788_v60 = vrot.slane %v363_v49, %v9632_v10  ;;  %v661_v0 = vrot.slane %v639_v52, %v9632_v10  ;;  %v7017_v3 = vcombine.low %v346_v36, %v9774_v51 }
  0x2b   : > { %12655 = vst [vmem:[#allocation11_spill] sm:$0xff] %v9781_v56  ;;  %12656 = vst [vmem:[#allocation12_spill] sm:$0xff] %v9784_v57  ;;  %v669_v4 = vcombine.low %v647_v50, %v654_v54  ;;  %v9794_v5 = vcombine.high %v9731_v63, %v9731_v63  ;;  %v540_v6 = vcombine.high %v185_v53, %v185_v53 }
  0x2c   : > { %12657 = vst [vmem:[#allocation13_spill] sm:$0xff] %v9788_v60  ;;  %v547_v7 = vrot.slane %v185_v53, %v9632_v10  ;;  %v832_v13 = vcombine.low %v824_v45, %v831_v58  ;;  %v640_v15 = vcombine.low %v9774_v51, %v9788_v60  ;;  %v9804_v16 = vrot.slane %v7017_v3, %v9632_v10 }
  0x2d   : > { %12658 = vst [vmem:[#allocation14_spill] sm:$0xff] %v9794_v5  ;;  %v348_v19 = vcombine.high %v181_v22, %v181_v22  ;;  %v677_v20 = vrot.slane %v669_v4, %v9632_v10  ;;  %v554_v23 = vrot.slane %v540_v6, %v9632_v10  ;;  %v833_v31 = vcombine.low %v9784_v57, %v9794_v5 }
  0x2e   : > { %12659 = vst [vmem:[#allocation15_spill] sm:$0xff] %v9804_v16  ;;  %v555_v28 = vcombine.high %v547_v7, %v547_v7  ;;  %v9809_v21 = vrot.slane %v547_v7, %v9632_v10  ;;  %9329 = vmatmul.mubr.msk.f32.vlgmr.msra.gmra.mrb[0].mxu1 %vm227_vm2, %v832_v13  ;;  %v668_v29 = vrot.slane %v640_v15, %v9632_v10 }
  0x2f   : > { %v362_v32 = vrot.slane %v348_v19, %v9632_v10  ;;  %v403_v33 = vrot.slane %v182_v9, %v9632_v10  ;;  %9361 = vmatpush3.msk.msra.mxu1 %vm910_vm0, %v238_v14  ;;  %9331 = vmatprep.mubr.msk.f32.mxu1 %vm9575_vm1, %v12550_v2  ;;  %v556_v22 = vcombine.high %v554_v23, %v554_v23 }
  0x30   : > { %12660 = vst [vmem:[#allocation16_spill] sm:$0xff] %v9809_v21  ;;  %v9821_v35 = vrot.slane %v554_v23, %v9632_v10  ;;  %v9824_v36 = vrot.slane %v555_v28, %v9632_v10  ;;  %v670_v39 = vcombine.low %v661_v0, %v668_v29  ;;  %v843_v40 = vrot.slane %v833_v31, %v9632_v10 }
  0x31   : > { %v364_v41 = vcombine.high %v362_v32, %v362_v32  ;;  %v9828_v43 = vrot.slane %v362_v32, %v9632_v10  ;;  %9383 = vmatprep.subr.mxu1 %v12550_v2  ;;  %v9832_v44 = vrot.slane %v556_v22, %v9632_v10  ;;  %v411_v47 = vcombine.high %v403_v33, %v403_v33 }
  0x32   : > { %12661 = vst [vmem:[#allocation17_spill] sm:$0xff] %v9821_v35  ;;  %12662 = vst [vmem:[#allocation18_spill] sm:$0xff] %v9824_v36  ;;  %v834_v45 = vcombine.low %v9809_v21, %v9824_v36  ;;  %v9117_v46 = vcombine.high %v9809_v21, %v9824_v36  ;;  %v684_v48 = vrot.slane %v670_v39, %v9632_v10  ;;  %v10159_v21 = vld [vmem:[%s9620_s20 + $0x28] sm:$0xff] }
  0x33   : > { %12663 = vst [vmem:[#allocation19_spill] sm:$0xff] %v9828_v43  ;;  %12664 = vst [vmem:[#allocation20_spill] sm:$0xff] %v9832_v44  ;;  %v9840_v49 = vrot.slane %v364_v41, %v9632_v10  ;;  %v9844_v52 = vcombine.high %v9828_v43, %v9828_v43  ;;  %v9847_v53 = vrot.slane %v403_v33, %v9632_v10 }
  0x34   : > { %v836_v50 = vcombine.low %v9821_v35, %v9832_v44  ;;  %v850_v54 = vrot.slane %v834_v45, %v9632_v10  ;;  %v857_v58 = vrot.slane %v9117_v46, %v9632_v10  ;;  %v9854_v0 = vrot.slane %v411_v47, %v9632_v10 }
  0x35   : > { %12665 = vst [vmem:[#allocation21_spill] sm:$0xff] %v9840_v49  ;;  %12666 = vst [vmem:[#allocation22_spill] sm:$0xff] %v9844_v52  ;;  %v685_v3 = vcombine.low %v677_v20, %v684_v48  ;;  %v441_v4 = vcombine.high %v9847_v53, %v9847_v53  ;;  %v9115_v6 = vcombine.high %v9774_v51, %v9788_v60 }
  0x36   : > { %12667 = vst [vmem:[#allocation23_spill] sm:$0xff] %v9847_v53  ;;  %12668 = vst [vmem:[#allocation24_spill] sm:$0xff] %v9854_v0  ;;  %v687_v7 = vcombine.low %v9828_v43, %v9840_v49  ;;  %v864_v13 = vrot.slane %v836_v50, %v9632_v10  ;;  %v865_v14 = vcombine.low %v843_v40, %v850_v54 }
  0x37   : > { %v688_v15 = vcombine.low %v9844_v52, %v9847_v53  ;;  %v9867_v19 = vcombine.high %v9821_v35, %v9821_v35  ;;  %9320 = vmatmul.mubr.msk.f32.gmra.mrb[2].mxu0 %vm227_vm2, %v685_v3  ;;  %v689_v20 = vcombine.low %v9854_v0, %v441_v4  ;;  %v696_v23 = vrot.slane %v9115_v6, %v9632_v10 }
  0x38   : > { %v703_v28 = vrot.slane %v687_v7, %v9632_v10  ;;  %v396_v29 = vcombine.high %v182_v9, %v182_v9  ;;  %v866_v31 = vcombine.low %v857_v58, %v864_v13  ;;  %v873_v32 = vrot.slane %v865_v14, %v9632_v10  ;;  %9322 = vmatprep.mubr.msk.f32.mxu0 %vm9575_vm1, %v12550_v2 }
  0x39   : > { %12669 = vst [vmem:[#allocation25_spill] sm:$0xff] %v9867_v19  ;;  %v710_v33 = vrot.slane %v688_v15, %v9632_v10  ;;  %v888_v22 = vrot.slane %v9867_v19, %v9632_v10  ;;  %v717_v39 = vrot.slane %v689_v20, %v9632_v10  ;;  %v443_v47 = vcombine.high %v9854_v0, %v9854_v0 }
  0x3a   : > { %v718_v40 = vcombine.low %v696_v23, %v703_v28  ;;  %v410_v45 = vrot.slane %v396_v29, %v9632_v10  ;;  %v880_v9 = vrot.slane %v866_v31, %v9632_v10  ;;  %v451_v48 = vrot.slane %v9683_v26, %v9632_v10 }
  0x3b   : > { %v895_v46 = vrot.slane %v888_v22, %v9632_v10  ;;  %v719_v50 = vcombine.low %v710_v33, %v717_v39  ;;  %v1037_v13 = vcombine.high %v9676_v24, %v9676_v24  ;;  %v1051_v28 = vrot.slane %v9676_v24, %v9632_v10 }
  0x3c   : > { %v726_v54 = vrot.slane %v718_v40, %v9632_v10  ;;  %v412_v58 = vcombine.high %v410_v45, %v410_v45  ;;  %v9891_v3 = vrot.slane %v410_v45, %v9632_v10  ;;  %v881_v4 = vcombine.low %v873_v32, %v880_v9 }
  0x3d   : > { %v459_v6 = vcombine.high %v451_v48, %v451_v48  ;;  %v9894_v7 = vrot.slane %v451_v48, %v9632_v10  ;;  %v733_v14 = vrot.slane %v719_v50, %v9632_v10  ;;  %v1065_v29 = vrot.slane %v1037_v13, %v9632_v10 }
  0x3e   : > { %12670 = vst [vmem:[#allocation26_spill] sm:$0xff] %v9891_v3  ;;  %v9900_v15 = vrot.slane %v412_v58, %v9632_v10  ;;  %v9904_v26 = vcombine.high %v9891_v3, %v9891_v3  ;;  %v735_v20 = vcombine.low %v443_v47, %v9891_v3  ;;  %9332 = vmatmul.mubr.msk.f32.gmra.mrb[2].mxu1 %vm227_vm2, %v881_v4 }
  0x3f   : > { %12671 = vst [vmem:[#allocation27_spill] sm:$0xff] %v9894_v7  ;;  %v9909_v23 = vrot.slane %v459_v6, %v9632_v10  ;;  %v1066_v31 = vcombine.high %v9691_v34, %v9691_v34  ;;  %9334 = vmatprep.mubr.msk.f32.mxu1 %vm9575_vm1, %v12550_v2  ;;  %v734_v32 = vcombine.low %v726_v54, %v733_v14 }
  0x40   : > { %12672 = vst [vmem:[#allocation28_spill] sm:$0xff] %v9900_v15  ;;  %12673 = vst [vmem:[#allocation29_spill] sm:$0xff] %v9904_v26  ;;  %v736_v33 = vcombine.low %v9900_v15, %v9904_v26  ;;  %v745_v22 = vrot.slane %v735_v20, %v9632_v10  ;;  %v1068_v39 = vcombine.high %v9705_v42, %v9705_v42  ;;  %v10342_v15 = vld [vmem:[%s9620_s20 + $0x90] sm:$0xff] }
  0x41   : > { %12674 = vst [vmem:[#allocation30_spill] sm:$0xff] %v9909_v23  ;;  %v737_v24 = vcombine.low %v9894_v7, %v9909_v23  ;;  %v9116_v40 = vcombine.high %v9894_v7, %v9909_v23  ;;  %v1067_v45 = vcombine.high %v1051_v28, %v1051_v28  ;;  %v9931_v9 = vrot.slane %v1084_v37, %v9632_v10 }
  0x42   : > { %9323 = vmatmul.mubr.msk.f32.gmra.mrb[4].mxu0 %vm227_vm2, %v734_v32  ;;  %v752_v47 = vrot.slane %v736_v33, %v9632_v10  ;;  %v2146_v48 = vcombine.high %v1065_v29, %v1065_v29  ;;  %v2153_v50 = vcombine.low %v9705_v42, %v1066_v31  ;;  %v2154_v54 = vcombine.low %v1068_v39, %v1051_v28 }
  0x43   : > { %9335 = vmatmul.mubr.msk.f32.gmra.mrb[4].mxu1 %vm227_vm2, %v895_v46  ;;  %9325 = vmatprep.mubr.msk.f32.mxu0 %vm9575_vm1, %v12550_v2  ;;  %v759_v58 = vrot.slane %v737_v24, %v9632_v10  ;;  %v766_v4 = vrot.slane %v9116_v40, %v9632_v10  ;;  %v2155_v37 = vcombine.low %v1065_v29, %v1067_v45 }
  0x44   : > { %9362 = vmatprep.mubr.msk.f32.mxu1 %vm9575_vm1, %v12550_v2  ;;  %v767_v6 = vcombine.low %v745_v22, %v752_v47  ;;  %v2156_v13 = vcombine.low %v2146_v48, %v9931_v9  ;;  %v2163_v14 = vrot.slane %v2153_v50, %v9632_v10  ;;  %v2170_v20 = vrot.slane %v2154_v54, %v9632_v10  ;;  %v9956_v47 = vld [vmem:[%s9620_s20 + $0x10] sm:$0xff] }
  0x45   : > { %v768_v46 = vcombine.low %v759_v58, %v766_v4  ;;  %v2177_v31 = vrot.slane %v2155_v37, %v9632_v10  ;;  %v1092_v32 = vrot.slane %v9680_v25, %v9632_v10  ;;  %v1357_v33 = vcombine.low %v9691_v34, %v9705_v42 }
  0x46   : > { %v775_v39 = vrot.slane %v767_v6, %v9632_v10  ;;  %v2184_v24 = vrot.slane %v2156_v13, %v9632_v10  ;;  %v2185_v22 = vcombine.low %v2163_v14, %v2170_v20  ;;  %v9126_v40 = vcombine.high %v9691_v34, %v9705_v42 }
  0x47   : > { %v782_v48 = vrot.slane %v768_v46, %v9632_v10  ;;  %v1359_v50 = vcombine.low %v1051_v28, %v1065_v29  ;;  %v1360_v54 = vcombine.low %v1067_v45, %v1092_v32  ;;  %v1367_v58 = vrot.slane %v1357_v33, %v9632_v10 }
  0x48   : > { %v2186_v25 = vcombine.low %v2177_v31, %v2184_v24  ;;  %v2193_v4 = vrot.slane %v2185_v22, %v9632_v10  ;;  %v1374_v37 = vrot.slane %v9126_v40, %v9632_v10  ;;  %v1083_v6 = vrot.slane %v1069_v17, %v9632_v10  ;;  %v239_v24 = vld [vmem:[%s12547_s1 + $0xc] sm:$0xf] }
  0x49   : > { %v783_v13 = vcombine.low %v775_v39, %v782_v48  ;;  %v1381_v34 = vrot.slane %v1359_v50, %v9632_v10  ;;  %v1388_v42 = vrot.slane %v1360_v54, %v9632_v10  ;;  %v1124_v28 = vrot.slane %v9956_v47, %v9632_v10 }
  0x4a   : > { %v2200_v29 = vrot.slane %v2186_v25, %v9632_v10  ;;  %v1389_v45 = vcombine.low %v1367_v58, %v1374_v37  ;;  %v1085_v14 = vcombine.high %v1083_v6, %v1083_v6  ;;  %v1099_v20 = vrot.slane %v1083_v6, %v9632_v10 }
  0x4b   : > { %9326 = vmatmul.mubr.msk.f32.gmra.mrb[6].mxu0 %vm227_vm2, %v783_v13  ;;  %v1390_v46 = vcombine.low %v1381_v34, %v1388_v42  ;;  %v1132_v31 = vcombine.high %v1124_v28, %v1124_v28  ;;  %v9974_v17 = vrot.slane %v1124_v28, %v9632_v10  ;;  %v9138_v33 = vcombine.high %v1092_v32, %v9931_v9  ;;  %v240_v28 = vld [vmem:[%s12547_s1 + $0x10] sm:$0xf] }
  0x4c   : > { %v2201_v39 = vcombine.low %v2193_v4, %v2200_v29  ;;  %9339 = vmatprep.mubr.msk.f32.mxu0 %vm9575_vm1, %v12550_v2  ;;  %v1397_v22 = vrot.slane %v1389_v45, %v9632_v10  ;;  %v1113_v40 = vrot.slane %v1085_v14, %v9632_v10  ;;  %v1115_v48 = vcombine.high %v1099_v20, %v1099_v20 }
  0x4d   : > { %v1404_v50 = vrot.slane %v1390_v46, %v9632_v10  ;;  %v9986_v54 = vrot.slane %v1132_v31, %v9632_v10  ;;  %v1162_v58 = vcombine.high %v9974_v17, %v9974_v17  ;;  %v2212_v25 = vrot.slane %v9138_v33, %v9632_v10 }
  0x4e   : > { %9363 = vmatmul.mubr.msk.f32.vlgmr.msra.gmra.mrb[6].mxu1 %vm227_vm2, %v2201_v39  ;;  %v2203_v4 = vcombine.low %v1099_v20, %v1113_v40  ;;  %v9139_v37 = vcombine.high %v1099_v20, %v1113_v40  ;;  %v6247_v6 = vcombine.low %v1092_v32, %v9931_v9  ;;  %v6248_v13 = vcombine.low %v1115_v48, %v9974_v17 }
  0x4f   : > { %9384 = vmatpush3.msk.msra.mxu1 %vm910_vm0, %v239_v24  ;;  %9365 = vmatprep.mubr.msk.f32.mxu1 %vm9575_vm1, %v12550_v2  ;;  %v1405_v34 = vcombine.low %v1397_v22, %v1404_v50  ;;  %v2205_v42 = vcombine.low %v9986_v54, %v1162_v58  ;;  %v1114_v29 = vcombine.high %v1092_v32, %v1092_v32 }
  0x50   : > { %v2219_v45 = vrot.slane %v2203_v4, %v9632_v10  ;;  %v2226_v14 = vrot.slane %v9139_v37, %v9632_v10  ;;  %v6255_v46 = vrot.slane %v6247_v6, %v9632_v10  ;;  %v6262_v31 = vrot.slane %v6248_v13, %v9632_v10  ;;  %9429 = vmatprep.subr.mxu1 %v12550_v2 }
  0x51   : > { %9340 = vmatmul.mubr.msk.f32.vlgmr.msra.gmra.mrb[0].mxu0 %vm227_vm2, %v1405_v34  ;;  %v10008_v33 = vrot.slane %v2205_v42, %v9632_v10  ;;  %v1116_v39 = vcombine.high %v9931_v9, %v9931_v9  ;;  %v1406_v32 = vcombine.low %v9931_v9, %v1114_v29  ;;  %v1408_v24 = vcombine.low %v1113_v40, %v1115_v48  ;;  %v10021_v34 = vld [vmem:[%s9620_s20 + $0x18] sm:$0xff] }
  0x52   : > { %v2234_v22 = vcombine.low %v2212_v25, %v2219_v45  ;;  %v6263_v50 = vcombine.low %v6255_v46, %v2212_v25  ;;  %v6264_v58 = vcombine.low %v2219_v45, %v6262_v31  ;;  %9407 = vmatpush3.msk.msra.mxu0 %vm910_vm0, %v240_v28  ;;  %9342 = vmatprep.mubr.msk.f32.mxu0 %vm9575_vm1, %v12550_v2 }
  0x53   : > { %v2235_v4 = vcombine.low %v2226_v14, %v10008_v33  ;;  %v1407_v37 = vcombine.low %v1116_v39, %v1099_v20  ;;  %v1409_v6 = vcombine.low %v9974_v17, %v9986_v54  ;;  %v1416_v13 = vrot.slane %v1406_v32, %v9632_v10  ;;  %9452 = vmatprep.subr.mxu0 %v12550_v2 }
  0x54   : > { %v2242_v9 = vrot.slane %v2234_v22, %v9632_v10  ;;  %v10026_v48 = vrot.slane %v6263_v50, %v9632_v10  ;;  %v10029_v25 = vrot.slane %v6264_v58, %v9632_v10  ;;  %v1430_v42 = vrot.slane %v1408_v24, %v9632_v10 }
  0x55   : > { %v2249_v20 = vrot.slane %v2235_v4, %v9632_v10  ;;  %v1423_v28 = vrot.slane %v1407_v37, %v9632_v10  ;;  %v1437_v29 = vrot.slane %v1409_v6, %v9632_v10  ;;  %v2147_v45 = vcombine.high %v1113_v40, %v1113_v40 }
  0x56   : > { %v1117_v14 = vcombine.high %v9956_v47, %v9956_v47  ;;  %v1164_v46 = vcombine.high %v9986_v54, %v9986_v54  ;;  %v1172_v31 = vrot.slane %v10021_v34, %v9632_v10  ;;  %v9127_v39 = vcombine.high %v9974_v17, %v9986_v54 }
  0x57   : > { %v2250_v32 = vcombine.low %v2242_v9, %v2249_v20  ;;  %v1438_v24 = vcombine.low %v1416_v13, %v1423_v28  ;;  %v1439_v22 = vcombine.low %v1430_v42, %v1437_v29  ;;  %v7853_v50 = vcombine.low %v2147_v45, %v9986_v54  ;;  %v10066_v45 = vld [vmem:[%s9620_s20 + $0x20] sm:$0xff] }
  0x58   : > { %v1131_v40 = vrot.slane %v1117_v14, %v9632_v10  ;;  %v1180_v58 = vcombine.high %v1172_v31, %v1172_v31  ;;  %v10046_v4 = vrot.slane %v1172_v31, %v9632_v10  ;;  %v1465_v37 = vrot.slane %v9127_v39, %v9632_v10 }
  0x59   : > { %9366 = vmatmul.mubr.msk.f32.gmra.mrb[8].mxu1 %vm227_vm2, %v2250_v32  ;;  %v1446_v6 = vrot.slane %v1438_v24, %v9632_v10  ;;  %v1453_v17 = vrot.slane %v1439_v22, %v9632_v10  ;;  %v7860_v13 = vrot.slane %v7853_v50, %v9632_v10  ;;  %v1165_v9 = vcombine.high %v10021_v34, %v10021_v34 }
  0x5a   : > { %9368 = vmatprep.mubr.msk.f32.mxu1 %vm9575_vm1, %v12550_v2  ;;  %v1133_v54 = vcombine.high %v1131_v40, %v1131_v40  ;;  %v10058_v20 = vrot.slane %v1131_v40, %v9632_v10  ;;  %v10061_v28 = vrot.slane %v1180_v58, %v9632_v10  ;;  %v1210_v29 = vcombine.high %v10046_v4, %v10046_v4 }
  0x5b   : > { %v1454_v14 = vcombine.low %v1446_v6, %v1453_v17  ;;  %v7861_v31 = vcombine.low %v1430_v42, %v7860_v13  ;;  %v1179_v39 = vrot.slane %v1165_v9, %v9632_v10  ;;  %v1213_v32 = vcombine.high %v10066_v45, %v10066_v45 }
  0x5c   : > { %12675 = vst [vmem:[#allocation31_spill] sm:$0xff] %v10058_v20  ;;  %v10072_v24 = vrot.slane %v1133_v54, %v9632_v10  ;;  %v1163_v22 = vcombine.high %v10058_v20, %v10058_v20  ;;  %v2251_v50 = vcombine.low %v1164_v46, %v10058_v20  ;;  %v9140_v40 = vcombine.high %v10046_v4, %v10061_v28 }
  0x5d   : > { %9343 = vmatmul.mubr.msk.f32.gmra.mrb[2].mxu0 %vm227_vm2, %v1454_v14  ;;  %v7868_v42 = vrot.slane %v7861_v31, %v9632_v10  ;;  %v1458_v58 = vcombine.low %v10061_v28, %v1210_v29  ;;  %v1181_v17 = vcombine.high %v1179_v39, %v1179_v39  ;;  %v1195_v13 = vrot.slane %v1179_v39, %v9632_v10 }
  0x5e   : > { %12676 = vst [vmem:[#allocation32_spill] sm:$0xff] %v10072_v24  ;;  %v2148_v9 = vcombine.high %v10072_v24, %v10072_v24  ;;  %v2252_v54 = vcombine.low %v10072_v24, %v1163_v22  ;;  %v10087_v41 = vrot.slane %v2251_v50, %v9632_v10  ;;  %v10090_v46 = vrot.slane %v9140_v40, %v9632_v10 }
  0x5f   : > { %9345 = vmatprep.mubr.msk.f32.mxu0 %vm9575_vm1, %v12550_v2  ;;  %v10094_v14 = vcombine.low %v1446_v6, %v7868_v42  ;;  %v1456_v29 = vcombine.low %v10058_v20, %v10072_v24  ;;  %v1457_v31 = vcombine.low %v1163_v22, %v10046_v4  ;;  %v10100_v39 = vrot.slane %v1458_v58, %v9632_v10 }
  0x60   : > { %v2253_v18 = vcombine.low %v2148_v9, %v10061_v28  ;;  %v10104_v50 = vrot.slane %v2252_v54, %v9632_v10  ;;  %v10107_v40 = vrot.slane %v1181_v17, %v9632_v10  ;;  %v1220_v6 = vrot.slane %v10066_v45, %v9632_v10 }
  0x61   : > { %12677 = vst [vmem:[#allocation33_spill] sm:$0xff] %v10094_v14  ;;  %12678 = vst [vmem:[#allocation34_spill] sm:$0xff] %v10100_v39  ;;  %v1472_v42 = vrot.slane %v1456_v29, %v9632_v10  ;;  %v1479_v38 = vrot.slane %v1457_v31, %v9632_v10  ;;  %v1227_v22 = vrot.slane %v1213_v32, %v9632_v10 }
  0x62   : > { %12679 = vst [vmem:[#allocation35_spill] sm:$0xff] %v10107_v40  ;;  %v10114_v2 = vcombine.high %v1195_v13, %v1195_v13  ;;  %v2275_v58 = vrot.slane %v2253_v18, %v9632_v10  ;;  %v2283_v9 = vcombine.low %v10087_v41, %v10104_v50  ;;  %v1228_v54 = vcombine.high %v1220_v6, %v1220_v6 }
  0x63   : > { %v10120_v17 = vrot.slane %v1220_v6, %v9632_v10  ;;  %v1487_v19 = vcombine.low %v1465_v37, %v1472_v42  ;;  %v1488_v44 = vcombine.low %v1479_v38, %v10100_v39  ;;  %v10124_v29 = vrot.slane %v1227_v22, %v9632_v10 }
  0x64   : > { %v2300_v31 = vcombine.low %v1195_v13, %v10107_v40  ;;  %v2284_v32 = vcombine.low %v2275_v58, %v10090_v46  ;;  %v2291_v35 = vrot.slane %v2283_v9, %v9632_v10  ;;  %v10130_v18 = vrot.slane %v1228_v54, %v9632_v10 }
  0x65   : > { %12680 = vst [vmem:[#allocation36_spill] sm:$0xff] %v10124_v29  ;;  %v1258_v14 = vcombine.high %v10120_v17, %v10120_v17  ;;  %v10135_v6 = vrot.slane %v1487_v19, %v9632_v10  ;;  %v1502_v38 = vrot.slane %v1488_v44, %v9632_v10  ;;  %v9141_v37 = vcombine.high %v1195_v13, %v10107_v40 }
  0x66   : > { %12681 = vst [vmem:[#allocation37_spill] sm:$0xff] %v10130_v18  ;;  %v10140_v42 = vrot.slane %v2300_v31, %v9632_v10  ;;  %v2298_v58 = vrot.slane %v2284_v32, %v9632_v10  ;;  %v1260_v9 = vcombine.high %v10130_v18, %v10130_v18  ;;  %v1212_v5 = vcombine.high %v10061_v28, %v10061_v28 }
  0x67   : > { %12682 = vst [vmem:[#allocation38_spill] sm:$0xff] %v10135_v6  ;;  %v2302_v54 = vcombine.low %v10130_v18, %v1258_v14  ;;  %v1503_v19 = vcombine.low %v10135_v6, %v1502_v38  ;;  %v2317_v63 = vrot.slane %v9141_v37, %v9632_v10  ;;  %v1505_v44 = vcombine.low %v10107_v40, %v10114_v2 }
  0x68   : > { %v1506_v31 = vcombine.low %v10120_v17, %v10130_v18  ;;  %v2299_v32 = vcombine.low %v2291_v35, %v2298_v58  ;;  %v2303_v57 = vcombine.low %v1260_v9, %v10124_v29  ;;  %v1504_v14 = vcombine.low %v1212_v5, %v1195_v13  ;;  %v10175_v9 = vld [vmem:[%s9620_s20 + $0x30] sm:$0xff] }
  0x69   : > { %v10156_v36 = vrot.slane %v2302_v54, %v9632_v10  ;;  %9346 = vmatmul.mubr.msk.f32.gmra.mrb[4].mxu0 %vm227_vm2, %v1503_v19  ;;  %v2332_v38 = vcombine.low %v10140_v42, %v2317_v63  ;;  %v9128_v37 = vcombine.high %v10120_v17, %v10130_v18  ;;  %v1521_v6 = vrot.slane %v1505_v44, %v9632_v10 }
  0x6a   : > { %v1528_v40 = vrot.slane %v1506_v31, %v9632_v10  ;;  %9369 = vmatmul.mubr.msk.f32.gmra.mrb[10].mxu1 %vm227_vm2, %v2299_v32  ;;  %v10169_v35 = vrot.slane %v2303_v57, %v9632_v10  ;;  %v12685_v58 = vmov 0.0   ;;  %v1514_v5 = vrot.slane %v1504_v14, %v9632_v10 }
  0x6b   : > { %12683 = vst [vmem:[#allocation39_spill] sm:$0xff] %v10156_v36  ;;  %9348 = vmatprep.mubr.msk.f32.mxu0 %vm9575_vm1, %v12685_v58  ;;  %v1229_v13 = vcombine.high %v1227_v22, %v1227_v22  ;;  %9371 = vmatprep.mubr.msk.f32.mxu1 %vm9575_vm1, %v12685_v58  ;;  %v2340_v63 = vrot.slane %v2332_v38, %v9632_v10 }
  0x6c   : > { %12684 = vst [vmem:[#allocation40_spill] sm:$0xff] %v10169_v35  ;;  %v10181_v54 = vrot.slane %v9128_v37, %v9632_v10  ;;  %v1259_v57 = vcombine.high %v10124_v29, %v10124_v29  ;;  %v1261_v19 = vcombine.high %v10159_v21, %v10159_v21  ;;  %v2333_v44 = vcombine.low %v10156_v36, %v10169_v35 }
  0x6d   : > { %v1536_v22 = vcombine.low %v1514_v5, %v1521_v6  ;;  %v10190_v31 = vrot.slane %v1229_v13, %v9632_v10  ;;  %v1268_v32 = vrot.slane %v10159_v21, %v9632_v10  ;;  %v1309_v37 = vcombine.high %v10175_v9, %v10175_v9 }
  0x6e   : > { %12686 = vst [vmem:[#allocation41_spill] sm:$0xff] %v10181_v54  ;;  %v1537_v14 = vcombine.low %v1528_v40, %v10181_v54  ;;  %v1275_v38 = vrot.slane %v1261_v19, %v9632_v10  ;;  %v1316_v18 = vrot.slane %v10175_v9, %v9632_v10  ;;  %v2347_v55 = vrot.slane %v2333_v44, %v9632_v10 }
  0x6f   : > { %12687 = vst [vmem:[#allocation42_spill] sm:$0xff] %v10190_v31  ;;  %v10202_v6 = vrot.slane %v1536_v22, %v9632_v10  ;;  %v1276_v5 = vcombine.high %v1268_v32, %v1268_v32  ;;  %v10205_v13 = vrot.slane %v1268_v32, %v9632_v10  ;;  %v2150_v54 = vcombine.high %v10190_v31, %v10190_v31 }
  0x70   : > { %v1551_v59 = vrot.slane %v1537_v14, %v9632_v10  ;;  %v1277_v40 = vcombine.high %v1275_v38, %v1275_v38  ;;  %v1291_v19 = vrot.slane %v1275_v38, %v9632_v10  ;;  %v2348_v1 = vcombine.low %v2340_v63, %v2347_v55 }
  0x71   : > { %12688 = vst [vmem:[#allocation43_spill] sm:$0xff] %v10202_v6  ;;  %12689 = vst [vmem:[#allocation44_spill] sm:$0xff] %v10205_v13  ;;  %v10212_v39 = vrot.slane %v1276_v5, %v9632_v10  ;;  %v2349_v44 = vcombine.low %v10190_v31, %v1259_v57  ;;  %v1306_v22 = vcombine.high %v10205_v13, %v10205_v13 }
  0x72   : > { %v1552_v32 = vcombine.low %v10202_v6, %v1551_v59  ;;  %v10219_v61 = vrot.slane %v1277_v40, %v9632_v10  ;;  %v1553_v14 = vcombine.low %v10124_v29, %v10190_v31  ;;  %v1554_v38 = vcombine.low %v1259_v57, %v10205_v13  ;;  %9372 = vmatmul.mubr.msk.f32.gmra.mrb[12].mxu1 %vm227_vm2, %v2348_v1 }
  0x73   : > { %12690 = vst [vmem:[#allocation45_spill] sm:$0xff] %v10212_v39  ;;  %v2350_v55 = vcombine.low %v2150_v54, %v10212_v39  ;;  %v9142_v63 = vcombine.high %v10205_v13, %v10212_v39  ;;  %v10229_v5 = vrot.slane %v2349_v44, %v9632_v10  ;;  %v1308_v59 = vcombine.high %v10212_v39, %v10212_v39 }
  0x74   : > { %12691 = vst [vmem:[#allocation46_spill] sm:$0xff] %v10219_v61  ;;  %9374 = vmatprep.mubr.msk.f32.mxu1 %vm9575_vm1, %v12685_v58  ;;  %9349 = vmatmul.mubr.msk.f32.gmra.mrb[6].mxu0 %vm227_vm2, %v1552_v32  ;;  %v2352_v57 = vcombine.low %v1291_v19, %v10219_v61  ;;  %v1555_v1 = vcombine.low %v10212_v39, %v1306_v22 }
  0x75   : > { %12692 = vst [vmem:[#allocation47_spill] sm:$0xff] %v10229_v5  ;;  %v10239_v54 = vrot.slane %v1553_v14, %v9632_v10  ;;  %v2366_v40 = vrot.slane %v2350_v55, %v9632_v10  ;;  %v10243_v44 = vrot.slane %v9142_v63, %v9632_v10  ;;  %9351 = vmatprep.mubr.msk.f32.mxu0 %vm9575_vm1, %v12685_v58 }
  0x76   : > { %v1556_v6 = vcombine.low %v1308_v59, %v1291_v19  ;;  %v1570_v29 = vrot.slane %v1554_v38, %v9632_v10  ;;  %v10249_v32 = vrot.slane %v2352_v57, %v9632_v10  ;;  %v1577_v31 = vrot.slane %v1555_v1, %v9632_v10 }
  0x77   : > { %12693 = vst [vmem:[#allocation48_spill] sm:$0xff] %v10239_v54  ;;  %12694 = vst [vmem:[#allocation49_spill] sm:$0xff] %v10243_v44  ;;  %v1323_v22 = vrot.slane %v1309_v37, %v9632_v10  ;;  %v1324_v14 = vcombine.high %v1316_v18, %v1316_v18  ;;  %v2381_v62 = vcombine.low %v10229_v5, %v2366_v40 }
  0x78   : > { %12695 = vst [vmem:[#allocation50_spill] sm:$0xff] %v10249_v32  ;;  %v1584_v55 = vrot.slane %v1556_v6, %v9632_v10  ;;  %v1585_v63 = vcombine.low %v10239_v54, %v1570_v29  ;;  %v10257_v20 = vrot.slane %v1316_v18, %v9632_v10  ;;  %v2382_v38 = vcombine.low %v10243_v44, %v10249_v32 }
  0x79   : > { %v1325_v59 = vcombine.high %v1323_v22, %v1323_v22  ;;  %v10262_v57 = vrot.slane %v1323_v22, %v9632_v10  ;;  %v10265_v1 = vrot.slane %v1324_v14, %v9632_v10  ;;  %v2389_v37 = vrot.slane %v2381_v62, %v9632_v10 }
  0x7a   : > { %12696 = vst [vmem:[#allocation51_spill] sm:$0xff] %v10257_v20  ;;  %v1586_v40 = vcombine.low %v1577_v31, %v1584_v55  ;;  %v1593_v6 = vrot.slane %v1585_v63, %v9632_v10  ;;  %v1354_v29 = vcombine.high %v10257_v20, %v10257_v20  ;;  %v2396_v18 = vrot.slane %v2382_v38, %v9632_v10 }
  0x7b   : > { %12697 = vst [vmem:[#allocation52_spill] sm:$0xff] %v10262_v57  ;;  %12698 = vst [vmem:[#allocation53_spill] sm:$0xff] %v10265_v1  ;;  %v10273_v54 = vrot.slane %v1325_v59, %v9632_v10  ;;  %v1355_v22 = vcombine.high %v10262_v57, %v10262_v57  ;;  %v1356_v14 = vcombine.high %v10265_v1, %v10265_v1 }
  0x7c   : > { %v10280_v24 = vrot.slane %v1586_v40, %v9632_v10  ;;  %v9143_v62 = vcombine.high %v1291_v19, %v10219_v61  ;;  %v2399_v31 = vcombine.low %v10265_v1, %v1354_v29  ;;  %v10284_v55 = vcombine.high %v1291_v19, %v1291_v19 }
  0x7d   : > { %12699 = vst [vmem:[#allocation54_spill] sm:$0xff] %v10273_v54  ;;  %v2397_v63 = vcombine.low %v2389_v37, %v2396_v18  ;;  %v2400_v38 = vcombine.low %v1356_v14, %v10262_v57  ;;  %v2401_v59 = vcombine.low %v10273_v54, %v1355_v22  ;;  %v1603_v23 = vcombine.low %v10257_v20, %v10265_v1 }
  0x7e   : > { %12700 = vst [vmem:[#allocation55_spill] sm:$0xff] %v10280_v24  ;;  %12701 = vst [vmem:[#allocation56_spill] sm:$0xff] %v10284_v55  ;;  %v1601_v26 = vcombine.low %v1593_v6, %v10280_v24  ;;  %v2408_v3 = vrot.slane %v9143_v62, %v9632_v10  ;;  %v10293_v40 = vrot.slane %v2399_v31, %v9632_v10 }
  0x7f   : > { %v1602_v29 = vcombine.low %v10219_v61, %v10284_v55  ;;  %9375 = vmatmul.mubr.msk.f32.gmra.mrb[14].mxu1 %vm227_vm2, %v2397_v63  ;;  %v10299_v19 = vrot.slane %v2400_v38, %v9632_v10  ;;  %v10302_v37 = vrot.slane %v2401_v59, %v9632_v10  ;;  %v9129_v18 = vcombine.high %v10257_v20, %v10265_v1  ;;  %v188_v61 = vld [vmem:[%s9620_s20 + $0x88] sm:$0xff] }
  0x80   : > { %12702 = vst [vmem:[#allocation57_spill] sm:$0xff] %v10293_v40  ;;  %v1605_v6 = vcombine.low %v10262_v57, %v10273_v54  ;;  %9377 = vmatprep.mubr.msk.f32.mxu1 %vm9575_vm1, %v12685_v58  ;;  %9352 = vmatmul.mubr.msk.f32.gmra.mrb[8].mxu0 %vm227_vm2, %v1601_v26  ;;  %v2430_v14 = vcombine.low %v2408_v3, %v10293_v40 }
  0x81   : > { %12703 = vst [vmem:[#allocation58_spill] sm:$0xff] %v10299_v19  ;;  %12704 = vst [vmem:[#allocation59_spill] sm:$0xff] %v10302_v37  ;;  %v10313_v62 = vrot.slane %v1602_v29, %v9632_v10  ;;  %v1619_v31 = vrot.slane %v1603_v23, %v9632_v10  ;;  %v2431_v63 = vcombine.low %v10299_v19, %v10302_v37  ;;  %9354 = vmatprep.mubr.msk.f32.mxu0 %vm9575_vm1, %v12685_v58 }
  0x82   : > { %v1626_v38 = vrot.slane %v9129_v18, %v9632_v10  ;;  %v1633_v59 = vrot.slane %v1605_v6, %v9632_v10  ;;  %v2152_v26 = vcombine.high %v10273_v54, %v10273_v54  ;;  %v2438_v3 = vrot.slane %v2430_v14, %v9632_v10 }
  0x83   : > { %12705 = vst [vmem:[#allocation60_spill] sm:$0xff] %v10313_v62  ;;  %v1634_v29 = vcombine.low %v10313_v62, %v1619_v31  ;;  %v1657_v23 = vrot.slane %v1355_v22, %v9632_v10  ;;  %v3005_v57 = vrot.slane %v9662_v12, %v9632_v10  ;;  %v2445_v1 = vrot.slane %v2431_v63, %v9632_v10 }
  0x84   : > { %v1635_v24 = vcombine.low %v1626_v38, %v1633_v59  ;;  %v2453_v18 = vrot.slane %v2152_v26, %v9632_v10  ;;  %v12706_v6 = vcombine.high %v9662_v12, %v9662_v12 }
  0x85   : > { %v1642_v14 = vrot.slane %v1634_v29, %v9632_v10  ;;  %v1664_v31 = vrot.slane %v1657_v23, %v9632_v10  ;;  %v3013_v22 = vcombine.high %v3005_v57, %v3005_v57  ;;  %v10339_v62 = vrot.slane %v3005_v57, %v9632_v10  ;;  %v10356_v57 = vld [vmem:[%s9620_s20 + $0xc8] sm:$0xff] }
  0x86   : > { %v3012_v54 = vrot.slane %v12706_v6, %v9632_v10  ;;  %v2446_v63 = vcombine.low %v2438_v3, %v2445_v1  ;;  %v10345_v38 = vrot.slane %v1635_v24, %v9632_v10  ;;  %v2460_v59 = vrot.slane %v2453_v18, %v9632_v10 }
  0x87   : > { %v10352_v29 = vrot.slane %v3013_v22, %v9632_v10  ;;  %v3053_v23 = vrot.slane %v188_v61, %v9632_v10  ;;  %v3046_v6 = vcombine.high %v188_v61, %v188_v61  ;;  %v3101_v3 = vrot.slane %v10342_v15, %v9632_v10 }
  0x88   : > { %12707 = vst [vmem:[#allocation61_spill] sm:$0xff] %v10345_v38  ;;  %v3014_v26 = vcombine.high %v3012_v54, %v3012_v54  ;;  %v10349_v12 = vrot.slane %v3012_v54, %v9632_v10  ;;  %9378 = vmatmul.mubr.msk.f32.gmra.mrb[16].mxu1 %vm227_vm2, %v2446_v63  ;;  %v1650_v1 = vcombine.low %v1642_v14, %v10345_v38 }
  0x89   : > { %v212_v54 = vmax.f32 %v188_v61, %v10356_v57  ;;  %9380 = vmatprep.mubr.msk.f32.mxu1 %vm9575_vm1, %v12685_v58  ;;  %v10373_v22 = vrot.slane %v3053_v23, %v9632_v10  ;;  %v3334_v14 = vcombine.low %v10339_v62, %v10352_v29  ;;  %v9152_v63 = vcombine.high %v10339_v62, %v10352_v29 }
  0x8a   : > { %v10361_v24 = vrot.slane %v3014_v26, %v9632_v10  ;;  %v10370_v18 = vcombine.high %v10349_v12, %v10349_v12  ;;  %9355 = vmatmul.mubr.msk.f32.gmra.mrb[10].mxu0 %vm227_vm2, %v1650_v1  ;;  %v3060_v26 = vrot.slane %v3046_v6, %v9632_v10  ;;  %v3061_v38 = vcombine.high %v3053_v23, %v3053_v23 }
  0x8b   : > { %v3109_v7 = vcombine.high %v3101_v3, %v3101_v3  ;;  %9357 = vmatprep.mubr.msk.f32.mxu0 %vm9575_vm1, %v12685_v58  ;;  %v3344_v53 = vrot.slane %v3334_v14, %v9632_v10  ;;  %v3351_v0 = vrot.slane %v9152_v63, %v9632_v10  ;;  %v3091_v1 = vcombine.high %v10373_v22, %v10373_v22 }
  0x8c   : > { %v3336_v61 = vcombine.low %v10349_v12, %v10361_v24  ;;  %v3337_v43 = vcombine.low %v10370_v18, %v10373_v22  ;;  %9381 = vmatmul.mubr.msk.f32.gmra.mrb[18].mxu1 %vm227_vm2, %v2460_v59  ;;  %v3062_v6 = vcombine.high %v3060_v26, %v3060_v26  ;;  %v10394_v23 = vrot.slane %v3060_v26, %v9632_v10 }
  0x8d   : > { %v10397_v52 = vrot.slane %v3061_v38, %v9632_v10  ;;  %9385 = vmatprep.mubr.msk.f32.mxu1 %vm9575_vm1, %v12685_v58  ;;  %v3366_v63 = vcombine.low %v3344_v53, %v3351_v0  ;;  %v10403_v37 = vrot.slane %v3101_v3, %v9632_v10  ;;  %v10406_v59 = vrot.slane %v3109_v7, %v9632_v10 }
  0x8e   : > { %v3358_v49 = vrot.slane %v3336_v61, %v9632_v10  ;;  %v3365_v14 = vrot.slane %v3337_v43, %v9632_v10  ;;  %9358 = vmatmul.mubr.msk.f32.gmra.mrb[12].mxu0 %vm227_vm2, %v1664_v31  ;;  %v10410_v61 = vrot.slane %v3062_v6, %v9632_v10  ;;  %v3092_v38 = vcombine.high %v10394_v23, %v10394_v23 }
  0x8f   : > { %v3093_v43 = vcombine.high %v10397_v52, %v10397_v52  ;;  %v3383_v53 = vcombine.low %v10397_v52, %v3091_v1  ;;  %v3374_v3 = vrot.slane %v3366_v63, %v9632_v10  ;;  %9408 = vmatprep.mubr.msk.f32.mxu0 %vm9575_vm1, %v12685_v58  ;;  %v3386_v7 = vcombine.low %v10403_v37, %v10406_v59 }
  0x90   : > { %v3367_v0 = vcombine.low %v3358_v49, %v3365_v14  ;;  %v12708_v31 = vmax.f32 %v9629_v8, %v9659_v11  ;;  %v3385_v60 = vcombine.low %v10410_v61, %v3092_v38  ;;  %v9559_v49 = vld [vmem:[%s9620_s20 + $0xc0] sm:$0xff]  ;;  %v10436_v8 = vrot.slane %v10356_v57, %v9632_v10 }
  0x91   : > { %v3384_v6 = vcombine.low %v3093_v43, %v10394_v23  ;;  %v3393_v1 = vrot.slane %v3383_v53, %v9632_v10  ;;  %v4179_v14 = vcombine.high %v9559_v49, %v9559_v49  ;;  %v3414_v51 = vrot.slane %v3386_v7, %v9632_v10  ;;  %v10442_v43 = vld [vmem:[%s9620_s20 + $0x98] sm:$0xff]  ;;  %v241_v7 = vld [vmem:[%s12547_s1 + $0x14] sm:$0xf] }
  0x92   : > { %v220_v26 = vmax.f32 %v12708_v31, %v212_v54  ;;  %v3381_v63 = vrot.slane %v3367_v0, %v9632_v10  ;;  %v4186_v56 = vrot.slane %v9559_v49, %v9632_v10  ;;  %v3407_v54 = vrot.slane %v3385_v60, %v9632_v10 }
  0x93   : > { %v3400_v11 = vrot.slane %v3384_v6, %v9632_v10  ;;  %v4193_v38 = vrot.slane %v4179_v14, %v9632_v10  ;;  %v3094_v53 = vcombine.high %v10342_v15, %v10342_v15  ;;  %v10452_v6 = vrot.slane %v10436_v8, %v9632_v10 }
  0x94   : > { %229 = vst.msk [vmem:[%s9625_s23 + $0x8] sm:$0xff] %vm227_vm2, %v220_v26  ;;  %v3382_v0 = vcombine.low %v3374_v3, %v3381_v63  ;;  %v4194_v31 = vcombine.high %v4186_v56, %v4186_v56  ;;  %v4202_v26 = vrot.slane %v4186_v56, %v9632_v10  ;;  %v3416_v49 = vcombine.low %v3407_v54, %v3414_v51 }
  0x95   : > { %v3415_v60 = vcombine.low %v3393_v1, %v3400_v11  ;;  %v4195_v14 = vcombine.high %v4193_v38, %v4193_v38  ;;  %v4209_v16 = vrot.slane %v4193_v38, %v9632_v10  ;;  %v3108_v63 = vrot.slane %v3094_v53, %v9632_v10 }
  0x96   : > { %9386 = vmatmul.mubr.msk.f32.vlgmr.msra.gmra.mrb[20].mxu1 %vm227_vm2, %v3382_v0  ;;  %v4216_v3 = vrot.slane %v4194_v31, %v9632_v10  ;;  %v3149_v30 = vrot.slane %v10442_v43, %v9632_v10  ;;  %v9153_v56 = vcombine.high %v10403_v37, %v10406_v59  ;;  %v3430_v1 = vrot.slane %v3416_v49, %v9632_v10 }
  0x97   : > { %9430 = vmatpush3.msk.msra.mxu1 %vm910_vm0, %v241_v7  ;;  %9388 = vmatprep.mubr.msk.f32.mxu1 %vm9575_vm1, %v12685_v58  ;;  %v3423_v51 = vrot.slane %v3415_v60, %v9632_v10  ;;  %v4223_v11 = vrot.slane %v4195_v14, %v9632_v10  ;;  %v4225_v54 = vcombine.high %v4209_v16, %v4209_v16 }
  0x98   : > { %v4515_v38 = vcombine.low %v4202_v26, %v4216_v3  ;;  %v9164_v53 = vcombine.high %v4202_v26, %v4216_v3  ;;  %v3110_v0 = vcombine.high %v3108_v63, %v3108_v63  ;;  %9475 = vmatprep.subr.mxu1 %v12685_v58  ;;  %v10470_v32 = vrot.slane %v3108_v63, %v9632_v10 }
  0x99   : > { %v3431_v31 = vcombine.low %v3423_v51, %v3430_v1  ;;  %v4517_v27 = vcombine.low %v4209_v16, %v4223_v11  ;;  %v3157_v7 = vcombine.high %v3149_v30, %v3149_v30  ;;  %v4518_v40 = vcombine.low %v4225_v54, %v10452_v6  ;;  %v10497_v54 = vld [vmem:[%s9620_s20 + $0xd0] sm:$0xff] }
  0x9a   : > { %v4525_v60 = vrot.slane %v4515_v38, %v9632_v10  ;;  %v4532_v49 = vrot.slane %v9164_v53, %v9632_v10  ;;  %v10476_v14 = vrot.slane %v3110_v0, %v9632_v10  ;;  %v10482_v16 = vcombine.high %v10470_v32, %v10470_v32  ;;  %v9560_v53 = vld [vmem:[%s9620_s20 + $0x50] sm:$0xff] }
  0x9b   : > { %9389 = vmatmul.mubr.msk.f32.gmra.mrb[22].mxu1 %vm227_vm2, %v3431_v31  ;;  %v4539_v26 = vrot.slane %v4517_v27, %v9632_v10  ;;  %v10485_v3 = vrot.slane %v3149_v30, %v9632_v10  ;;  %v10488_v63 = vrot.slane %v3157_v7, %v9632_v10  ;;  %v4546_v51 = vrot.slane %v4518_v40, %v9632_v10 }
  0x9c   : > { %v4547_v1 = vcombine.low %v4525_v60, %v4532_v49  ;;  %9391 = vmatprep.mubr.msk.f32.mxu1 %vm9575_vm1, %v12685_v58  ;;  %v3433_v11 = vcombine.low %v10470_v32, %v10476_v14  ;;  %v3442_v27 = vrot.slane %v9153_v56, %v9632_v10  ;;  %v205_v40 = vmax.f32 %v9956_v47, %v9560_v53 }
  0x9d   : > { %v3187_v30 = vcombine.high %v10485_v3, %v10485_v3  ;;  %v3434_v38 = vcombine.low %v10482_v16, %v10485_v3  ;;  %v213_v0 = vmax.f32 %v10342_v15, %v10497_v54  ;;  %v4548_v31 = vcombine.low %v4539_v26, %v4546_v51 }
  0x9e   : > { %v4555_v7 = vrot.slane %v4547_v1, %v9632_v10  ;;  %v3449_v56 = vrot.slane %v3433_v11, %v9632_v10  ;;  %v4227_v60 = vcombine.high %v10356_v57, %v10356_v57  ;;  %v4242_v20 = vcombine.high %v10436_v8, %v10436_v8 }
  0x9f   : > { %v3435_v49 = vcombine.low %v10488_v63, %v3187_v30  ;;  %v3456_v19 = vrot.slane %v3434_v38, %v9632_v10  ;;  %v221_v55 = vmax.f32 %v205_v40, %v213_v0  ;;  %v4562_v47 = vrot.slane %v4548_v31, %v9632_v10 }
  0xa0   : > { %v3464_v53 = vcombine.low %v3442_v27, %v3449_v56  ;;  %v4241_v15 = vrot.slane %v4227_v60, %v9632_v10  ;;  %v4272_v26 = vcombine.high %v10452_v6, %v10452_v6  ;;  %v4264_v57 = vrot.slane %v4242_v20, %v9632_v10  ;;  %v242_v27 = vld [vmem:[%s12547_s1 + $0x18] sm:$0xf] }
  0xa1   : > { %v3463_v51 = vrot.slane %v3435_v49, %v9632_v10  ;;  %230 = vst.msk [vmem:[%s9625_s23 + $0x10] sm:$0xff] %vm227_vm2, %v221_v55  ;;  %v4282_v1 = vrot.slane %v10497_v54, %v9632_v10  ;;  %v3142_v8 = vcombine.high %v10442_v43, %v10442_v43  ;;  %v4563_v11 = vcombine.low %v4555_v7, %v4562_v47 }
  0xa2   : > { %v3472_v30 = vrot.slane %v3464_v53, %v9632_v10  ;;  %v4243_v6 = vcombine.high %v4241_v15, %v4241_v15  ;;  %v4257_v38 = vrot.slane %v4241_v15, %v9632_v10  ;;  %v4274_v40 = vcombine.high %v4264_v57, %v4264_v57  ;;  %v10544_v53 = vld [vmem:[%s9620_s20 + $0xa0] sm:$0xff] }
  0xa3   : > { %v3465_v55 = vcombine.low %v3456_v19, %v3463_v51  ;;  %v4290_v20 = vcombine.high %v4282_v1, %v4282_v1  ;;  %v10533_v0 = vrot.slane %v4282_v1, %v9632_v10  ;;  %9409 = vmatmul.mubr.msk.f32.vlgmr.msra.gmra.mrb[14].mxu0 %vm227_vm2, %v4563_v11  ;;  %v4564_v56 = vcombine.low %v4264_v57, %v4272_v26 }
  0xa4   : > { %v4271_v31 = vrot.slane %v4243_v6, %v9632_v10  ;;  %v4273_v7 = vcombine.high %v4257_v38, %v4257_v38  ;;  %v3156_v60 = vrot.slane %v3142_v8, %v9632_v10  ;;  %9453 = vmatpush3.msk.msra.mxu0 %vm910_vm0, %v242_v27  ;;  %9411 = vmatprep.mubr.msk.f32.mxu0 %vm9575_vm1, %v12685_v58 }
  0xa5   : > { %v3479_v19 = vrot.slane %v3465_v55, %v9632_v10  ;;  %v4312_v49 = vrot.slane %v4290_v20, %v9632_v10  ;;  %v4565_v47 = vcombine.low %v4274_v40, %v4257_v38  ;;  %v4574_v51 = vrot.slane %v4564_v56, %v9632_v10  ;;  %9498 = vmatprep.subr.mxu0 %v12685_v58  ;;  %v9561_v56 = vld [vmem:[%s9620_s20 + $0x58] sm:$0xff] }
  0xa6   : > { %v4566_v15 = vcombine.low %v4271_v31, %v4273_v7  ;;  %v3158_v1 = vcombine.high %v3156_v60, %v3156_v60  ;;  %v10548_v26 = vrot.slane %v3156_v60, %v9632_v10  ;;  %v3189_v27 = vcombine.high %v10488_v63, %v10488_v63  ;;  %v10567_v7 = vld [vmem:[%s9620_s20 + $0xd8] sm:$0xff] }
  0xa7   : > { %v3480_v57 = vcombine.low %v3472_v30, %v3479_v19  ;;  %v4567_v8 = vcombine.low %v10533_v0, %v4312_v49  ;;  %v4581_v11 = vrot.slane %v4565_v47, %v9632_v10  ;;  %v3197_v40 = vrot.slane %v10544_v53, %v9632_v10 }
  0xa8   : > { %v4588_v6 = vrot.slane %v4566_v15, %v9632_v10  ;;  %v10557_v38 = vrot.slane %v3158_v1, %v9632_v10  ;;  %v3188_v55 = vcombine.high %v10548_v26, %v10548_v26  ;;  %v3481_v31 = vcombine.low %v3189_v27, %v10548_v26 }
  0xa9   : > { %9392 = vmatmul.mubr.msk.f32.gmra.mrb[24].mxu1 %vm227_vm2, %v3480_v57  ;;  %v4595_v30 = vrot.slane %v4567_v8, %v9632_v10  ;;  %v4596_v20 = vcombine.low %v4574_v51, %v4581_v11  ;;  %v206_v60 = vmax.f32 %v10021_v34, %v9561_v56  ;;  %v3205_v19 = vcombine.high %v3197_v40, %v3197_v40 }
  0xaa   : > { %9394 = vmatprep.mubr.msk.f32.mxu1 %vm9575_vm1, %v12685_v58  ;;  %v10574_v47 = vrot.slane %v3197_v40, %v9632_v10  ;;  %v3482_v15 = vcombine.low %v10557_v38, %v3188_v55  ;;  %v214_v1 = vmax.f32 %v10442_v43, %v10567_v7  ;;  %v3491_v8 = vrot.slane %v3481_v31, %v9632_v10 }
  0xab   : > { %v4597_v51 = vcombine.low %v4588_v6, %v4595_v30  ;;  %v4604_v57 = vrot.slane %v4596_v20, %v9632_v10  ;;  %v4275_v34 = vcombine.high %v10497_v54, %v10497_v54  ;;  %v10584_v11 = vrot.slane %v3205_v19, %v9632_v10 }
  0xac   : > { %v3498_v27 = vrot.slane %v3482_v15, %v9632_v10  ;;  %v222_v40 = vmax.f32 %v206_v60, %v214_v1  ;;  %v4330_v55 = vrot.slane %v10567_v7, %v9632_v10  ;;  %v9165_v30 = vcombine.high %v10533_v0, %v4312_v49  ;;  %v10603_v0 = vld [vmem:[%s9620_s20 + $0xa8] sm:$0xff] }
  0xad   : > { %v4611_v43 = vrot.slane %v4597_v51, %v9632_v10  ;;  %v4289_v6 = vrot.slane %v4275_v34, %v9632_v10  ;;  %v3190_v20 = vcombine.high %v10544_v53, %v10544_v53  ;;  %v3483_v54 = vcombine.low %v10574_v47, %v10584_v11 }
  0xae   : > { %v9154_v31 = vcombine.high %v10574_v47, %v10584_v11  ;;  %v3513_v56 = vcombine.low %v3491_v8, %v3498_v27  ;;  %231 = vst.msk [vmem:[%s9625_s23 + $0x18] sm:$0xff] %vm227_vm2, %v222_v40  ;;  %v4338_v60 = vcombine.high %v4330_v55, %v4330_v55  ;;  %v4346_v51 = vrot.slane %v4330_v55, %v9632_v10 }
  0xaf   : > { %v4612_v19 = vcombine.low %v4604_v57, %v4611_v43  ;;  %v4291_v15 = vcombine.high %v4289_v6, %v4289_v6  ;;  %v4305_v1 = vrot.slane %v4289_v6, %v9632_v10  ;;  %v3505_v49 = vrot.slane %v3483_v54, %v9632_v10 }
  0xb0   : > { %v3512_v34 = vrot.slane %v9154_v31, %v9632_v10  ;;  %v3521_v44 = vrot.slane %v3513_v56, %v9632_v10  ;;  %v10609_v8 = vrot.slane %v4338_v60, %v9632_v10  ;;  %v4368_v40 = vcombine.high %v4346_v51, %v4346_v51 }
  0xb1   : > { %9412 = vmatmul.mubr.msk.f32.gmra.mrb[16].mxu0 %vm227_vm2, %v4612_v19  ;;  %v4319_v57 = vrot.slane %v4291_v15, %v9632_v10  ;;  %v4321_v27 = vcombine.high %v4305_v1, %v4305_v1  ;;  %v4623_v55 = vrot.slane %v9165_v30, %v9632_v10  ;;  %v3204_v6 = vrot.slane %v3190_v20, %v9632_v10  ;;  %v9562_v15 = vld [vmem:[%s9620_s20 + $0x60] sm:$0xff] }
  0xb2   : > { %9414 = vmatprep.mubr.msk.f32.mxu0 %vm9575_vm1, %v12685_v58  ;;  %v3514_v43 = vcombine.low %v3505_v49, %v3512_v34  ;;  %v3238_v54 = vcombine.high %v10603_v0, %v10603_v0  ;;  %v3245_v31 = vrot.slane %v10603_v0, %v9632_v10  ;;  %v4616_v19 = vcombine.low %v10609_v8, %v4368_v40 }
  0xb3   : > { %v4614_v56 = vcombine.low %v4305_v1, %v4319_v57  ;;  %v4615_v60 = vcombine.low %v4321_v27, %v4346_v51  ;;  %v207_v35 = vmax.f32 %v10066_v45, %v9562_v15  ;;  %v3206_v5 = vcombine.high %v3204_v6, %v3204_v6 }
  0xb4   : > { %v3528_v30 = vrot.slane %v3514_v43, %v9632_v10  ;;  %v10626_v49 = vrot.slane %v3204_v6, %v9632_v10  ;;  %v3252_v20 = vrot.slane %v3238_v54, %v9632_v10  ;;  %v4644_v1 = vrot.slane %v4616_v19, %v9632_v10 }
  0xb5   : > { %v4630_v34 = vrot.slane %v4614_v56, %v9632_v10  ;;  %v4637_v13 = vrot.slane %v4615_v60, %v9632_v10  ;;  %v3253_v51 = vcombine.high %v3245_v31, %v3245_v31  ;;  %v10633_v27 = vrot.slane %v3206_v5, %v9632_v10  ;;  %v10649_v60 = vld [vmem:[%s9620_s20 + $0xe0] sm:$0xff] }
  0xb6   : > { %v3529_v57 = vcombine.low %v3521_v44, %v3528_v30  ;;  %v10637_v45 = vcombine.high %v10626_v49, %v10626_v49  ;;  %v10640_v40 = vrot.slane %v3245_v31, %v9632_v10  ;;  %v10643_v54 = vrot.slane %v3252_v20, %v9632_v10 }
  0xb7   : > { %v4645_v43 = vcombine.low %v4623_v55, %v4630_v34  ;;  %v4646_v6 = vcombine.low %v4637_v13, %v4644_v1  ;;  %v10646_v56 = vrot.slane %v3253_v51, %v9632_v10  ;;  %v3530_v44 = vcombine.low %v10626_v49, %v10633_v27 }
  0xb8   : > { %12709 = vst [vmem:[#allocation62_spill] sm:$0xff] %v10637_v45  ;;  %12710 = vst [vmem:[#allocation63_spill] sm:$0xff] %v10640_v40  ;;  %9395 = vmatmul.mubr.msk.f32.gmra.mrb[26].mxu1 %vm227_vm2, %v3529_v57  ;;  %v3283_v5 = vcombine.high %v10640_v40, %v10640_v40  ;;  %v3531_v55 = vcombine.low %v10637_v45, %v10640_v40  ;;  %v215_v13 = vmax.f32 %v10544_v53, %v10649_v60 }
  0xb9   : > { %12711 = vst [vmem:[#allocation64_spill] sm:$0xff] %v10643_v54  ;;  %12712 = vst [vmem:[#allocation65_spill] sm:$0xff] %v10646_v56  ;;  %v4653_v31 = vrot.slane %v4645_v43, %v9632_v10  ;;  %v4660_v19 = vrot.slane %v4646_v6, %v9632_v10  ;;  %9397 = vmatprep.mubr.msk.f32.mxu1 %vm9575_vm1, %v12685_v58  ;;  %v3285_v15 = vcombine.high %v10646_v56, %v10646_v56 }
  0xba   : > { %v4323_v30 = vcombine.high %v10567_v7, %v10567_v7  ;;  %v3532_v34 = vcombine.low %v10646_v56, %v3283_v5  ;;  %v3540_v1 = vrot.slane %v3530_v44, %v9632_v10  ;;  %v3547_v53 = vrot.slane %v3531_v55, %v9632_v10 }
  0xbb   : > { %v223_v51 = vmax.f32 %v207_v35, %v215_v13  ;;  %v4661_v57 = vcombine.low %v4653_v31, %v4660_v19  ;;  %v3533_v43 = vcombine.low %v3285_v15, %v10643_v54  ;;  %v4370_v39 = vcombine.high %v10609_v8, %v10609_v8  ;;  %v10684_v13 = vld [vmem:[%s9620_s20 + $0xb0] sm:$0xff] }
  0xbc   : > { %v4337_v6 = vrot.slane %v4323_v30, %v9632_v10  ;;  %v3554_v36 = vrot.slane %v3532_v34, %v9632_v10  ;;  %v3562_v40 = vcombine.low %v3540_v1, %v3547_v53  ;;  %v4378_v7 = vrot.slane %v10649_v60, %v9632_v10 }
  0xbd   : > { %232 = vst.msk [vmem:[%s9625_s23 + $0x20] sm:$0xff] %vm227_vm2, %v223_v51  ;;  %v3254_v5 = vcombine.high %v3252_v20, %v3252_v20  ;;  %9415 = vmatmul.mubr.msk.f32.gmra.mrb[18].mxu0 %vm227_vm2, %v4661_v57  ;;  %v3561_v35 = vrot.slane %v3533_v43, %v9632_v10  ;;  %v3284_v8 = vcombine.high %v10643_v54, %v10643_v54 }
  0xbe   : > { %v4339_v44 = vcombine.high %v4337_v6, %v4337_v6  ;;  %v4353_v55 = vrot.slane %v4337_v6, %v9632_v10  ;;  %9417 = vmatprep.mubr.msk.f32.mxu0 %vm9575_vm1, %v12685_v58  ;;  %v3570_v31 = vrot.slane %v3562_v40, %v9632_v10  ;;  %v4386_v19 = vcombine.high %v4378_v7, %v4378_v7 }
  0xbf   : > { %v4394_v20 = vrot.slane %v4378_v7, %v9632_v10  ;;  %v10693_v15 = vrot.slane %v3254_v5, %v9632_v10  ;;  %v3563_v30 = vcombine.low %v3554_v36, %v3561_v35  ;;  %v3286_v57 = vcombine.high %v10684_v13, %v10684_v13  ;;  %v9563_v5 = vld [vmem:[%s9620_s20 + $0x68] sm:$0xff] }
  0xc0   : > { %v4367_v34 = vrot.slane %v4339_v44, %v9632_v10  ;;  %v4369_v1 = vcombine.high %v4353_v55, %v4353_v55  ;;  %v4662_v53 = vcombine.low %v4370_v39, %v4353_v55  ;;  %v4408_v51 = vrot.slane %v4386_v19, %v9632_v10 }
  0xc1   : > { %v3293_v40 = vrot.slane %v10684_v13, %v9632_v10  ;;  %v3579_v43 = vcombine.low %v10693_v15, %v3284_v8  ;;  %v3577_v6 = vrot.slane %v3563_v30, %v9632_v10  ;;  %v208_v35 = vmax.f32 %v10159_v21, %v9563_v5  ;;  %v200_v30 = vld [vmem:[%s9620_s20 + $0xe8] sm:$0xff] }
  0xc2   : > { %v4663_v7 = vcombine.low %v4367_v34, %v4369_v1  ;;  %v4672_v36 = vrot.slane %v4662_v53, %v9632_v10  ;;  %v4664_v39 = vcombine.low %v4394_v20, %v4408_v51  ;;  %v9166_v44 = vcombine.high %v4394_v20, %v4408_v51 }
  0xc3   : > { %v3300_v55 = vrot.slane %v3286_v57, %v9632_v10  ;;  %v3301_v19 = vcombine.high %v3293_v40, %v3293_v40  ;;  %v3578_v54 = vcombine.low %v3570_v31, %v3577_v6  ;;  %v10709_v45 = vrot.slane %v3293_v40, %v9632_v10 }
  0xc4   : > { %v4679_v56 = vrot.slane %v4663_v7, %v9632_v10  ;;  %v3589_v8 = vrot.slane %v3579_v43, %v9632_v10  ;;  %v4686_v34 = vrot.slane %v4664_v39, %v9632_v10  ;;  %v4693_v1 = vrot.slane %v9166_v44, %v9632_v10 }
  0xc5   : > { %v3302_v53 = vcombine.high %v3300_v55, %v3300_v55  ;;  %v10716_v21 = vrot.slane %v3300_v55, %v9632_v10  ;;  %9398 = vmatmul.mubr.msk.f32.gmra.mrb[28].mxu1 %vm227_vm2, %v3578_v54  ;;  %v10720_v31 = vrot.slane %v3301_v19, %v9632_v10  ;;  %v216_v51 = vmax.f32 %v10603_v0, %v200_v30 }
  0xc6   : > { %v4694_v20 = vcombine.low %v4672_v36, %v4679_v56  ;;  %v4371_v57 = vcombine.high %v10649_v60, %v10649_v60  ;;  %v4695_v40 = vcombine.low %v4686_v34, %v4693_v1  ;;  %9400 = vmatprep.mubr.msk.f32.mxu1 %vm9575_vm1, %v12685_v58  ;;  %v4419_v6 = vcombine.high %v200_v30, %v200_v30 }
  0xc7   : > { %12713 = vst [vmem:[#allocation66_spill] sm:$0xff] %v10716_v21  ;;  %12714 = vst [vmem:[#allocation67_spill] sm:$0xff] %v10720_v31  ;;  %v10728_v43 = vrot.slane %v3302_v53, %v9632_v10  ;;  %v4426_v54 = vrot.slane %v200_v30, %v9632_v10  ;;  %v3580_v7 = vcombine.low %v10709_v45, %v10720_v31 }
  0xc8   : > { %v4702_v56 = vrot.slane %v4694_v20, %v9632_v10  ;;  %v9155_v0 = vcombine.high %v10709_v45, %v10720_v31  ;;  %v224_v60 = vmax.f32 %v208_v35, %v216_v51  ;;  %v4709_v36 = vrot.slane %v4695_v40, %v9632_v10 }
  0xc9   : > { %v3582_v5 = vcombine.low %v10716_v21, %v10728_v43  ;;  %v4385_v39 = vrot.slane %v4371_v57, %v9632_v10  ;;  %v4433_v44 = vrot.slane %v4419_v6, %v9632_v10  ;;  %v3596_v55 = vrot.slane %v3580_v7, %v9632_v10 }
  0xca   : > { %v3603_v19 = vrot.slane %v9155_v0, %v9632_v10  ;;  %233 = vst.msk [vmem:[%s9625_s23 + $0x28] sm:$0xff] %vm227_vm2, %v224_v60  ;;  %v4434_v30 = vcombine.high %v4426_v54, %v4426_v54  ;;  %v4442_v34 = vrot.slane %v4426_v54, %v9632_v10  ;;  %v4710_v1 = vcombine.low %v4702_v56, %v4709_v36 }
  0xcb   : > { %v3610_v35 = vrot.slane %v3582_v5, %v9632_v10  ;;  %v4387_v53 = vcombine.high %v4385_v39, %v4385_v39  ;;  %v4401_v20 = vrot.slane %v4385_v39, %v9632_v10  ;;  %v3611_v51 = vcombine.low %v3589_v8, %v3596_v55  ;;  %v9564_v5 = vld [vmem:[%s9620_s20 + $0x70] sm:$0xff] }
  0xcc   : > { %v4449_v57 = vrot.slane %v4433_v44, %v9632_v10  ;;  %v4456_v40 = vrot.slane %v4434_v30, %v9632_v10  ;;  %v4464_v6 = vcombine.high %v4442_v34, %v4442_v34  ;;  %9418 = vmatmul.mubr.msk.f32.gmra.mrb[20].mxu0 %vm227_vm2, %v4710_v1  ;;  %v10754_v56 = vcombine.high %v10716_v21, %v10716_v21 }
  0xcd   : > { %v3612_v7 = vcombine.low %v3603_v19, %v3610_v35  ;;  %v4415_v0 = vrot.slane %v4387_v53, %v9632_v10  ;;  %v4417_v54 = vcombine.high %v4401_v20, %v4401_v20  ;;  %9420 = vmatprep.mubr.msk.f32.mxu0 %vm9575_vm1, %v12685_v58  ;;  %v3619_v8 = vrot.slane %v3611_v51, %v9632_v10  ;;  %v201_v35 = vld [vmem:[%s9620_s20 + $0xf0] sm:$0xff] }
  0xce   : > { %v4466_v60 = vcombine.high %v4456_v40, %v4456_v40  ;;  %v4713_v36 = vcombine.low %v4456_v40, %v4464_v6  ;;  %v209_v39 = vmax.f32 %v10175_v9, %v9564_v5  ;;  %v3634_v1 = vrot.slane %v10754_v56, %v9632_v10 }
  0xcf   : > { %v3626_v55 = vrot.slane %v3612_v7, %v9632_v10  ;;  %v4711_v19 = vcombine.low %v4401_v20, %v4415_v0  ;;  %v4712_v30 = vcombine.low %v4417_v54, %v4442_v34  ;;  %v5608_v31 = vcombine.low %v10728_v43, %v10754_v56 }
  0xd0   : > { %v4714_v53 = vcombine.low %v4466_v60, %v4449_v57  ;;  %v4735_v21 = vrot.slane %v4713_v36, %v9632_v10  ;;  %v217_v51 = vmax.f32 %v10684_v13, %v201_v35  ;;  %v3641_v34 = vrot.slane %v3634_v1, %v9632_v10 }
  0xd1   : > { %v3627_v40 = vcombine.low %v3619_v8, %v3626_v55  ;;  %v4721_v9 = vrot.slane %v4711_v19, %v9632_v10  ;;  %v4728_v6 = vrot.slane %v4712_v30, %v9632_v10  ;;  %v4435_v0 = vcombine.high %v4433_v44, %v4433_v44 }
  0xd2   : > { %v4742_v20 = vrot.slane %v4714_v53, %v9632_v10  ;;  %v225_v7 = vmax.f32 %v209_v39, %v217_v51  ;;  %v4465_v54 = vcombine.high %v4449_v57, %v4449_v57  ;;  %v4467_v36 = vcombine.high %v201_v35, %v201_v35 }
  0xd3   : > { %9401 = vmatmul.mubr.msk.f32.gmra.mrb[30].mxu1 %vm227_vm2, %v3627_v40  ;;  %v4743_v60 = vcombine.low %v4721_v9, %v4728_v6  ;;  %v4474_v5 = vrot.slane %v201_v35, %v9632_v10  ;;  %v3043_v13 = vcombine.high %v10339_v62, %v10339_v62  ;;  %v4463_v55 = vrot.slane %v4435_v0, %v9632_v10 }
  0xd4   : > { %v4744_v8 = vcombine.low %v4735_v21, %v4742_v20  ;;  %9403 = vmatprep.mubr.msk.f32.mxu1 %vm9575_vm1, %v12685_v58  ;;  %234 = vst.msk [vmem:[%s9625_s23 + $0x30] sm:$0xff] %vm227_vm2, %v225_v7  ;;  %v3045_v44 = vcombine.high %v10352_v29, %v10352_v29  ;;  %v5353_v57 = vcombine.high %v10361_v24, %v10361_v24 }
  0xd5   : > { %v4751_v39 = vrot.slane %v4743_v60, %v9632_v10  ;;  %v4481_v19 = vrot.slane %v4467_v36, %v9632_v10  ;;  %v4482_v30 = vcombine.high %v4474_v5, %v4474_v5  ;;  %v4490_v62 = vrot.slane %v4474_v5, %v9632_v10 }
  0xd6   : > { %v4758_v21 = vrot.slane %v4744_v8, %v9632_v10  ;;  %v4760_v1 = vcombine.low %v4463_v55, %v4465_v54  ;;  %v5360_v35 = vcombine.low %v10352_v29, %v3043_v13  ;;  %v5361_v53 = vcombine.low %v3045_v44, %v10349_v12 }
  0xd7   : > { %9404 = vmatmul.mubr.msk.f32.gmra.mrb[32].mxu1 %vm227_vm2, %v3641_v34  ;;  %v4483_v51 = vcombine.high %v4481_v19, %v4481_v19  ;;  %v4497_v40 = vrot.slane %v4481_v19, %v9632_v10  ;;  %v4504_v9 = vrot.slane %v4482_v30, %v9632_v10  ;;  %v5362_v6 = vcombine.low %v10361_v24, %v10370_v18 }
  0xd8   : > { %v4759_v20 = vcombine.low %v4751_v39, %v4758_v21  ;;  %v4770_v7 = vrot.slane %v4760_v1, %v9632_v10  ;;  %9431 = vmatprep.mubr.msk.f32.mxu1 %vm9575_vm1, %v12685_v58  ;;  %v5363_v29 = vcombine.low %v5353_v57, %v10397_v52  ;;  %v5370_v12 = vrot.slane %v5360_v35, %v9632_v10 }
  0xd9   : > { %v4511_v34 = vrot.slane %v4483_v51, %v9632_v10  ;;  %v4761_v0 = vcombine.low %v4490_v62, %v4504_v9  ;;  %v9167_v54 = vcombine.high %v4490_v62, %v4504_v9  ;;  %v4513_v60 = vcombine.high %v4497_v40, %v4497_v40 }
  0xda   : > { %9421 = vmatmul.mubr.msk.f32.gmra.mrb[22].mxu0 %vm227_vm2, %v4759_v20  ;;  %v5377_v36 = vrot.slane %v5361_v53, %v9632_v10  ;;  %v5384_v24 = vrot.slane %v5362_v6, %v9632_v10  ;;  %v5391_v18 = vrot.slane %v5363_v29, %v9632_v10  ;;  %v3139_v5 = vcombine.high %v10403_v37, %v10403_v37 }
  0xdb   : > { %9423 = vmatprep.mubr.msk.f32.mxu0 %vm9575_vm1, %v12685_v58  ;;  %v4763_v13 = vcombine.low %v4497_v40, %v4511_v34  ;;  %v4777_v8 = vrot.slane %v4761_v0, %v9632_v10  ;;  %v4784_v55 = vrot.slane %v9167_v54, %v9632_v10  ;;  %v4815_v44 = vrot.slane %v4513_v60, %v9632_v10 }
  0xdc   : > { %v5392_v57 = vcombine.low %v5370_v12, %v5377_v36  ;;  %v5393_v39 = vcombine.low %v5384_v24, %v5391_v18  ;;  %v9176_v19 = vcombine.high %v10373_v22, %v10397_v52  ;;  %v5410_v30 = vcombine.low %v10394_v23, %v10410_v61 }
  0xdd   : > { %v4791_v37 = vrot.slane %v4763_v13, %v9632_v10  ;;  %v4792_v62 = vcombine.low %v4770_v7, %v4777_v8  ;;  %v4822_v21 = vrot.slane %v4815_v44, %v9632_v10  ;;  %v9177_v1 = vcombine.high %v10394_v23, %v10410_v61  ;;  %v243_v23 = vld [vmem:[%s12547_s1 + $0x1c] sm:$0xf] }
  0xde   : > { %v5400_v35 = vrot.slane %v5392_v57, %v9632_v10  ;;  %v5407_v53 = vrot.slane %v5393_v39, %v9632_v10  ;;  %v5412_v51 = vcombine.low %v10406_v59, %v3139_v5  ;;  %v5419_v40 = vrot.slane %v9176_v19, %v9632_v10 }
  0xdf   : > { %v4793_v52 = vcombine.low %v4784_v55, %v4791_v37  ;;  %v4800_v22 = vrot.slane %v4792_v62, %v9632_v10  ;;  %v5426_v9 = vrot.slane %v5410_v30, %v9632_v10  ;;  %v5433_v6 = vrot.slane %v9177_v1, %v9632_v10  ;;  %v244_v1 = vld [vmem:[%s12547_s1 + $0x20] sm:$0xf] }
  0xe0   : > { %v5408_v20 = vcombine.low %v5400_v35, %v5407_v53  ;;  %v5440_v61 = vrot.slane %v5412_v51, %v9632_v10  ;;  %v6279_v7 = vcombine.low %v10026_v48, %v10029_v25  ;;  %v3141_v29 = vcombine.high %v10406_v59, %v10406_v59 }
  0xe1   : > { %v4807_v12 = vrot.slane %v4793_v52, %v9632_v10  ;;  %v5441_v34 = vcombine.low %v5419_v40, %v5426_v9  ;;  %v5355_v0 = vcombine.high %v10476_v14, %v10476_v14  ;;  %v5459_v54 = vcombine.low %v10476_v14, %v10482_v16 }
  0xe2   : > { %9432 = vmatmul.mubr.msk.f32.vlgmr.msra.gmra.mrb[34].mxu1 %vm227_vm2, %v5408_v20  ;;  %v5442_v60 = vcombine.low %v5433_v6, %v5440_v61  ;;  %v5458_v36 = vcombine.low %v3141_v29, %v10470_v32  ;;  %v9178_v48 = vcombine.high %v10485_v3, %v10488_v63  ;;  %v6280_v25 = vcombine.low %v10046_v4, %v10061_v28  ;;  %v12715_v6 = vld [vmem:[#allocation62_spill] sm:$0xff]  ;;  %v12717_v20 = vld [vmem:[#allocation63_spill] sm:$0xff] }
  0xe3   : > { %v4808_v59 = vcombine.low %v4800_v22, %v4807_v12  ;;  %9476 = vmatpush3.msk.msra.mxu1 %vm910_vm0, %v243_v23  ;;  %9434 = vmatprep.mubr.msk.f32.mxu1 %vm9575_vm1, %v12685_v58  ;;  %v5449_v24 = vrot.slane %v5441_v34, %v9632_v10  ;;  %v5460_v14 = vcombine.low %v5355_v0, %v10488_v63  ;;  %v12718_v29 = vld [vmem:[#allocation39_spill] sm:$0xff] }
  0xe4   : > { %v5456_v16 = vrot.slane %v5442_v60, %v9632_v10  ;;  %v5468_v32 = vrot.slane %v5458_v36, %v9632_v10  ;;  %v5475_v18 = vrot.slane %v5459_v54, %v9632_v10  ;;  %v5489_v3 = vrot.slane %v9178_v48, %v9632_v10  ;;  %v12720_v60 = vld [vmem:[#allocation45_spill] sm:$0xff]  ;;  %v12721_v36 = vld [vmem:[#allocation44_spill] sm:$0xff] }
  0xe5   : > { %9424 = vmatmul.mubr.msk.f32.gmra.mrb[24].mxu0 %vm227_vm2, %v4808_v59  ;;  %v5482_v4 = vrot.slane %v5460_v14, %v9632_v10  ;;  %v6287_v28 = vrot.slane %v6280_v25, %v9632_v10  ;;  %v6288_v5 = vcombine.low %v10008_v33, %v10087_v41  ;;  %v3235_v63 = vcombine.high %v10574_v47, %v10574_v47  ;;  %v12722_v14 = vld [vmem:[#allocation47_spill] sm:$0xff] }
  0xe6   : > { %9426 = vmatprep.mubr.msk.f32.mxu0 %vm9575_vm1, %v12685_v58  ;;  %v5457_v13 = vcombine.low %v5449_v24, %v5456_v16  ;;  %v5490_v8 = vcombine.low %v5468_v32, %v5475_v18  ;;  %v3237_v55 = vcombine.high %v10584_v11, %v10584_v11  ;;  %v5507_v44 = vcombine.low %v10548_v26, %v10557_v38  ;;  %v12723_v16 = vld [vmem:[#allocation40_spill] sm:$0xff] }
  0xe7   : > { %v5491_v57 = vcombine.low %v5482_v4, %v5489_v3  ;;  %v6289_v39 = vcombine.low %v10104_v50, %v6287_v28  ;;  %v6296_v19 = vrot.slane %v6288_v5, %v9632_v10  ;;  %v9179_v41 = vcombine.high %v10548_v26, %v10557_v38  ;;  %v12724_v28 = vld [vmem:[#allocation67_spill] sm:$0xff] }
  0xe8   : > { %9435 = vmatmul.mubr.msk.f32.gmra.mrb[36].mxu1 %vm227_vm2, %v5457_v13  ;;  %v5498_v33 = vrot.slane %v5490_v8, %v9632_v10  ;;  %v5509_v47 = vcombine.low %v10584_v11, %v3235_v63  ;;  %v5510_v30 = vcombine.low %v3237_v55, %v10626_v49  ;;  %v5517_v37 = vrot.slane %v5507_v44, %v9632_v10  ;;  %v12725_v44 = vld [vmem:[#allocation49_spill] sm:$0xff] }
  0xe9   : > { %9427 = vmatmul.mubr.msk.f32.gmra.mrb[26].mxu0 %vm227_vm2, %v4822_v21  ;;  %9437 = vmatprep.mubr.msk.f32.mxu1 %vm9575_vm1, %v12685_v58  ;;  %v5505_v50 = vrot.slane %v5491_v57, %v9632_v10  ;;  %v6303_v62 = vrot.slane %v6289_v39, %v9632_v10  ;;  %v5524_v26 = vrot.slane %v9179_v41, %v9632_v10  ;;  %v12726_v41 = vld [vmem:[#allocation66_spill] sm:$0xff] }
  0xea   : > { %9454 = vmatprep.mubr.msk.f32.mxu0 %vm9575_vm1, %v12685_v58  ;;  %v5531_v38 = vrot.slane %v5509_v47, %v9632_v10  ;;  %v5538_v11 = vrot.slane %v5510_v30, %v9632_v10  ;;  %v6305_v49 = vcombine.low %v10114_v2, %v10120_v17  ;;  %v6313_v21 = vcombine.low %v10090_v46, %v10140_v42  ;;  %v12716_v17 = vld [vmem:[#allocation65_spill] sm:$0xff]  ;;  %v12727_v30 = vld [vmem:[#allocation51_spill] sm:$0xff] }
  0xeb   : > { %v5506_v35 = vcombine.low %v5498_v33, %v5505_v50  ;;  %v6304_v53 = vcombine.low %v6296_v19, %v6303_v62  ;;  %v5539_v51 = vcombine.low %v5517_v37, %v5524_v26  ;;  %v5357_v40 = vcombine.high %v10633_v27, %v10633_v27  ;;  %v12728_v37 = vld [vmem:[#allocation56_spill] sm:$0xff]  ;;  %v10952_v62 = vld [vmem:[%s9620_s20 + $0x38] sm:$0xff] }
  0xec   : > { %v5540_v52 = vcombine.low %v5531_v38, %v5538_v11  ;;  %v6312_v22 = vrot.slane %v6305_v49, %v9632_v10  ;;  %v6321_v9 = vrot.slane %v6313_v21, %v9632_v10  ;;  %v5556_v2 = vcombine.low %v10633_v27, %v12715_v6  ;;  %v12729_v11 = vld [vmem:[#allocation58_spill] sm:$0xff]  ;;  %v12730_v49 = vld [vmem:[#allocation57_spill] sm:$0xff] }
  0xed   : > { %9455 = vmatmul.mubr.msk.f32.vlgmr.msra.gmra.mrb[28].mxu0 %vm227_vm2, %v6279_v7  ;;  %9438 = vmatmul.mubr.msk.f32.gmra.mrb[38].mxu1 %vm227_vm2, %v5506_v35  ;;  %v5547_v46 = vrot.slane %v5539_v51, %v9632_v10  ;;  %v5557_v42 = vcombine.low %v5357_v40, %v12716_v17  ;;  %v9180_v23 = vcombine.high %v12717_v20, %v12716_v17  ;;  %v12719_v7 = vld [vmem:[#allocation64_spill] sm:$0xff]  ;;  %v12733_v20 = vld [vmem:[#allocation2_spill] sm:$0xff] }
  0xee   : > { %9499 = vmatpush3.msk.msra.mxu0 %vm910_vm0, %v244_v1  ;;  %9457 = vmatprep.mubr.msk.f32.mxu0 %vm9575_vm1, %v12685_v58  ;;  %v5554_v61 = vrot.slane %v5540_v52, %v9632_v10  ;;  %v6314_v27 = vcombine.low %v6312_v22, %v12718_v29  ;;  %v5559_v12 = vcombine.low %v12719_v7, %v10693_v15 }
  0xef   : > { %9440 = vmatprep.mubr.msk.f32.mxu1 %vm9575_vm1, %v12685_v58  ;;  %v5566_v34 = vrot.slane %v5556_v2, %v9632_v10  ;;  %v5573_v0 = vrot.slane %v5557_v42, %v9632_v10  ;;  %v5580_v54 = vrot.slane %v9180_v23, %v9632_v10  ;;  %v6330_v48 = vcombine.low %v12721_v36, %v12720_v60  ;;  %v12732_v42 = vld [vmem:[#allocation9_spill] sm:$0xff] }
  0xf0   : > { %v5555_v25 = vcombine.low %v5547_v46, %v5554_v61  ;;  %v6328_v59 = vrot.slane %v6314_v27, %v9632_v10  ;;  %v5587_v24 = vrot.slane %v5559_v12, %v9632_v10  ;;  %v6338_v32 = vcombine.low %v12723_v16, %v12722_v14  ;;  %v12734_v16 = vld [vmem:[#allocation15_spill] sm:$0xff] }
  0xf1   : > { %9458 = vmatmul.mubr.msk.f32.gmra.mrb[30].mxu0 %vm227_vm2, %v6304_v53  ;;  %v5588_v18 = vcombine.low %v5566_v34, %v5573_v0  ;;  %v6337_v3 = vrot.slane %v6330_v48, %v9632_v10  ;;  %v3331_v4 = vcombine.high %v10709_v45, %v10709_v45  ;;  %v3333_v5 = vcombine.high %v12724_v28, %v12724_v28 }
  0xf2   : > { %9460 = vmatprep.mubr.msk.f32.mxu0 %vm9575_vm1, %v12685_v58  ;;  %9441 = vmatmul.mubr.msk.f32.gmra.mrb[40].mxu1 %vm227_vm2, %v5555_v25  ;;  %v6329_v63 = vcombine.low %v6321_v9, %v6328_v59  ;;  %v5589_v13 = vcombine.low %v5580_v54, %v5587_v24  ;;  %v6346_v8 = vrot.slane %v6338_v32, %v9632_v10  ;;  %v12731_v9 = vld [vmem:[#allocation50_spill] sm:$0xff]  ;;  %v12735_v32 = vld [vmem:[#allocation11_spill] sm:$0xff] }
  0xf3   : > { %9443 = vmatprep.mubr.msk.f32.mxu1 %vm9575_vm1, %v12685_v58  ;;  %v5596_v55 = vrot.slane %v5588_v18, %v9632_v10  ;;  %v6339_v45 = vcombine.low %v6337_v3, %v12725_v44  ;;  %v9181_v57 = vcombine.high %v12719_v7, %v10693_v15  ;;  %v5606_v39 = vcombine.low %v12724_v28, %v3331_v4  ;;  %v12736_v28 = vld [vmem:[#allocation10_spill] sm:$0xff] }
  0xf4   : > { %v5603_v19 = vrot.slane %v5589_v13, %v9632_v10  ;;  %v5607_v33 = vcombine.low %v3333_v5, %v12726_v41  ;;  %v5636_v47 = vrot.slane %v5608_v31, %v9632_v10  ;;  %v6355_v50 = vcombine.low %v12728_v37, %v12727_v30 }
  0xf5   : > { %9461 = vmatmul.mubr.msk.f32.gmra.mrb[32].mxu0 %vm227_vm2, %v6329_v63  ;;  %v6353_v15 = vrot.slane %v6339_v45, %v9632_v10  ;;  %v5615_v26 = vrot.slane %v9181_v57, %v9632_v10  ;;  %v5622_v38 = vrot.slane %v5606_v39, %v9632_v10  ;;  %v6364_v21 = vcombine.low %v12730_v49, %v12729_v11  ;;  %v12742_v11 = vld [vmem:[#allocation23_spill] sm:$0xff] }
  0xf6   : > { %9463 = vmatprep.mubr.msk.f32.mxu0 %vm9575_vm1, %v12685_v58  ;;  %v5604_v31 = vcombine.low %v5596_v55, %v5603_v19  ;;  %v5629_v56 = vrot.slane %v5607_v33, %v9632_v10  ;;  %v6362_v1 = vrot.slane %v6355_v50, %v9632_v10  ;;  %v5359_v35 = vcombine.high %v10728_v43, %v10728_v43  ;;  %v12737_v19 = vld [vmem:[#allocation13_spill] sm:$0xff]  ;;  %v12739_v50 = vld [vmem:[#allocation22_spill] sm:$0xff] }
  0xf7   : > { %v6354_v53 = vcombine.low %v6346_v8, %v6353_v15  ;;  %v5637_v51 = vcombine.low %v5615_v26, %v5622_v38  ;;  %v6378_v40 = vrot.slane %v6364_v21, %v9632_v10  ;;  %v6199_v52 = vcombine.high %v10952_v62, %v10952_v62  ;;  %v12740_v15 = vld [vmem:[#allocation21_spill] sm:$0xff]  ;;  %v12741_v38 = vld [vmem:[#allocation24_spill] sm:$0xff] }
  0xf8   : > { %9444 = vmatmul.mubr.msk.f32.gmra.mrb[42].mxu1 %vm227_vm2, %v5604_v31  ;;  %v5638_v22 = vcombine.low %v5629_v56, %v5636_v47  ;;  %v6363_v6 = vcombine.low %v12731_v9, %v6362_v1  ;;  %v5660_v2 = vrot.slane %v5359_v35, %v9632_v10  ;;  %v6206_v46 = vrot.slane %v10952_v62, %v9632_v10  ;;  %v12738_v47 = vld [vmem:[#allocation59_spill] sm:$0xff] }
  0xf9   : > { %9464 = vmatmul.mubr.msk.f32.gmra.mrb[34].mxu0 %vm227_vm2, %v6354_v53  ;;  %9446 = vmatprep.mubr.msk.f32.mxu1 %vm9575_vm1, %v12685_v58  ;;  %v5645_v43 = vrot.slane %v5637_v51, %v9632_v10  ;;  %v6213_v17 = vrot.slane %v6199_v52, %v9632_v10  ;;  %v7014_v23 = vcombine.low %v12733_v20, %v12732_v42  ;;  %v12743_v31 = vld [vmem:[#allocation19_spill] sm:$0xff] }
  0xfa   : > { %9466 = vmatprep.mubr.msk.f32.mxu0 %vm9575_vm1, %v12685_v58  ;;  %v5652_v61 = vrot.slane %v5638_v22, %v9632_v10  ;;  %v6371_v29 = vrot.slane %v6363_v6, %v9632_v10  ;;  %v5667_v27 = vrot.slane %v5660_v2, %v9632_v10  ;;  %v6214_v7 = vcombine.high %v6206_v46, %v6206_v46  ;;  %v12744_v35 = vld [vmem:[#allocation27_spill] sm:$0xff] }
  0xfb   : > { %v6215_v12 = vcombine.high %v6213_v17, %v6213_v17  ;;  %v10987_v34 = vrot.slane %v6206_v46, %v9632_v10  ;;  %v10990_v0 = vrot.slane %v6213_v17, %v9632_v10  ;;  %v9199_v54 = vcombine.high %v12733_v20, %v12732_v42  ;;  %v12745_v46 = vld [vmem:[#allocation28_spill] sm:$0xff]  ;;  %v12747_v20 = vld [vmem:[#allocation29_spill] sm:$0xff] }
  0xfc   : > { %v5653_v60 = vcombine.low %v5645_v43, %v5652_v61  ;;  %v6379_v36 = vcombine.low %v6371_v29, %v6378_v40  ;;  %v10995_v48 = vrot.slane %v6214_v7, %v9632_v10  ;;  %v7024_v25 = vrot.slane %v7014_v23, %v9632_v10  ;;  %v12746_v43 = vld [vmem:[#allocation26_spill] sm:$0xff]  ;;  %v12750_v7 = vld [vmem:[#allocation31_spill] sm:$0xff] }
  0xfd   : > { %v10999_v59 = vrot.slane %v6215_v12, %v9632_v10  ;;  %v11003_v24 = vcombine.high %v10990_v0, %v10990_v0  ;;  %v7031_v14 = vrot.slane %v9199_v54, %v9632_v10  ;;  %v7047_v18 = vcombine.low %v12735_v32, %v12734_v16  ;;  %v12748_v61 = vld [vmem:[#allocation30_spill] sm:$0xff] }
  0xfe   : > { %9447 = vmatmul.mubr.msk.f32.gmra.mrb[44].mxu1 %vm227_vm2, %v5653_v60  ;;  %9467 = vmatmul.mubr.msk.f32.gmra.mrb[36].mxu0 %vm227_vm2, %v6379_v36  ;;  %v6380_v3 = vcombine.low %v10987_v34, %v10995_v48  ;;  %v9190_v4 = vcombine.high %v10987_v34, %v10995_v48  ;;  %v393_v5 = vcombine.high %v12736_v28, %v12736_v28 }
  0xff   : > { %9449 = vmatprep.mubr.msk.f32.mxu1 %vm9575_vm1, %v12685_v58  ;;  %9469 = vmatprep.mubr.msk.f32.mxu0 %vm9575_vm1, %v12685_v58  ;;  %v6382_v63 = vcombine.low %v10990_v0, %v10999_v59  ;;  %v6427_v13 = vrot.slane %v11003_v24, %v9632_v10  ;;  %v7046_v44 = vcombine.low %v7024_v25, %v7031_v14 }
 0x100   : > { %v6389_v8 = vrot.slane %v6380_v3, %v9632_v10  ;;  %v6396_v55 = vrot.slane %v9190_v4, %v9632_v10  ;;  %v7061_v45 = vrot.slane %v7047_v18, %v9632_v10  ;;  %v395_v41 = vcombine.high %v12737_v19, %v12737_v19 }
 0x101   : > { %v6403_v57 = vrot.slane %v6382_v63, %v9632_v10  ;;  %v6434_v39 = vrot.slane %v6427_v13, %v9632_v10  ;;  %v7063_v33 = vcombine.low %v12737_v19, %v393_v5  ;;  %v7054_v37 = vrot.slane %v7046_v44, %v9632_v10  ;;  %v11068_v3 = vpop.f32.mrb[0].mxu1  ;;  %v12751_v63 = vld [vmem:[#allocation6_spill] sm:$0xff]  ;;  %v12752_v13 = vld [vmem:[#allocation5_spill] sm:$0xff]  ;;  %v12754_v19 = vld [vmem:[#allocation8_spill] sm:$0xff] }
 0x102   : > { %9450 = vmatmul.mubr.msk.f32.gmra.mrb[46].mxu1 %vm227_vm2, %v5667_v27  ;;  %v6404_v30 = vcombine.low %v12738_v47, %v6389_v8  ;;  %v7065_v26 = vcombine.low %v12740_v15, %v12739_v50  ;;  %v7066_v49 = vcombine.low %v12742_v11, %v12741_v38  ;;  %v7064_v56 = vcombine.low %v395_v41, %v12743_v31  ;;  %v12749_v27 = vld [vmem:[#allocation32_spill] sm:$0xff]  ;;  %v12756_v50 = vld [vmem:[#allocation3_spill] sm:$0xff] }
 0x103   : > { %v6405_v21 = vcombine.low %v6396_v55, %v6403_v57  ;;  %9477 = vmatprep.mubr.msk.f32.mxu1 %vm9575_vm1, %v12685_v58  ;;  %v7073_v1 = vrot.slane %v7063_v33, %v9632_v10  ;;  %v489_v53 = vcombine.high %v12744_v35, %v12744_v35  ;;  %v7062_v40 = vcombine.low %v7054_v37, %v7061_v45  ;;  %v9330_v55 = vpop.f32.mrb[1].mxu1  ;;  %v12753_v45 = vld [vmem:[#allocation34_spill] sm:$0xff]  ;;  %v12755_v41 = vld [vmem:[#allocation4_spill] sm:$0xff] }
 0x104   : > { %v6412_v51 = vrot.slane %v6404_v30, %v9632_v10  ;;  %v7087_v52 = vrot.slane %v7065_v26, %v9632_v10  ;;  %v7094_v22 = vrot.slane %v7066_v49, %v9632_v10  ;;  %v7080_v6 = vrot.slane %v7064_v56, %v9632_v10  ;;  %v12757_v56 = vld [vmem:[#allocation35_spill] sm:$0xff] }
 0x105   : > { %v6419_v9 = vrot.slane %v6405_v21, %v9632_v10  ;;  %v9200_v2 = vcombine.high %v12742_v11, %v12741_v38  ;;  %v7113_v17 = vcombine.low %v12746_v43, %v12745_v46  ;;  %v7114_v23 = vcombine.low %v12747_v20, %v12744_v35  ;;  %v12758_v35 = vld [vmem:[#allocation16_spill] sm:$0xff] }
 0x106   : > { %9478 = vmatmul.mubr.msk.f32.vlgmr.msra.gmra.mrb[48].mxu1 %vm227_vm2, %v7062_v40  ;;  %v7096_v42 = vcombine.low %v7087_v52, %v7094_v22  ;;  %v7115_v29 = vcombine.low %v12748_v61, %v489_v53  ;;  %v9211_v12 = vcombine.high %v12750_v7, %v12749_v27  ;;  %v7095_v60 = vcombine.low %v7073_v1, %v7080_v6  ;;  %v12759_v40 = vld [vmem:[#allocation38_spill] sm:$0xff]  ;;  %v12762_v43 = vld [vmem:[#allocation12_spill] sm:$0xff] }
 0x107   : > { %v6420_v54 = vcombine.low %v6412_v51, %v6419_v9  ;;  %9480 = vmatprep.mubr.msk.f32.mxu1 %vm9575_vm1, %v12685_v58  ;;  %v7122_v36 = vrot.slane %v9200_v2, %v9632_v10  ;;  %v7129_v25 = vrot.slane %v7113_v17, %v9632_v10  ;;  %v7136_v16 = vrot.slane %v7114_v23, %v9632_v10  ;;  %v12760_v9 = vld [vmem:[#allocation37_spill] sm:$0xff]  ;;  %v12761_v2 = vld [vmem:[#allocation18_spill] sm:$0xff]  ;;  %v12763_v17 = vld [vmem:[#allocation7_spill] sm:$0xff] }
 0x108   : > { %v7110_v14 = vrot.slane %v7096_v42, %v9632_v10  ;;  %v7143_v32 = vrot.slane %v7115_v29, %v9632_v10  ;;  %v7877_v18 = vrot.slane %v9211_v12, %v9632_v10  ;;  %v7103_v4 = vrot.slane %v7095_v60, %v9632_v10  ;;  %v12764_v23 = vld [vmem:[#allocation14_spill] sm:$0xff]  ;;  %v12766_v7 = vld [vmem:[#allocation36_spill] sm:$0xff] }
 0x109   : > { %9470 = vmatmul.mubr.msk.f32.gmra.mrb[38].mxu0 %vm227_vm2, %v6420_v54  ;;  %v7144_v28 = vcombine.low %v7122_v36, %v7129_v25  ;;  %v491_v5 = vcombine.high %v12748_v61, %v12748_v61  ;;  %v7162_v8 = vcombine.low %v12752_v13, %v12751_v63  ;;  %v7163_v33 = vcombine.low %v12755_v41, %v12754_v19  ;;  %v12765_v27 = vld [vmem:[#allocation42_spill] sm:$0xff]  ;;  %v12767_v54 = vld [vmem:[#allocation33_spill] sm:$0xff] }
 0x10a   : > { %9472 = vmatprep.mubr.msk.f32.mxu0 %vm9575_vm1, %v12685_v58  ;;  %v7145_v44 = vcombine.low %v7136_v16, %v7143_v32  ;;  %v7878_v57 = vcombine.low %v7877_v18, %v12753_v45  ;;  %v9201_v47 = vcombine.high %v12755_v41, %v12754_v19  ;;  %v7111_v30 = vcombine.low %v7103_v4, %v7110_v14  ;;  %v12768_v25 = vld [vmem:[#allocation17_spill] sm:$0xff] }
 0x10b   : > { %v7152_v37 = vrot.slane %v7144_v28, %v9632_v10  ;;  %v7161_v15 = vcombine.low %v491_v5, %v12756_v50  ;;  %v7178_v26 = vrot.slane %v7162_v8, %v9632_v10  ;;  %v7185_v49 = vrot.slane %v7163_v33, %v9632_v10  ;;  %v186_v16 = vld [vmem:[%s9620_s20 + $0x78] sm:$0xff] }
 0x10c   : > { %v7159_v38 = vrot.slane %v7145_v44, %v9632_v10  ;;  %v7885_v11 = vrot.slane %v7878_v57, %v9632_v10  ;;  %v7192_v21 = vrot.slane %v9201_v47, %v9632_v10  ;;  %9481 = vmatmul.mubr.msk.f32.gmra.mrb[50].mxu1 %vm227_vm2, %v7111_v30  ;;  %v2149_v1 = vcombine.high %v12757_v56, %v12757_v56  ;;  %v194_v32 = vld [vmem:[%s9620_s20 + $0xb8] sm:$0xff]  ;;  %v12770_v30 = vld [vmem:[#allocation48_spill] sm:$0xff] }
 0x10d   : > { %9473 = vmatmul.mubr.msk.f32.gmra.mrb[40].mxu0 %vm227_vm2, %v6434_v39  ;;  %v7171_v31 = vrot.slane %v7161_v15, %v9632_v10  ;;  %v585_v53 = vcombine.high %v12758_v35, %v12758_v35  ;;  %9483 = vmatprep.mubr.msk.f32.mxu1 %vm9575_vm1, %v12685_v58  ;;  %v587_v46 = vcombine.high %v12761_v2, %v12761_v2  ;;  %v202_v18 = vld [vmem:[%s9620_s20 + $0xf8] sm:$0xff] }
 0x10e   : > { %9500 = vmatprep.mubr.msk.f32.mxu0 %vm9575_vm1, %v12685_v58  ;;  %v7160_v51 = vcombine.low %v7152_v37, %v7159_v38  ;;  %v7886_v39 = vcombine.low %v12759_v40, %v7885_v11  ;;  %v7194_v52 = vcombine.low %v7185_v49, %v7192_v21  ;;  %v7887_v6 = vcombine.low %v2149_v1, %v12760_v9  ;;  %v12769_v13 = vld [vmem:[#allocation41_spill] sm:$0xff] }
 0x10f   : > { %v7193_v22 = vcombine.low %v7171_v31, %v7178_v26  ;;  %v7210_v42 = vcombine.low %v12763_v17, %v12762_v43  ;;  %v7211_v61 = vcombine.low %v12764_v23, %v12758_v35  ;;  %v7212_v29 = vcombine.low %v12761_v2, %v585_v53  ;;  %v12771_v26 = vld [vmem:[#allocation43_spill] sm:$0xff]  ;;  %v12772_v53 = vld [vmem:[#allocation46_spill] sm:$0xff]  ;;  %v12774_v2 = vld [vmem:[#allocation53_spill] sm:$0xff] }
 0x110   : > { %v7208_v20 = vrot.slane %v7194_v52, %v9632_v10  ;;  %v9212_v12 = vcombine.high %v12766_v7, %v12765_v27  ;;  %9484 = vmatmul.mubr.msk.f32.gmra.mrb[52].mxu1 %vm227_vm2, %v7160_v51  ;;  %v7894_v36 = vrot.slane %v7887_v6, %v9632_v10  ;;  %v7213_v14 = vcombine.low %v587_v46, %v12768_v25  ;;  %v12773_v52 = vld [vmem:[#allocation55_spill] sm:$0xff]  ;;  %v12776_v23 = vld [vmem:[#allocation25_spill] sm:$0xff]  ;;  %v12778_v27 = vld [vmem:[#allocation54_spill] sm:$0xff] }
 0x111   : > { %9501 = vmatmul.mubr.msk.f32.vlgmr.msra.gmra.mrb[42].mxu0 %vm227_vm2, %v12767_v54  ;;  %v7201_v60 = vrot.slane %v7193_v22, %v9632_v10  ;;  %9486 = vmatprep.mubr.msk.f32.mxu1 %vm9575_vm1, %v12685_v58  ;;  %v7220_v4 = vrot.slane %v7210_v42, %v9632_v10  ;;  %v7227_v28 = vrot.slane %v7211_v61, %v9632_v10  ;;  %v11147_v31 = vpop.f32.mrb[2].mxu1  ;;  %v12779_v7 = vld [vmem:[#allocation52_spill] sm:$0xff] }
 0x112   : > { %9503 = vmatprep.mubr.msk.f32.mxu0 %vm9575_vm1, %v12685_v58  ;;  %v7234_v5 = vrot.slane %v7212_v29, %v9632_v10  ;;  %v7895_v8 = vcombine.low %v7894_v36, %v12769_v13  ;;  %v7241_v55 = vrot.slane %v7213_v14, %v9632_v10  ;;  %v7911_v44 = vrot.slane %v9212_v12, %v9632_v10  ;;  %v9333_v40 = vpop.f32.mrb[3].mxu1 }
 0x113   : > { %v7209_v63 = vcombine.low %v7201_v60, %v7208_v20  ;;  %v7242_v45 = vcombine.low %v7220_v4, %v7227_v28  ;;  %v210_v57 = vmax.f32 %v10952_v62, %v186_v16  ;;  %v218_v19 = vmax.f32 %v194_v32, %v202_v18  ;;  %v12775_v20 = vld [vmem:[#allocation20_spill] sm:$0xff] }
 0x114   : > { %v6966_v41 = vcombine.high %v186_v16, %v186_v16  ;;  %v7902_v33 = vrot.slane %v7895_v8, %v9632_v10  ;;  %v7243_v47 = vcombine.low %v7234_v5, %v7241_v55  ;;  %v7912_v37 = vcombine.low %v12770_v30, %v7911_v44  ;;  %v12781_v30 = vld [vmem:[#allocation61_spill] sm:$0xff] }
 0x115   : > { %9504 = vmatmul.mubr.msk.f32.gmra.mrb[44].mxu0 %vm227_vm2, %v7886_v39  ;;  %9487 = vmatmul.mubr.msk.f32.gmra.mrb[54].mxu1 %vm227_vm2, %v7209_v63  ;;  %v7250_v62 = vrot.slane %v7242_v45, %v9632_v10  ;;  %v226_v50 = vmax.f32 %v210_v57, %v218_v19  ;;  %v6973_v15 = vrot.slane %v186_v16, %v9632_v10  ;;  %v12780_v63 = vld [vmem:[#allocation60_spill] sm:$0xff] }
 0x116   : > { %9506 = vmatprep.mubr.msk.f32.mxu0 %vm9575_vm1, %v12685_v58  ;;  %9489 = vmatprep.mubr.msk.f32.mxu1 %vm9575_vm1, %v12685_v58  ;;  %v7903_v38 = vcombine.low %v12771_v26, %v7902_v33  ;;  %v7257_v11 = vrot.slane %v7243_v47, %v9632_v10  ;;  %v7919_v49 = vrot.slane %v7912_v37, %v9632_v10  ;;  %v11175_v54 = vpop.f32.mrb[4].mxu1 }
 0x117   : > { %v6980_v21 = vrot.slane %v6966_v41, %v9632_v10  ;;  %v7941_v56 = vcombine.low %v10999_v59, %v11003_v24  ;;  %235 = vst.msk [vmem:[%s9625_s23 + $0x38] sm:$0xff] %vm227_vm2, %v226_v50  ;;  %v6981_v1 = vcombine.high %v6973_v15, %v6973_v15  ;;  %v6989_v35 = vrot.slane %v6973_v15, %v9632_v10  ;;  %v9336_v14 = vpop.f32.mrb[5].mxu1 }
 0x118   : > { %v2151_v51 = vcombine.high %v12772_v53, %v12772_v53  ;;  %v7258_v39 = vcombine.low %v7250_v62, %v7257_v11  ;;  %v7920_v22 = vcombine.low %v7919_v49, %v12773_v52  ;;  %v6244_v43 = vcombine.high %v10987_v34, %v10987_v34 }
 0x119   : > { %9507 = vmatmul.mubr.msk.f32.gmra.mrb[46].mxu0 %vm227_vm2, %v7903_v38  ;;  %v6982_v9 = vcombine.high %v6980_v21, %v6980_v21  ;;  %v6996_v6 = vrot.slane %v6980_v21, %v9632_v10  ;;  %v7003_v24 = vrot.slane %v6981_v1, %v9632_v10  ;;  %v6246_v17 = vcombine.high %v10995_v48, %v10995_v48 }
 0x11a   : > { %9509 = vmatprep.mubr.msk.f32.mxu0 %vm9575_vm1, %v12685_v58  ;;  %v7921_v46 = vcombine.low %v2151_v51, %v12774_v2  ;;  %9490 = vmatmul.mubr.msk.f32.gmra.mrb[56].mxu1 %vm227_vm2, %v7258_v39  ;;  %v12777_v61 = vcombine.low %v12775_v20, %v12776_v23  ;;  %v9213_v12 = vcombine.high %v12779_v7, %v12778_v27 }
 0x11b   : > { %v7010_v42 = vrot.slane %v6982_v9, %v9632_v10  ;;  %9492 = vmatprep.mubr.msk.f32.mxu1 %vm9575_vm1, %v12685_v58  ;;  %v7260_v34 = vcombine.low %v6989_v35, %v7003_v24  ;;  %v9202_v60 = vcombine.high %v6989_v35, %v7003_v24  ;;  %v7939_v25 = vcombine.low %v10995_v48, %v6244_v43 }
 0x11c   : > { %v7269_v29 = vrot.slane %v12777_v61, %v9632_v10  ;;  %v7928_v36 = vrot.slane %v7921_v46, %v9632_v10  ;;  %v7940_v32 = vcombine.low %v6246_v17, %v10990_v0  ;;  %v7948_v18 = vrot.slane %v9213_v12, %v9632_v10 }
 0x11d   : > { %9510 = vmatmul.mubr.msk.f32.gmra.mrb[48].mxu0 %vm227_vm2, %v7920_v22  ;;  %v7262_v16 = vcombine.low %v6996_v6, %v7010_v42  ;;  %v7969_v4 = vrot.slane %v7941_v56, %v9632_v10  ;;  %v7276_v28 = vrot.slane %v7260_v34, %v9632_v10  ;;  %v7283_v5 = vrot.slane %v9202_v60, %v9632_v10 }
 0x11e   : > { %9512 = vmatprep.mubr.msk.f32.mxu0 %vm9575_vm1, %v12685_v58  ;;  %v7929_v13 = vcombine.low %v12780_v63, %v7928_v36  ;;  %v7955_v48 = vrot.slane %v7939_v25, %v9632_v10  ;;  %v7012_v55 = vcombine.high %v6996_v6, %v6996_v6  ;;  %v7962_v0 = vrot.slane %v7940_v32, %v9632_v10 }
 0x11f   : > { %v7290_v8 = vrot.slane %v7262_v16, %v9632_v10  ;;  %v7291_v44 = vcombine.low %v7269_v29, %v7276_v28  ;;  %v7852_v19 = vcombine.high %v10999_v59, %v10999_v59 }
 0x120   : > { %v7936_v45 = vrot.slane %v7929_v13, %v9632_v10  ;;  %v7970_v57 = vcombine.low %v7948_v18, %v7955_v48  ;;  %v7971_v33 = vcombine.low %v7962_v0, %v7969_v4  ;;  %v7314_v15 = vrot.slane %v7012_v55, %v9632_v10 }
 0x121   : > { %v7292_v41 = vcombine.low %v7283_v5, %v7290_v8  ;;  %v7299_v47 = vrot.slane %v7291_v44, %v9632_v10  ;;  %v7993_v38 = vrot.slane %v7852_v19, %v9632_v10  ;;  %v2544_v49 = vpop.f32.mrb[6].mxu1 }
 0x122   : > { %v7937_v37 = vcombine.low %v7936_v45, %v12781_v30  ;;  %v7978_v62 = vrot.slane %v7970_v57, %v9632_v10  ;;  %v7985_v26 = vrot.slane %v7971_v33, %v9632_v10  ;;  %v7321_v21 = vrot.slane %v7314_v15, %v9632_v10  ;;  %v9364_v35 = vpop.f32.mrb[7].mxu1 }
 0x123   : > { %v7306_v50 = vrot.slane %v7292_v41, %v9632_v10  ;;  %v2585_v56 = vcombine.high %v2544_v49, %v2544_v49  ;;  %v2592_v1 = vrot.slane %v2544_v49, %v9632_v10  ;;  %v8000_v53 = vrot.slane %v7993_v38, %v9632_v10 }
 0x124   : > { %9513 = vmatmul.mubr.msk.f32.gmra.mrb[50].mxu0 %vm227_vm2, %v7937_v37  ;;  %v7986_v59 = vcombine.low %v7978_v62, %v7985_v26  ;;  %v1748_v39 = vpop.f32.mrb[0].mxu0 }
 0x125   : > { %v7307_v11 = vcombine.low %v7299_v47, %v7306_v50  ;;  %9515 = vmatprep.mubr.msk.f32.mxu0 %vm9575_vm1, %v12685_v58  ;;  %v2599_v51 = vrot.slane %v2585_v56, %v9632_v10  ;;  %v2600_v40 = vcombine.high %v2592_v1, %v2592_v1  ;;  %v1789_v52 = vcombine.high %v1748_v39, %v1748_v39  ;;  %v9341_v9 = vpop.f32.mrb[1].mxu0 }
 0x126   : > { %v1796_v22 = vrot.slane %v1748_v39, %v9632_v10  ;;  %v2608_v24 = vrot.slane %v2592_v1, %v9632_v10 }
 0x127   : > { %9493 = vmatmul.mubr.msk.f32.gmra.mrb[58].mxu1 %vm227_vm2, %v7307_v11  ;;  %v2601_v6 = vcombine.high %v2599_v51, %v2599_v51  ;;  %v2615_v2 = vrot.slane %v2599_v51, %v9632_v10  ;;  %v2622_v46 = vrot.slane %v2600_v40, %v9632_v10 }
 0x128   : > { %9495 = vmatprep.mubr.msk.f32.mxu1 %vm9575_vm1, %v12685_v58  ;;  %9516 = vmatmul.mubr.msk.f32.gmra.mrb[52].mxu0 %vm227_vm2, %v7986_v59  ;;  %v1804_v43 = vcombine.high %v1796_v22, %v1796_v22  ;;  %v1812_v17 = vrot.slane %v1796_v22, %v9632_v10  ;;  %v2630_v27 = vcombine.high %v2608_v24, %v2608_v24 }
 0x129   : > { %9518 = vmatprep.mubr.msk.f32.mxu0 %vm9575_vm1, %v12685_v58  ;;  %v1803_v58 = vrot.slane %v1789_v52, %v9632_v10  ;;  %v2629_v42 = vrot.slane %v2601_v6, %v9632_v10  ;;  %v2631_v7 = vcombine.high %v2615_v2, %v2615_v2  ;;  %v2632_v12 = vcombine.high %v2622_v46, %v2622_v46 }
 0x12a   : > { %v1826_v61 = vrot.slane %v1804_v43, %v9632_v10  ;;  %v1834_v29 = vcombine.high %v1812_v17, %v1812_v17  ;;  %v11227_v34 = vadd.f32 %v2608_v24, %v1812_v17 }
 0x12b   : > { %9496 = vmatmul.mubr.msk.f32.gmra.mrb[60].mxu1 %vm227_vm2, %v7321_v21  ;;  %v1805_v20 = vcombine.high %v1803_v58, %v1803_v58  ;;  %v1819_v23 = vrot.slane %v1803_v58, %v9632_v10  ;;  %v2633_v16 = vcombine.high %v2629_v42, %v2629_v42 }
 0x12c   : > { %9519 = vmatmul.mubr.msk.f32.gmra.mrb[54].mxu0 %vm227_vm2, %v8000_v53  ;;  %v1836_v25 = vcombine.high %v1826_v61, %v1826_v61  ;;  %v11230_v14 = vadd.f32 %v2622_v46, %v1826_v61  ;;  %v11232_v32 = vadd.f32 %v2630_v27, %v1834_v29  ;;  %v2549_v4 = vpop.f32.mrb[8].mxu1 }
 0x12d   : > { %v1833_v60 = vrot.slane %v1805_v20, %v9632_v10  ;;  %v1835_v36 = vcombine.high %v1819_v23, %v1819_v23  ;;  %v11234_v18 = vadd.f32 %v2615_v2, %v1819_v23  ;;  %v9367_v48 = vpop.f32.mrb[9].mxu1  ;;  %v2634_v8 = vcombine.high %v2549_v4, %v2549_v4 }
 0x12e   : > { %v11236_v5 = vadd.f32 %v2632_v12, %v1836_v25  ;;  %v2641_v55 = vrot.slane %v2549_v4, %v9632_v10 }
 0x12f   : > { %v1837_v28 = vcombine.high %v1833_v60, %v1833_v60  ;;  %v11238_v63 = vadd.f32 %v2629_v42, %v1833_v60  ;;  %v11240_v13 = vadd.f32 %v2631_v7, %v1835_v36  ;;  %v2648_v44 = vrot.slane %v2634_v8, %v9632_v10 }
 0x130   : > { %v2649_v45 = vcombine.high %v2641_v55, %v2641_v55  ;;  %v1753_v57 = vpop.f32.mrb[2].mxu0  ;;  %v2657_v30 = vrot.slane %v2641_v55, %v9632_v10 }
 0x131   : > { %v11243_v0 = vadd.f32 %v2633_v16, %v1837_v28  ;;  %v1838_v19 = vcombine.high %v1753_v57, %v1753_v57  ;;  %v1845_v41 = vrot.slane %v1753_v57, %v9632_v10  ;;  %v9344_v33 = vpop.f32.mrb[3].mxu0  ;;  %v2650_v47 = vcombine.high %v2648_v44, %v2648_v44 }
 0x132   : > { %v2664_v37 = vrot.slane %v2648_v44, %v9632_v10  ;;  %v2671_v62 = vrot.slane %v2649_v45, %v9632_v10  ;;  %v2679_v56 = vcombine.high %v2657_v30, %v2657_v30 }
 0x133   : > { %v1852_v50 = vrot.slane %v1838_v19, %v9632_v10  ;;  %v1853_v15 = vcombine.high %v1845_v41, %v1845_v41  ;;  %v1861_v26 = vrot.slane %v1845_v41, %v9632_v10  ;;  %v2678_v38 = vrot.slane %v2650_v47, %v9632_v10 }
 0x134   : > { %v2680_v1 = vcombine.high %v2664_v37, %v2664_v37  ;;  %v2681_v35 = vcombine.high %v2671_v62, %v2671_v62 }
 0x135   : > { %v1854_v11 = vcombine.high %v1852_v50, %v1852_v50  ;;  %v1868_v59 = vrot.slane %v1852_v50, %v9632_v10  ;;  %v1875_v49 = vrot.slane %v1853_v15, %v9632_v10  ;;  %v1883_v21 = vcombine.high %v1861_v26, %v1861_v26 }
 0x136   : > { %v11255_v53 = vadd.f32 %v2657_v30, %v1861_v26  ;;  %v2682_v22 = vcombine.high %v2678_v38, %v2678_v38 }
 0x137   : > { %v1882_v51 = vrot.slane %v1854_v11, %v9632_v10  ;;  %v1884_v40 = vcombine.high %v1868_v59, %v1868_v59  ;;  %v1885_v39 = vcombine.high %v1875_v49, %v1875_v49  ;;  %v11258_v52 = vadd.f32 %v2671_v62, %v1875_v49 }
 0x138   : > { %v11260_v9 = vadd.f32 %v2679_v56, %v1883_v21  ;;  %v11262_v6 = vadd.f32 %v2664_v37, %v1868_v59 }
 0x139   : > { %v1886_v24 = vcombine.high %v1882_v51, %v1882_v51  ;;  %v11264_v2 = vadd.f32 %v2681_v35, %v1885_v39  ;;  %v11266_v46 = vadd.f32 %v2678_v38, %v1882_v51  ;;  %v11268_v58 = vadd.f32 %v2680_v1, %v1884_v40 }
 0x13b   : > { %v11270_v43 = vadd.f32 %v2682_v22, %v1886_v24 }
 0x13c   : > { %v1758_v17 = vpop.f32.mrb[4].mxu0 }
 0x13d   : > { %v2554_v42 = vpop.f32.mrb[10].mxu1  ;;  %v1887_v20 = vcombine.high %v1758_v17, %v1758_v17  ;;  %v1894_v23 = vrot.slane %v1758_v17, %v9632_v10  ;;  %v9347_v61 = vpop.f32.mrb[5].mxu0 }
 0x13e   : > { %v2683_v29 = vcombine.high %v2554_v42, %v2554_v42  ;;  %v2690_v27 = vrot.slane %v2554_v42, %v9632_v10  ;;  %v9370_v7 = vpop.f32.mrb[11].mxu1 }
 0x13f   : > { %v1901_v12 = vrot.slane %v1887_v20, %v9632_v10  ;;  %v1902_v60 = vcombine.high %v1894_v23, %v1894_v23  ;;  %v1910_v36 = vrot.slane %v1894_v23, %v9632_v10 }
 0x140   : > { %v2697_v25 = vrot.slane %v2683_v29, %v9632_v10  ;;  %v2698_v16 = vcombine.high %v2690_v27, %v2690_v27  ;;  %v2706_v4 = vrot.slane %v2690_v27, %v9632_v10 }
 0x141   : > { %v1903_v28 = vcombine.high %v1901_v12, %v1901_v12  ;;  %v1917_v48 = vrot.slane %v1901_v12, %v9632_v10  ;;  %v1924_v8 = vrot.slane %v1902_v60, %v9632_v10  ;;  %v1932_v55 = vcombine.high %v1910_v36, %v1910_v36 }
 0x142   : > { %v2699_v44 = vcombine.high %v2697_v25, %v2697_v25  ;;  %v2713_v45 = vrot.slane %v2697_v25, %v9632_v10  ;;  %v2720_v57 = vrot.slane %v2698_v16, %v9632_v10  ;;  %v2728_v19 = vcombine.high %v2706_v4, %v2706_v4 }
 0x143   : > { %v1931_v41 = vrot.slane %v1903_v28, %v9632_v10  ;;  %v1933_v33 = vcombine.high %v1917_v48, %v1917_v48  ;;  %v1934_v47 = vcombine.high %v1924_v8, %v1924_v8  ;;  %v11283_v30 = vadd.f32 %v2706_v4, %v1910_v36 }
 0x144   : > { %v2727_v37 = vrot.slane %v2699_v44, %v9632_v10  ;;  %v2729_v62 = vcombine.high %v2713_v45, %v2713_v45  ;;  %v2730_v50 = vcombine.high %v2720_v57, %v2720_v57  ;;  %v11286_v15 = vadd.f32 %v2720_v57, %v1924_v8 }
 0x145   : > { %v1935_v26 = vcombine.high %v1931_v41, %v1931_v41  ;;  %v11288_v38 = vadd.f32 %v2728_v19, %v1932_v55  ;;  %v11290_v11 = vadd.f32 %v2713_v45, %v1917_v48  ;;  %v2559_v59 = vpop.f32.mrb[12].mxu1 }
 0x146   : > { %v2731_v49 = vcombine.high %v2727_v37, %v2727_v37  ;;  %v11292_v21 = vadd.f32 %v2730_v50, %v1934_v47  ;;  %v11294_v56 = vadd.f32 %v2727_v37, %v1931_v41  ;;  %v11296_v1 = vadd.f32 %v2729_v62, %v1933_v33  ;;  %v9373_v35 = vpop.f32.mrb[13].mxu1 }
 0x147   : > { %v1763_v51 = vpop.f32.mrb[6].mxu0  ;;  %v2732_v40 = vcombine.high %v2559_v59, %v2559_v59  ;;  %v2739_v39 = vrot.slane %v2559_v59, %v9632_v10 }
 0x148   : > { %v1936_v22 = vcombine.high %v1763_v51, %v1763_v51  ;;  %v1943_v24 = vrot.slane %v1763_v51, %v9632_v10  ;;  %v9350_v17 = vpop.f32.mrb[7].mxu0  ;;  %v11300_v42 = vadd.f32 %v2731_v49, %v1935_v26 }
 0x149   : > { %v2746_v20 = vrot.slane %v2732_v40, %v9632_v10  ;;  %v2747_v23 = vcombine.high %v2739_v39, %v2739_v39  ;;  %v2755_v61 = vrot.slane %v2739_v39, %v9632_v10 }
 0x14a   : > { %v1950_v29 = vrot.slane %v1936_v22, %v9632_v10  ;;  %v1951_v27 = vcombine.high %v1943_v24, %v1943_v24  ;;  %v1959_v7 = vrot.slane %v1943_v24, %v9632_v10 }
 0x14b   : > { %v2748_v12 = vcombine.high %v2746_v20, %v2746_v20  ;;  %v2762_v60 = vrot.slane %v2746_v20, %v9632_v10  ;;  %v2769_v36 = vrot.slane %v2747_v23, %v9632_v10  ;;  %v2777_v25 = vcombine.high %v2755_v61, %v2755_v61 }
 0x14c   : > { %v1952_v16 = vcombine.high %v1950_v29, %v1950_v29  ;;  %v1966_v4 = vrot.slane %v1950_v29, %v9632_v10  ;;  %v1973_v28 = vrot.slane %v1951_v27, %v9632_v10  ;;  %v1981_v48 = vcombine.high %v1959_v7, %v1959_v7 }
 0x14d   : > { %v2776_v8 = vrot.slane %v2748_v12, %v9632_v10  ;;  %v2778_v55 = vcombine.high %v2762_v60, %v2762_v60  ;;  %v2779_v44 = vcombine.high %v2769_v36, %v2769_v36  ;;  %v11311_v45 = vadd.f32 %v2755_v61, %v1959_v7 }
 0x14e   : > { %v1980_v57 = vrot.slane %v1952_v16, %v9632_v10  ;;  %v1982_v19 = vcombine.high %v1966_v4, %v1966_v4  ;;  %v1983_v41 = vcombine.high %v1973_v28, %v1973_v28  ;;  %v11314_v33 = vadd.f32 %v2769_v36, %v1973_v28 }
 0x14f   : > { %v2780_v47 = vcombine.high %v2776_v8, %v2776_v8  ;;  %v11316_v37 = vadd.f32 %v2777_v25, %v1981_v48  ;;  %v11318_v62 = vadd.f32 %v2762_v60, %v1966_v4 }
 0x150   : > { %v1984_v50 = vcombine.high %v1980_v57, %v1980_v57  ;;  %v11320_v26 = vadd.f32 %v2779_v44, %v1983_v41  ;;  %v11322_v59 = vadd.f32 %v2776_v8, %v1980_v57  ;;  %v11324_v49 = vadd.f32 %v2778_v55, %v1982_v19 }
 0x152   : > { %v2564_v35 = vpop.f32.mrb[14].mxu1  ;;  %v11327_v24 = vadd.f32 %v2780_v47, %v1984_v50 }
 0x153   : > { %v2781_v51 = vcombine.high %v2564_v35, %v2564_v35  ;;  %v2788_v40 = vrot.slane %v2564_v35, %v9632_v10  ;;  %v9376_v39 = vpop.f32.mrb[15].mxu1  ;;  %v1768_v22 = vpop.f32.mrb[8].mxu0 }
 0x154   : > { %v1769_v17 = vadd.f32 %v1768_v22, %v11068_v3  ;;  %v9353_v20 = vpop.f32.mrb[9].mxu0 }
 0x155   : > { %v2795_v23 = vrot.slane %v2781_v51, %v9632_v10  ;;  %v2796_v61 = vcombine.high %v2788_v40, %v2788_v40  ;;  %v2804_v29 = vrot.slane %v2788_v40, %v9632_v10 }
 0x156   : > { %v1985_v27 = vcombine.high %v1769_v17, %v1769_v17  ;;  %v1992_v7 = vrot.slane %v1769_v17, %v9632_v10 }
 0x157   : > { %v2797_v12 = vcombine.high %v2795_v23, %v2795_v23  ;;  %v2811_v60 = vrot.slane %v2795_v23, %v9632_v10  ;;  %v2818_v36 = vrot.slane %v2796_v61, %v9632_v10  ;;  %v2826_v28 = vcombine.high %v2804_v29, %v2804_v29 }
 0x158   : > { %v1999_v25 = vrot.slane %v1985_v27, %v9632_v10  ;;  %v2000_v16 = vcombine.high %v1992_v7, %v1992_v7  ;;  %v2008_v4 = vrot.slane %v1992_v7, %v9632_v10 }
 0x159   : > { %v2825_v3 = vrot.slane %v2797_v12, %v9632_v10  ;;  %v2827_v48 = vcombine.high %v2811_v60, %v2811_v60  ;;  %v2828_v8 = vcombine.high %v2818_v36, %v2818_v36 }
 0x15a   : > { %v2001_v55 = vcombine.high %v1999_v25, %v1999_v25  ;;  %v2015_v44 = vrot.slane %v1999_v25, %v9632_v10  ;;  %v2022_v57 = vrot.slane %v2000_v16, %v9632_v10  ;;  %v2030_v19 = vcombine.high %v2008_v4, %v2008_v4 }
 0x15b   : > { %v2569_v41 = vpop.f32.mrb[16].mxu1  ;;  %v2829_v47 = vcombine.high %v2825_v3, %v2825_v3  ;;  %v11340_v50 = vadd.f32 %v2804_v29, %v2008_v4 }
 0x15c   : > { %v2830_v35 = vcombine.high %v2569_v41, %v2569_v41  ;;  %v2837_v51 = vrot.slane %v2569_v41, %v9632_v10  ;;  %v9379_v40 = vpop.f32.mrb[17].mxu1  ;;  %v2029_v39 = vrot.slane %v2001_v55, %v9632_v10  ;;  %v2031_v22 = vcombine.high %v2015_v44, %v2015_v44 }
 0x15d   : > { %v2032_v17 = vcombine.high %v2022_v57, %v2022_v57  ;;  %v11344_v20 = vadd.f32 %v2818_v36, %v2022_v57  ;;  %v1773_v23 = vpop.f32.mrb[10].mxu0  ;;  %v11346_v61 = vadd.f32 %v2826_v28, %v2030_v19  ;;  %v11348_v27 = vadd.f32 %v2811_v60, %v2015_v44 }
 0x15e   : > { %v2844_v7 = vrot.slane %v2830_v35, %v9632_v10  ;;  %v2845_v12 = vcombine.high %v2837_v51, %v2837_v51  ;;  %v9356_v29 = vpop.f32.mrb[11].mxu0  ;;  %v2033_v25 = vcombine.high %v2029_v39, %v2029_v39  ;;  %v11353_v4 = vadd.f32 %v2825_v3, %v2029_v39 }
 0x15f   : > { %12782 = vst [vmem:[#allocation62_spill] sm:$0xff] %v11348_v27  ;;  %v11351_v16 = vadd.f32 %v2828_v8, %v2032_v17  ;;  %v11355_v41 = vadd.f32 %v2827_v48, %v2031_v22  ;;  %v2574_v55 = vpop.f32.mrb[18].mxu1  ;;  %v1774_v28 = vadd.f32 %v1773_v23, %v11147_v31  ;;  %v2853_v44 = vrot.slane %v2837_v51, %v9632_v10 }
 0x160   : > { %12784 = vst [vmem:[#allocation63_spill] sm:$0xff] %v11353_v4  ;;  %v2846_v40 = vcombine.high %v2844_v7, %v2844_v7  ;;  %v9382_v36 = vpop.f32.mrb[19].mxu1  ;;  %v11357_v57 = vadd.f32 %v2829_v47, %v2033_v25  ;;  %v2860_v19 = vrot.slane %v2844_v7, %v9632_v10  ;;  %v2867_v35 = vrot.slane %v2845_v12, %v9632_v10 }
 0x161   : > { %12783 = vst [vmem:[#allocation65_spill] sm:$0xff] %v11351_v16  ;;  %12785 = vst [vmem:[#allocation39_spill] sm:$0xff] %v11355_v41  ;;  %v1778_v60 = vpop.f32.mrb[12].mxu0  ;;  %v2034_v17 = vcombine.high %v1774_v28, %v1774_v28  ;;  %v2041_v3 = vrot.slane %v1774_v28, %v9632_v10  ;;  %v2885_v47 = vrot.slane %v2574_v55, %v9632_v10 }
 0x162   : > { %12786 = vst [vmem:[#allocation64_spill] sm:$0xff] %v11357_v57  ;;  %v9359_v8 = vpop.f32.mrb[13].mxu0  ;;  %v1779_v48 = vadd.f32 %v1778_v60, %v11175_v54  ;;  %v2874_v39 = vrot.slane %v2846_v40, %v9632_v10  ;;  %v2875_v7 = vcombine.high %v2853_v44, %v2853_v44  ;;  %v2876_v29 = vcombine.high %v2860_v19, %v2860_v19 }
 0x163   : > { %v2048_v22 = vrot.slane %v2034_v17, %v9632_v10  ;;  %v2049_v31 = vcombine.high %v2041_v3, %v2041_v3  ;;  %v2057_v23 = vrot.slane %v2041_v3, %v9632_v10  ;;  %v2877_v12 = vcombine.high %v2867_v35, %v2867_v35 }
 0x164   : > { %v2089_v51 = vrot.slane %v1779_v48, %v9632_v10  ;;  %v2878_v60 = vcombine.high %v2874_v39, %v2874_v39  ;;  %v2892_v55 = vrot.slane %v2885_v47, %v9632_v10 }
 0x165   : > { %v2050_v25 = vcombine.high %v2048_v22, %v2048_v22  ;;  %v2064_v36 = vrot.slane %v2048_v22, %v9632_v10  ;;  %v2071_v28 = vrot.slane %v2049_v31, %v9632_v10  ;;  %v2079_v54 = vcombine.high %v2057_v23, %v2057_v23 }
 0x166   : > { %v11372_v40 = vadd.f32 %v2853_v44, %v2057_v23  ;;  %v2096_v8 = vrot.slane %v2089_v51, %v9632_v10 }
 0x167   : > { %v2078_v3 = vrot.slane %v2050_v25, %v9632_v10  ;;  %v2080_v48 = vcombine.high %v2064_v36, %v2064_v36  ;;  %v2081_v57 = vcombine.high %v2071_v28, %v2071_v28  ;;  %v11377_v41 = vadd.f32 %v2867_v35, %v2071_v28 }
 0x168   : > { %12787 = vst [vmem:[#allocation45_spill] sm:$0xff] %v11372_v40  ;;  %v11379_v16 = vadd.f32 %v2875_v7, %v2079_v54  ;;  %v11381_v22 = vadd.f32 %v2860_v19, %v2064_v36 }
 0x169   : > { %v3725_v17 = vpop.f32.mrb[20].mxu1  ;;  %v2082_v23 = vcombine.high %v2078_v3, %v2078_v3  ;;  %v11384_v40 = vadd.f32 %v2877_v12, %v2081_v57  ;;  %v11386_v47 = vadd.f32 %v2874_v39, %v2078_v3  ;;  %v11388_v51 = vadd.f32 %v2876_v29, %v2080_v48 }
 0x16a   : > { %v9387_v4 = vpop.f32.mrb[21].mxu1  ;;  %v3766_v31 = vcombine.high %v3725_v17, %v3725_v17  ;;  %v3773_v44 = vrot.slane %v3725_v17, %v9632_v10 }
 0x16b   : > { %v11392_v4 = vadd.f32 %v2892_v55, %v2096_v8  ;;  %v11394_v7 = vadd.f32 %v2878_v60, %v2082_v23 }
 0x16c   : > { %v3780_v25 = vrot.slane %v3766_v31, %v9632_v10  ;;  %v3781_v27 = vcombine.high %v3773_v44, %v3773_v44  ;;  %v3789_v35 = vrot.slane %v3773_v44, %v9632_v10 }
 0x16e   : > { %v3730_v19 = vpop.f32.mrb[22].mxu1  ;;  %v3782_v36 = vcombine.high %v3780_v25, %v3780_v25  ;;  %v3796_v28 = vrot.slane %v3780_v25, %v9632_v10  ;;  %v3803_v57 = vrot.slane %v3781_v27, %v9632_v10  ;;  %v3811_v12 = vcombine.high %v3789_v35, %v3789_v35 }
 0x16f   : > { %v9390_v39 = vpop.f32.mrb[23].mxu1  ;;  %v4123_v29 = vadd.f32 %v3789_v35, %v11227_v34  ;;  %v3815_v54 = vcombine.high %v3730_v19, %v3730_v19  ;;  %v3822_v17 = vrot.slane %v3730_v19, %v9632_v10 }
 0x170   : > { %v3810_v3 = vrot.slane %v3782_v36, %v9632_v10  ;;  %v3812_v48 = vcombine.high %v3796_v28, %v3796_v28  ;;  %v3813_v55 = vcombine.high %v3803_v57, %v3803_v57  ;;  %v4124_v60 = vadd.f32 %v3803_v57, %v11230_v14 }
 0x171   : > { %v4125_v8 = vadd.f32 %v3811_v12, %v11232_v32  ;;  %v4127_v31 = vadd.f32 %v3796_v28, %v11234_v18  ;;  %v3829_v44 = vrot.slane %v3815_v54, %v9632_v10  ;;  %v3830_v27 = vcombine.high %v3822_v17, %v3822_v17 }
 0x172   : > { %v3814_v23 = vcombine.high %v3810_v3, %v3810_v3  ;;  %v4126_v25 = vadd.f32 %v3813_v55, %v11236_v5  ;;  %v4128_v34 = vadd.f32 %v3810_v3, %v11238_v63  ;;  %v4129_v35 = vadd.f32 %v3812_v48, %v11240_v13 }
 0x173   : > { %v3831_v19 = vcombine.high %v3829_v44, %v3829_v44  ;;  %v3838_v36 = vrot.slane %v3822_v17, %v9632_v10  ;;  %v3845_v39 = vrot.slane %v3829_v44, %v9632_v10  ;;  %v3852_v14 = vrot.slane %v3830_v27, %v9632_v10 }
 0x174   : > { %v4130_v32 = vadd.f32 %v3814_v23, %v11243_v0 }
 0x175   : > { %v3859_v18 = vrot.slane %v3831_v19, %v9632_v10  ;;  %v3860_v28 = vcombine.high %v3838_v36, %v3838_v36  ;;  %v3861_v57 = vcombine.high %v3845_v39, %v3845_v39  ;;  %v3862_v12 = vcombine.high %v3852_v14, %v3852_v14 }
 0x176   : > { %v11414_v5 = vadd.f32 %v3838_v36, %v11255_v53  ;;  %v11417_v63 = vadd.f32 %v3852_v14, %v11258_v52  ;;  %v11420_v13 = vadd.f32 %v3845_v39, %v11262_v6  ;;  %v4906_v54 = vpop.f32.mrb[14].mxu0 }
 0x177   : > { %v3863_v17 = vcombine.high %v3859_v18, %v3859_v18  ;;  %v11423_v3 = vadd.f32 %v3860_v28, %v11260_v9  ;;  %v11426_v0 = vadd.f32 %v3862_v12, %v11264_v2  ;;  %v11429_v48 = vadd.f32 %v3859_v18, %v11266_v46  ;;  %v9410_v55 = vpop.f32.mrb[15].mxu0 }
 0x178   : > { %v11432_v53 = vadd.f32 %v3861_v57, %v11268_v58  ;;  %v4947_v52 = vcombine.high %v4906_v54, %v4906_v54  ;;  %v4954_v44 = vrot.slane %v4906_v54, %v9632_v10 }
 0x179   : > { %v11436_v6 = vadd.f32 %v3863_v17, %v11270_v43 }
 0x17a   : > { %v4961_v27 = vrot.slane %v4947_v52, %v9632_v10  ;;  %v4962_v9 = vcombine.high %v4954_v44, %v4954_v44  ;;  %v4970_v23 = vrot.slane %v4954_v44, %v9632_v10 }
 0x17c   : > { %v3735_v2 = vpop.f32.mrb[24].mxu1  ;;  %v4963_v19 = vcombine.high %v4961_v27, %v4961_v27  ;;  %v4977_v46 = vrot.slane %v4961_v27, %v9632_v10  ;;  %v4984_v36 = vrot.slane %v4962_v9, %v9632_v10  ;;  %v4992_v39 = vcombine.high %v4970_v23, %v4970_v23 }
 0x17d   : > { %v9393_v58 = vpop.f32.mrb[25].mxu1  ;;  %v11442_v14 = vadd.f32 %v4970_v23, %v4123_v29  ;;  %v3864_v18 = vcombine.high %v3735_v2, %v3735_v2  ;;  %v3871_v28 = vrot.slane %v3735_v2, %v9632_v10 }
 0x17e   : > { %v4991_v43 = vrot.slane %v4963_v19, %v9632_v10  ;;  %v4993_v57 = vcombine.high %v4977_v46, %v4977_v46  ;;  %v4994_v12 = vcombine.high %v4984_v36, %v4984_v36  ;;  %v11446_v54 = vadd.f32 %v4984_v36, %v4124_v60 }
 0x17f   : > { %v11448_v17 = vadd.f32 %v4992_v39, %v4125_v8  ;;  %v11450_v55 = vadd.f32 %v4977_v46, %v4127_v31  ;;  %v3878_v52 = vrot.slane %v3864_v18, %v9632_v10  ;;  %v3879_v44 = vcombine.high %v3871_v28, %v3871_v28 }
 0x180   : > { %v4995_v27 = vcombine.high %v4991_v43, %v4991_v43  ;;  %v11453_v9 = vadd.f32 %v4994_v12, %v4126_v25  ;;  %v11455_v29 = vadd.f32 %v4991_v43, %v4128_v34  ;;  %v11457_v23 = vadd.f32 %v4993_v57, %v4129_v35 }
 0x181   : > { %v3880_v2 = vcombine.high %v3878_v52, %v3878_v52  ;;  %v3887_v19 = vrot.slane %v3871_v28, %v9632_v10  ;;  %v3894_v60 = vrot.slane %v3878_v52, %v9632_v10  ;;  %v3901_v8 = vrot.slane %v3879_v44, %v9632_v10 }
 0x182   : > { %v11462_v36 = vadd.f32 %v4995_v27, %v4130_v32 }
 0x183   : > { %v3908_v31 = vrot.slane %v3880_v2, %v9632_v10  ;;  %v3909_v46 = vcombine.high %v3887_v19, %v3887_v19  ;;  %v3910_v39 = vcombine.high %v3894_v60, %v3894_v60  ;;  %v3911_v58 = vcombine.high %v3901_v8, %v3901_v8 }
 0x184   : > { %v4911_v25 = vpop.f32.mrb[16].mxu0  ;;  %v11466_v34 = vadd.f32 %v3887_v19, %v11283_v30  ;;  %v11469_v35 = vadd.f32 %v3901_v8, %v11286_v15  ;;  %v11472_v18 = vadd.f32 %v3894_v60, %v11290_v11 }
 0x185   : > { %v4996_v28 = vcombine.high %v4911_v25, %v4911_v25  ;;  %v9413_v43 = vpop.f32.mrb[17].mxu0  ;;  %v3912_v57 = vcombine.high %v3908_v31, %v3908_v31  ;;  %v11475_v32 = vadd.f32 %v3909_v46, %v11288_v38  ;;  %v11478_v12 = vadd.f32 %v3911_v58, %v11292_v21 }
 0x186   : > { %v11481_v52 = vadd.f32 %v3908_v31, %v11294_v56  ;;  %v11484_v30 = vadd.f32 %v3910_v39, %v11296_v1  ;;  %v5003_v15 = vrot.slane %v4911_v25, %v9632_v10 }
 0x187   : > { %v5010_v11 = vrot.slane %v4996_v28, %v9632_v10  ;;  %v11489_v44 = vadd.f32 %v3912_v57, %v11300_v42 }
 0x188   : > { %v5011_v27 = vcombine.high %v5003_v15, %v5003_v15  ;;  %v5019_v38 = vrot.slane %v5003_v15, %v9632_v10 }
 0x189   : > { %v5012_v2 = vcombine.high %v5010_v11, %v5010_v11  ;;  %v5026_v21 = vrot.slane %v5010_v11, %v9632_v10 }
 0x18a   : > { %v5033_v19 = vrot.slane %v5011_v27, %v9632_v10  ;;  %v5041_v60 = vcombine.high %v5019_v38, %v5019_v38  ;;  %v11496_v31 = vadd.f32 %v5019_v38, %v11414_v5 }
 0x18b   : > { %v5040_v56 = vrot.slane %v5012_v2, %v9632_v10  ;;  %v5042_v1 = vcombine.high %v5026_v21, %v5026_v21  ;;  %v3740_v8 = vpop.f32.mrb[26].mxu1  ;;  %v11499_v46 = vadd.f32 %v5026_v21, %v11420_v13 }
 0x18c   : > { %v3913_v42 = vcombine.high %v3740_v8, %v3740_v8  ;;  %v3920_v39 = vrot.slane %v3740_v8, %v9632_v10  ;;  %v9396_v58 = vpop.f32.mrb[27].mxu1  ;;  %v5043_v25 = vcombine.high %v5033_v19, %v5033_v19  ;;  %v11503_v43 = vadd.f32 %v5033_v19, %v11417_v63 }
 0x18d   : > { %v5044_v28 = vcombine.high %v5040_v56, %v5040_v56  ;;  %v11506_v57 = vadd.f32 %v5041_v60, %v11423_v3  ;;  %v11509_v15 = vadd.f32 %v5040_v56, %v11429_v48  ;;  %v11512_v5 = vadd.f32 %v5042_v1, %v11432_v53 }
 0x18e   : > { %v3927_v13 = vrot.slane %v3913_v42, %v9632_v10  ;;  %v3928_v11 = vcombine.high %v3920_v39, %v3920_v39  ;;  %v11516_v27 = vadd.f32 %v5043_v25, %v11426_v0  ;;  %v3936_v63 = vrot.slane %v3920_v39, %v9632_v10 }
 0x18f   : > { %v11519_v2 = vadd.f32 %v5044_v28, %v11436_v6 }
 0x190   : > { %v3929_v38 = vcombine.high %v3927_v13, %v3927_v13  ;;  %v3943_v3 = vrot.slane %v3927_v13, %v9632_v10  ;;  %v3950_v48 = vrot.slane %v3928_v11, %v9632_v10  ;;  %v4916_v21 = vpop.f32.mrb[18].mxu0  ;;  %v3958_v19 = vcombine.high %v3936_v63, %v3936_v63 }
 0x191   : > { %v11525_v53 = vadd.f32 %v3936_v63, %v11311_v45  ;;  %v5045_v56 = vcombine.high %v4916_v21, %v4916_v21  ;;  %v5052_v60 = vrot.slane %v4916_v21, %v9632_v10  ;;  %v9416_v0 = vpop.f32.mrb[19].mxu0 }
 0x192   : > { %v3957_v1 = vrot.slane %v3929_v38, %v9632_v10  ;;  %v3959_v6 = vcombine.high %v3943_v3, %v3943_v3  ;;  %v3960_v8 = vcombine.high %v3950_v48, %v3950_v48  ;;  %v11530_v42 = vadd.f32 %v3950_v48, %v11314_v33 }
 0x193   : > { %v11533_v39 = vadd.f32 %v3958_v19, %v11316_v37  ;;  %v11536_v58 = vadd.f32 %v3943_v3, %v11318_v62  ;;  %v5059_v45 = vrot.slane %v5045_v56, %v9632_v10  ;;  %v5060_v25 = vcombine.high %v5052_v60, %v5052_v60 }
 0x194   : > { %v3961_v28 = vcombine.high %v3957_v1, %v3957_v1  ;;  %v11540_v13 = vadd.f32 %v3960_v8, %v11320_v26  ;;  %v11543_v11 = vadd.f32 %v3957_v1, %v11322_v59  ;;  %v11546_v63 = vadd.f32 %v3959_v6, %v11324_v49 }
 0x195   : > { %v5061_v33 = vcombine.high %v5059_v45, %v5059_v45  ;;  %v5068_v37 = vrot.slane %v5052_v60, %v9632_v10  ;;  %v5075_v38 = vrot.slane %v5059_v45, %v9632_v10  ;;  %v5082_v62 = vrot.slane %v5060_v25, %v9632_v10 }
 0x196   : > { %v11552_v3 = vadd.f32 %v3961_v28, %v11327_v24 }
 0x197   : > { %v5089_v48 = vrot.slane %v5061_v33, %v9632_v10  ;;  %v5090_v26 = vcombine.high %v5068_v37, %v5068_v37  ;;  %v5091_v21 = vcombine.high %v5075_v38, %v5075_v38  ;;  %v5092_v19 = vcombine.high %v5082_v62, %v5082_v62 }
 0x198   : > { %v11556_v59 = vadd.f32 %v5068_v37, %v11466_v34  ;;  %v11559_v49 = vadd.f32 %v5082_v62, %v11469_v35  ;;  %v11562_v56 = vadd.f32 %v5075_v38, %v11472_v18  ;;  %v3745_v60 = vpop.f32.mrb[28].mxu1 }
 0x199   : > { %v5093_v0 = vcombine.high %v5089_v48, %v5089_v48  ;;  %v11565_v1 = vadd.f32 %v5090_v26, %v11475_v32  ;;  %v11568_v24 = vadd.f32 %v5092_v19, %v11478_v12  ;;  %v11571_v6 = vadd.f32 %v5089_v48, %v11481_v52  ;;  %v9399_v8 = vpop.f32.mrb[29].mxu1 }
 0x19a   : > { %v11574_v34 = vadd.f32 %v5091_v21, %v11484_v30  ;;  %v3962_v35 = vcombine.high %v3745_v60, %v3745_v60  ;;  %v3969_v45 = vrot.slane %v3745_v60, %v9632_v10  ;;  %v12791_v60 = vld [vmem:[#allocation62_spill] sm:$0xff] }
 0x19b   : > { %12788 = vst [vmem:[#allocation44_spill] sm:$0xff] %v11568_v24  ;;  %v11578_v18 = vadd.f32 %v5093_v0, %v11489_v44 }
 0x19c   : > { %12789 = vst [vmem:[#allocation47_spill] sm:$0xff] %v11574_v34  ;;  %v3976_v25 = vrot.slane %v3962_v35, %v9632_v10  ;;  %v3977_v32 = vcombine.high %v3969_v45, %v3969_v45  ;;  %v3985_v28 = vrot.slane %v3969_v45, %v9632_v10  ;;  %v12792_v45 = vld [vmem:[#allocation65_spill] sm:$0xff] }
 0x19d   : > { %12790 = vst [vmem:[#allocation40_spill] sm:$0xff] %v11578_v18 }
 0x19e   : > { %v3978_v12 = vcombine.high %v3976_v25, %v3976_v25  ;;  %v3992_v33 = vrot.slane %v3976_v25, %v9632_v10  ;;  %v3999_v52 = vrot.slane %v3977_v32, %v9632_v10  ;;  %v4007_v37 = vcombine.high %v3985_v28, %v3985_v28  ;;  %v12793_v32 = vld [vmem:[#allocation63_spill] sm:$0xff] }
 0x19f   : > { %v11585_v30 = vadd.f32 %v3985_v28, %v11340_v50  ;;  %v4921_v38 = vpop.f32.mrb[20].mxu0 }
 0x1a0   : > { %v4006_v62 = vrot.slane %v3978_v12, %v9632_v10  ;;  %v4008_v48 = vcombine.high %v3992_v33, %v3992_v33  ;;  %v4009_v44 = vcombine.high %v3999_v52, %v3999_v52  ;;  %v11589_v26 = vadd.f32 %v3999_v52, %v11344_v20  ;;  %v9419_v21 = vpop.f32.mrb[21].mxu0  ;;  %v12794_v12 = vld [vmem:[#allocation39_spill] sm:$0xff] }
 0x1a1   : > { %v11592_v19 = vadd.f32 %v4007_v37, %v11346_v61  ;;  %v11595_v0 = vadd.f32 %v3992_v33, %v12791_v60  ;;  %v5094_v8 = vcombine.high %v4921_v38, %v4921_v38  ;;  %v5101_v35 = vrot.slane %v4921_v38, %v9632_v10  ;;  %v9222_v33 = vld [vmem:[%s12548_s2] ss:$0 sm:$0xff]  ;;  %v12795_v38 = vld [vmem:[#allocation64_spill] sm:$0xff] }
 0x1a2   : > { %v4010_v50 = vcombine.high %v4006_v62, %v4006_v62  ;;  %v11599_v25 = vadd.f32 %v4009_v44, %v12792_v45  ;;  %v11602_v28 = vadd.f32 %v4006_v62, %v12793_v32  ;;  %v11605_v20 = vadd.f32 %v4008_v48, %v12794_v12 }
 0x1a3   : > { %v5108_v52 = vrot.slane %v5094_v8, %v9632_v10  ;;  %v5109_v61 = vcombine.high %v5101_v35, %v5101_v35  ;;  %v5117_v37 = vrot.slane %v5101_v35, %v9632_v10  ;;  %v8537_v18 = vcombine.high %v9222_v33, %v9222_v33 }
 0x1a4   : > { %v11613_v21 = vadd.f32 %v4010_v50, %v12795_v38 }
 0x1a5   : > { %v5110_v44 = vcombine.high %v5108_v52, %v5108_v52  ;;  %v5124_v60 = vrot.slane %v5108_v52, %v9632_v10  ;;  %v5131_v62 = vrot.slane %v5109_v61, %v9632_v10  ;;  %v5139_v45 = vcombine.high %v5117_v37, %v5117_v37 }
 0x1a6   : > { %v3750_v48 = vpop.f32.mrb[30].mxu1  ;;  %v11618_v32 = vadd.f32 %v5117_v37, %v11525_v53 }
 0x1a7   : > { %v4011_v8 = vcombine.high %v3750_v48, %v3750_v48  ;;  %v4018_v35 = vrot.slane %v3750_v48, %v9632_v10  ;;  %v9402_v12 = vpop.f32.mrb[31].mxu1  ;;  %v5138_v24 = vrot.slane %v5110_v44, %v9632_v10  ;;  %v5140_v34 = vcombine.high %v5124_v60, %v5124_v60 }
 0x1a8   : > { %12796 = vst [vmem:[#allocation67_spill] sm:$0xff] %v11618_v32  ;;  %v5141_v50 = vcombine.high %v5131_v62, %v5131_v62  ;;  %v11623_v38 = vadd.f32 %v5131_v62, %v11530_v42  ;;  %v11626_v52 = vadd.f32 %v5139_v45, %v11533_v39  ;;  %v11629_v61 = vadd.f32 %v5124_v60, %v11536_v58 }
 0x1a9   : > { %v4025_v53 = vrot.slane %v4011_v8, %v9632_v10  ;;  %v4026_v37 = vcombine.high %v4018_v35, %v4018_v35  ;;  %v5142_v32 = vcombine.high %v5138_v24, %v5138_v24  ;;  %v11636_v44 = vadd.f32 %v5138_v24, %v11543_v11 }
 0x1aa   : > { %v11633_v48 = vadd.f32 %v5141_v50, %v11540_v13  ;;  %v11639_v12 = vadd.f32 %v5140_v34, %v11546_v63  ;;  %v3755_v42 = vpop.f32.mrb[32].mxu1  ;;  %v4034_v39 = vrot.slane %v4018_v35, %v9632_v10  ;;  %v8544_v11 = vrot.slane %v9222_v33, %v9632_v10 }
 0x1ab   : > { %12797 = vst [vmem:[#allocation49_spill] sm:$0xff] %v11636_v44  ;;  %v4027_v62 = vcombine.high %v4025_v53, %v4025_v53  ;;  %v4041_v58 = vrot.slane %v4025_v53, %v9632_v10  ;;  %v4048_v60 = vrot.slane %v4026_v37, %v9632_v10  ;;  %v9405_v45 = vpop.f32.mrb[33].mxu1  ;;  %v11645_v8 = vadd.f32 %v5142_v32, %v11552_v3  ;;  %v12799_v44 = vld [vmem:[#allocation45_spill] sm:$0xff] }
 0x1ac   : > { %12798 = vst [vmem:[#allocation66_spill] sm:$0xff] %v11639_v12  ;;  %v4066_v13 = vrot.slane %v3755_v42, %v9632_v10  ;;  %v8551_v24 = vrot.slane %v8537_v18, %v9632_v10  ;;  %v4056_v34 = vcombine.high %v4034_v39, %v4034_v39  ;;  %v11652_v53 = vadd.f32 %v4034_v39, %v12799_v44 }
 0x1ad   : > { %v4055_v63 = vrot.slane %v4027_v62, %v9632_v10  ;;  %v4057_v50 = vcombine.high %v4041_v58, %v4041_v58  ;;  %v4058_v12 = vcombine.high %v4048_v60, %v4048_v60  ;;  %v4926_v35 = vpop.f32.mrb[22].mxu0  ;;  %v11655_v37 = vadd.f32 %v4048_v60, %v11377_v41 }
 0x1ae   : > { %v11658_v3 = vadd.f32 %v4041_v58, %v11381_v22  ;;  %v5143_v32 = vcombine.high %v4926_v35, %v4926_v35  ;;  %v9422_v42 = vpop.f32.mrb[23].mxu0  ;;  %v11661_v18 = vadd.f32 %v4056_v34, %v11379_v16  ;;  %v5150_v41 = vrot.slane %v4926_v35, %v9632_v10 }
 0x1af   : > { %v4059_v33 = vcombine.high %v4055_v63, %v4055_v63  ;;  %v11664_v62 = vadd.f32 %v4058_v12, %v11384_v40  ;;  %v11667_v45 = vadd.f32 %v4055_v63, %v11386_v47  ;;  %v11670_v44 = vadd.f32 %v4057_v50, %v11388_v51 }
 0x1b0   : > { %v5157_v22 = vrot.slane %v5143_v32, %v9632_v10  ;;  %v4073_v39 = vrot.slane %v4066_v13, %v9632_v10  ;;  %v8552_v16 = vcombine.high %v8544_v11, %v8544_v11  ;;  %v5158_v60 = vcombine.high %v5150_v41, %v5150_v41 }
 0x1b1   : > { %v11676_v58 = vadd.f32 %v4059_v33, %v11394_v7  ;;  %v5166_v40 = vrot.slane %v5150_v41, %v9632_v10  ;;  %v8553_v51 = vcombine.high %v8551_v24, %v8551_v24  ;;  %v11684_v63 = vrot.slane %v8544_v11, %v9632_v10 }
 0x1b2   : > { %v5159_v34 = vcombine.high %v5157_v22, %v5157_v22  ;;  %v5173_v47 = vrot.slane %v5157_v22, %v9632_v10  ;;  %v11681_v12 = vadd.f32 %v4073_v39, %v11392_v4  ;;  %v5180_v50 = vrot.slane %v5158_v60, %v9632_v10 }
 0x1b3   : > { %12800 = vst [vmem:[#allocation51_spill] sm:$0xff] %v11684_v63  ;;  %v5188_v7 = vcombine.high %v5166_v40, %v5166_v40  ;;  %v11689_v32 = vadd.f32 %v5166_v40, %v11585_v30  ;;  %v11695_v4 = vrot.slane %v8551_v24, %v9632_v10  ;;  %v11698_v41 = vrot.slane %v8552_v16, %v9632_v10 }
 0x1b4   : > { %v5187_v13 = vrot.slane %v5159_v34, %v9632_v10  ;;  %v5189_v35 = vcombine.high %v5173_v47, %v5173_v47  ;;  %v11692_v42 = vadd.f32 %v5173_v47, %v11595_v0  ;;  %v5190_v11 = vcombine.high %v5180_v50, %v5180_v50 }
 0x1b5   : > { %v5751_v33 = vpop.f32.mrb[34].mxu1  ;;  %12801 = vst [vmem:[#allocation56_spill] sm:$0xff] %v11695_v4  ;;  %12802 = vst [vmem:[#allocation58_spill] sm:$0xff] %v11698_v41  ;;  %v11701_v39 = vadd.f32 %v5180_v50, %v11589_v26  ;;  %v11704_v60 = vadd.f32 %v5188_v7, %v11592_v19  ;;  %v11720_v19 = vrot.slane %v8553_v51, %v9632_v10 }
 0x1b6   : > { %v5191_v22 = vcombine.high %v5187_v13, %v5187_v13  ;;  %v9433_v30 = vpop.f32.mrb[35].mxu1  ;;  %v11707_v34 = vadd.f32 %v5187_v13, %v11602_v28  ;;  %v11710_v0 = vadd.f32 %v5189_v35, %v11605_v20  ;;  %v5792_v24 = vcombine.high %v5751_v33, %v5751_v33 }
 0x1b7   : > { %v5799_v40 = vrot.slane %v5751_v33, %v9632_v10  ;;  %v11714_v16 = vadd.f32 %v5190_v11, %v11599_v25  ;;  %12805 = vst [vmem:[#allocation9_spill] sm:$0xff] %v11720_v19  ;;  %v11727_v25 = vcombine.high %v11684_v63, %v11684_v63  ;;  %v11735_v51 = vcombine.high %v11698_v41, %v11698_v41 }
 0x1b8   : > { %v11717_v47 = vadd.f32 %v5191_v22, %v11613_v21  ;;  %v4931_v26 = vpop.f32.mrb[24].mxu0  ;;  %v5806_v20 = vrot.slane %v5792_v24, %v9632_v10  ;;  %v11731_v21 = vcombine.high %v11695_v4, %v11695_v4 }
 0x1b9   : > { %12803 = vst [vmem:[#allocation57_spill] sm:$0xff] %v11714_v16  ;;  %v5192_v50 = vcombine.high %v4931_v26, %v4931_v26  ;;  %v5199_v28 = vrot.slane %v4931_v26, %v9632_v10  ;;  %v9425_v13 = vpop.f32.mrb[25].mxu0  ;;  %v5807_v7 = vcombine.high %v5799_v40, %v5799_v40  ;;  %v5815_v35 = vrot.slane %v5799_v40, %v9632_v10 }
 0x1ba   : > { %12804 = vst [vmem:[#allocation50_spill] sm:$0xff] %v11717_v47  ;;  %12806 = vst [vmem:[#allocation2_spill] sm:$0xff] %v11727_v25  ;;  %v5808_v30 = vcombine.high %v5806_v20, %v5806_v20  ;;  %v5822_v26 = vrot.slane %v5806_v20, %v9632_v10 }
 0x1bb   : > { %12807 = vst [vmem:[#allocation15_spill] sm:$0xff] %v11731_v21  ;;  %12808 = vst [vmem:[#allocation11_spill] sm:$0xff] %v11735_v51  ;;  %v5206_v33 = vrot.slane %v5192_v50, %v9632_v10  ;;  %v5207_v11 = vcombine.high %v5199_v28, %v5199_v28  ;;  %v5215_v22 = vrot.slane %v5199_v28, %v9632_v10  ;;  %v5756_v24 = vpop.f32.mrb[36].mxu1 }
 0x1bc   : > { %v4936_v40 = vpop.f32.mrb[26].mxu0  ;;  %v5829_v13 = vrot.slane %v5807_v7, %v9632_v10  ;;  %v5837_v25 = vcombine.high %v5815_v35, %v5815_v35  ;;  %v11742_v19 = vadd.f32 %v5815_v35, %v11442_v14  ;;  %v9436_v21 = vpop.f32.mrb[37].mxu1  ;;  %v5836_v20 = vrot.slane %v5808_v30, %v9632_v10 }
 0x1bd   : > { %v5208_v4 = vcombine.high %v5206_v33, %v5206_v33  ;;  %v5222_v51 = vrot.slane %v5206_v33, %v9632_v10  ;;  %v5229_v50 = vrot.slane %v5207_v11, %v9632_v10  ;;  %v5237_v41 = vcombine.high %v5215_v22, %v5215_v22  ;;  %v9428_v63 = vpop.f32.mrb[27].mxu0 }
 0x1be   : > { %v11747_v28 = vadd.f32 %v5215_v22, %v11652_v53  ;;  %v5247_v47 = vrot.slane %v4936_v40, %v9632_v10  ;;  %v5838_v7 = vcombine.high %v5822_v26, %v5822_v26  ;;  %v5839_v11 = vcombine.high %v5829_v13, %v5829_v13 }
 0x1bf   : > { %v5236_v16 = vrot.slane %v5208_v4, %v9632_v10  ;;  %v5238_v14 = vcombine.high %v5222_v51, %v5222_v51  ;;  %v5239_v35 = vcombine.high %v5229_v50, %v5229_v50  ;;  %v11753_v21 = vadd.f32 %v5229_v50, %v11655_v37 }
 0x1c0   : > { %12809 = vst [vmem:[#allocation10_spill] sm:$0xff] %v11747_v28  ;;  %v11756_v33 = vadd.f32 %v5237_v41, %v11661_v18  ;;  %v11759_v63 = vadd.f32 %v5222_v51, %v11658_v3  ;;  %v5254_v53 = vrot.slane %v5247_v47, %v9632_v10  ;;  %v6518_v22 = vpop.f32.mrb[28].mxu0  ;;  %v5761_v40 = vpop.f32.mrb[38].mxu1  ;;  %v5840_v51 = vcombine.high %v5836_v20, %v5836_v20 }
 0x1c1   : > { %v5240_v30 = vcombine.high %v5236_v16, %v5236_v16  ;;  %v11763_v28 = vadd.f32 %v5239_v35, %v11664_v62  ;;  %v11766_v4 = vadd.f32 %v5236_v16, %v11667_v45  ;;  %v11769_v37 = vadd.f32 %v5238_v14, %v11670_v44  ;;  %v9456_v18 = vpop.f32.mrb[29].mxu0  ;;  %v9439_v41 = vpop.f32.mrb[39].mxu1 }
 0x1c2   : > { %12810 = vst [vmem:[#allocation13_spill] sm:$0xff] %v11759_v63  ;;  %v11772_v3 = vadd.f32 %v5254_v53, %v11681_v12  ;;  %v6150_v47 = vadd.f32 %v5829_v13, %v11446_v54  ;;  %v6151_v50 = vadd.f32 %v5837_v25, %v11448_v17  ;;  %v6152_v62 = vadd.f32 %v5839_v11, %v11453_v9 }
 0x1c3   : > { %12811 = vst [vmem:[#allocation59_spill] sm:$0xff] %v11766_v4  ;;  %12812 = vst [vmem:[#allocation22_spill] sm:$0xff] %v11769_v37  ;;  %v11777_v63 = vadd.f32 %v5240_v30, %v11676_v58  ;;  %v6153_v45 = vadd.f32 %v5822_v26, %v11450_v55  ;;  %v6154_v44 = vadd.f32 %v5836_v20, %v11455_v29 }
 0x1c4   : > { %12813 = vst [vmem:[#allocation21_spill] sm:$0xff] %v11772_v3  ;;  %v6155_v16 = vadd.f32 %v5838_v7, %v11457_v23  ;;  %v6156_v14 = vadd.f32 %v5840_v51, %v11462_v36  ;;  %v5841_v12 = vcombine.high %v5756_v24, %v5756_v24  ;;  %v5848_v35 = vrot.slane %v5756_v24, %v9632_v10  ;;  %v6523_v53 = vpop.f32.mrb[30].mxu0 }
 0x1c5   : > { %12814 = vst [vmem:[#allocation24_spill] sm:$0xff] %v11777_v63  ;;  %v6559_v54 = vcombine.high %v6518_v22, %v6518_v22  ;;  %v6566_v17 = vrot.slane %v6518_v22, %v9632_v10  ;;  %v5890_v25 = vcombine.high %v5761_v40, %v5761_v40  ;;  %v5897_v58 = vrot.slane %v5761_v40, %v9632_v10  ;;  %v9459_v13 = vpop.f32.mrb[31].mxu0  ;;  %v11787_v9 = vpop.f32.mrb[40].mxu1 }
 0x1c6   : > { %v5855_v55 = vrot.slane %v5841_v12, %v9632_v10  ;;  %v5856_v29 = vcombine.high %v5848_v35, %v5848_v35  ;;  %v5864_v23 = vrot.slane %v5848_v35, %v9632_v10  ;;  %v6608_v26 = vcombine.high %v6523_v53, %v6523_v53  ;;  %v9442_v36 = vpop.f32.mrb[41].mxu1 }
 0x1c7   : > { %v6573_v20 = vrot.slane %v6559_v54, %v9632_v10  ;;  %v6574_v24 = vcombine.high %v6566_v17, %v6566_v17  ;;  %v6582_v7 = vrot.slane %v6566_v17, %v9632_v10  ;;  %v5904_v11 = vrot.slane %v5890_v25, %v9632_v10 }
 0x1c8   : > { %v5857_v22 = vcombine.high %v5855_v55, %v5855_v55  ;;  %v5871_v40 = vrot.slane %v5855_v55, %v9632_v10  ;;  %v5878_v30 = vrot.slane %v5856_v29, %v9632_v10  ;;  %v5886_v18 = vcombine.high %v5864_v23, %v5864_v23  ;;  %v11796_v41 = vpop.f32.mrb[32].mxu0 }
 0x1c9   : > { %v11799_v51 = vadd.f32 %v5864_v23, %v11496_v31  ;;  %v6575_v12 = vcombine.high %v6573_v20, %v6573_v20  ;;  %v6589_v35 = vrot.slane %v6573_v20, %v9632_v10  ;;  %v6596_v54 = vrot.slane %v6574_v24, %v9632_v10  ;;  %v9462_v13 = vpop.f32.mrb[33].mxu0 }
 0x1ca   : > { %v5885_v17 = vrot.slane %v5857_v22, %v9632_v10  ;;  %v5887_v25 = vcombine.high %v5871_v40, %v5871_v40  ;;  %v5888_v36 = vcombine.high %v5878_v30, %v5878_v30  ;;  %v11805_v55 = vadd.f32 %v5878_v30, %v11503_v43 }
 0x1cb   : > { %v11808_v29 = vadd.f32 %v5886_v18, %v11506_v57  ;;  %v6161_v3 = vadd.f32 %v5871_v40, %v11499_v46  ;;  %v6603_v31 = vrot.slane %v6575_v12, %v9632_v10  ;;  %v6604_v23 = vcombine.high %v6582_v7, %v6582_v7  ;;  %v11812_v63 = vpop.f32.mrb[42].mxu1 }
 0x1cc   : > { %v5889_v20 = vcombine.high %v5885_v17, %v5885_v17  ;;  %v11815_v24 = vadd.f32 %v5888_v36, %v11516_v27  ;;  %v6162_v22 = vadd.f32 %v5885_v17, %v11509_v15  ;;  %v6163_v13 = vadd.f32 %v5887_v25, %v11512_v5  ;;  %v11819_v43 = vpop.f32.mrb[34].mxu0  ;;  %v9445_v30 = vpop.f32.mrb[43].mxu1 }
 0x1cd   : > { %v6605_v57 = vcombine.high %v6589_v35, %v6589_v35  ;;  %v6606_v18 = vcombine.high %v6596_v54, %v6596_v54  ;;  %v6607_v37 = vcombine.high %v6603_v31, %v6603_v31  ;;  %v11822_v46 = vadd.f32 %v6582_v7, %v11742_v19  ;;  %v9465_v40 = vpop.f32.mrb[35].mxu0 }
 0x1ce   : > { %v6164_v12 = vadd.f32 %v5889_v20, %v11519_v2  ;;  %v11825_v4 = vadd.f32 %v6596_v54, %v6150_v47  ;;  %v11827_v27 = vadd.f32 %v6604_v23, %v6151_v50  ;;  %v11829_v36 = vadd.f32 %v6589_v35, %v6153_v45 }
 0x1cf   : > { %v11831_v15 = vadd.f32 %v6606_v18, %v6152_v62  ;;  %v11833_v5 = vadd.f32 %v6603_v31, %v6154_v44  ;;  %v11835_v17 = vadd.f32 %v6605_v57, %v6155_v16  ;;  %v11837_v25 = vadd.f32 %v6607_v37, %v6156_v14 }
 0x1d0   : > { %v5905_v30 = vcombine.high %v5897_v58, %v5897_v58  ;;  %v5906_v19 = vcombine.high %v5904_v11, %v5904_v11  ;;  %v5913_v7 = vrot.slane %v5897_v58, %v9632_v10  ;;  %v5920_v2 = vrot.slane %v5904_v11, %v9632_v10 }
 0x1d1   : > { %v6615_v47 = vrot.slane %v6523_v53, %v9632_v10  ;;  %v6622_v50 = vrot.slane %v6608_v26, %v9632_v10  ;;  %v5939_v62 = vcombine.high %v11787_v9, %v11787_v9  ;;  %v5946_v45 = vrot.slane %v11787_v9, %v9632_v10  ;;  %v11847_v44 = vpop.f32.mrb[44].mxu1  ;;  %v11849_v37 = vpop.f32.mrb[36].mxu0 }
 0x1d2   : > { %v5927_v16 = vrot.slane %v5905_v30, %v9632_v10  ;;  %v5934_v14 = vrot.slane %v5906_v19, %v9632_v10  ;;  %v5935_v58 = vcombine.high %v5913_v7, %v5913_v7  ;;  %v5936_v11 = vcombine.high %v5920_v2, %v5920_v2  ;;  %v9468_v35 = vpop.f32.mrb[37].mxu0  ;;  %v9448_v53 = vpop.f32.mrb[45].mxu1  ;;  %v12815_v30 = vld [vmem:[#allocation47_spill] sm:$0xff] }
 0x1d3   : > { %v11854_v26 = vadd.f32 %v5913_v7, %v11556_v59  ;;  %v11857_v54 = vadd.f32 %v5920_v2, %v11562_v56  ;;  %v6623_v31 = vcombine.high %v6615_v47, %v6615_v47  ;;  %v6624_v9 = vcombine.high %v6622_v50, %v6622_v50  ;;  %v12816_v2 = vld [vmem:[#allocation44_spill] sm:$0xff] }
 0x1d4   : > { %v5937_v23 = vcombine.high %v5927_v16, %v5927_v16  ;;  %v5938_v20 = vcombine.high %v5934_v14, %v5934_v14  ;;  %v11860_v57 = vadd.f32 %v5927_v16, %v11559_v49  ;;  %v11863_v18 = vadd.f32 %v5935_v58, %v11565_v1  ;;  %v12817_v49 = vld [vmem:[#allocation40_spill] sm:$0xff] }
 0x1d5   : > { %v11866_v40 = vadd.f32 %v5934_v14, %v11571_v6  ;;  %v11869_v19 = vadd.f32 %v5936_v11, %v12815_v30  ;;  %v6631_v59 = vrot.slane %v6615_v47, %v9632_v10  ;;  %v6638_v56 = vrot.slane %v6622_v50, %v9632_v10  ;;  %v11873_v7 = vpop.f32.mrb[46].mxu1 }
 0x1d6   : > { %v11876_v35 = vadd.f32 %v5937_v23, %v12816_v2  ;;  %v11879_v16 = vadd.f32 %v5938_v20, %v12817_v49  ;;  %v6645_v1 = vrot.slane %v6623_v31, %v9632_v10  ;;  %v6652_v6 = vrot.slane %v6624_v9, %v9632_v10  ;;  %v9451_v14 = vpop.f32.mrb[47].mxu1 }
 0x1d7   : > { %v6653_v58 = vcombine.high %v6631_v59, %v6631_v59  ;;  %v6654_v11 = vcombine.high %v6638_v56, %v6638_v56  ;;  %v11884_v53 = vadd.f32 %v6631_v59, %v11799_v51  ;;  %v11886_v47 = vadd.f32 %v6638_v56, %v6161_v3 }
 0x1d8   : > { %v6655_v50 = vcombine.high %v6645_v1, %v6645_v1  ;;  %v6656_v30 = vcombine.high %v6652_v6, %v6652_v6  ;;  %v11889_v23 = vadd.f32 %v6645_v1, %v11805_v55  ;;  %v11891_v2 = vadd.f32 %v6652_v6, %v6162_v22  ;;  %v12822_v6 = vld [vmem:[#allocation67_spill] sm:$0xff] }
 0x1d9   : > { %v11894_v20 = vadd.f32 %v6653_v58, %v11808_v29  ;;  %v11896_v31 = vadd.f32 %v6654_v11, %v6163_v13  ;;  %v5953_v9 = vrot.slane %v5939_v62, %v9632_v10  ;;  %v5954_v49 = vcombine.high %v5946_v45, %v5946_v45  ;;  %v11899_v14 = vpop.f32.mrb[48].mxu1 }
 0x1da   : > { %12818 = vst [vmem:[#allocation23_spill] sm:$0xff] %v11891_v2  ;;  %v11902_v3 = vadd.f32 %v6655_v50, %v11815_v24  ;;  %v11904_v51 = vadd.f32 %v6656_v30, %v6164_v12  ;;  %v5962_v55 = vrot.slane %v5946_v45, %v9632_v10  ;;  %v6657_v22 = vcombine.high %v11796_v41, %v11796_v41  ;;  %v9479_v59 = vpop.f32.mrb[49].mxu1 }
 0x1db   : > { %12819 = vst [vmem:[#allocation19_spill] sm:$0xff] %v11896_v31  ;;  %v5955_v29 = vcombine.high %v5953_v9, %v5953_v9  ;;  %v5969_v13 = vrot.slane %v5953_v9, %v9632_v10  ;;  %v5976_v56 = vrot.slane %v5954_v49, %v9632_v10  ;;  %v6664_v62 = vrot.slane %v11796_v41, %v9632_v10  ;;  %v12824_v31 = vld [vmem:[#allocation66_spill] sm:$0xff] }
 0x1dc   : > { %12820 = vst [vmem:[#allocation27_spill] sm:$0xff] %v11902_v3  ;;  %12821 = vst [vmem:[#allocation28_spill] sm:$0xff] %v11904_v51  ;;  %v5984_v1 = vcombine.high %v5962_v55, %v5962_v55  ;;  %v11914_v24 = vadd.f32 %v5962_v55, %v12822_v6  ;;  %v6671_v12 = vrot.slane %v6657_v22, %v9632_v10  ;;  %v11919_v58 = vpop.f32.mrb[38].mxu0  ;;  %v12823_v3 = vld [vmem:[#allocation49_spill] sm:$0xff] }
 0x1dd   : > { %v5988_v45 = vcombine.high %v11812_v63, %v11812_v63  ;;  %v5983_v11 = vrot.slane %v5955_v29, %v9632_v10  ;;  %v5985_v50 = vcombine.high %v5969_v13, %v5969_v13  ;;  %v5986_v30 = vcombine.high %v5976_v56, %v5976_v56  ;;  %v9471_v49 = vpop.f32.mrb[39].mxu0 }
 0x1de   : > { %v11923_v9 = vadd.f32 %v5976_v56, %v11623_v38  ;;  %v11926_v41 = vadd.f32 %v5984_v1, %v11626_v52  ;;  %v11929_v55 = vadd.f32 %v5969_v13, %v11629_v61  ;;  %v6672_v22 = vcombine.high %v6664_v62, %v6664_v62 }
 0x1df   : > { %v6673_v59 = vcombine.high %v6671_v12, %v6671_v12  ;;  %v5987_v6 = vcombine.high %v5983_v11, %v5983_v11  ;;  %v11932_v51 = vadd.f32 %v5986_v30, %v11633_v48  ;;  %v11935_v29 = vadd.f32 %v5983_v11, %v12823_v3  ;;  %v11946_v1 = vpop.f32.mrb[50].mxu1 }
 0x1e0   : > { %v11938_v2 = vadd.f32 %v5985_v50, %v12824_v31  ;;  %v6680_v38 = vrot.slane %v6664_v62, %v9632_v10  ;;  %v6687_v52 = vrot.slane %v6671_v12, %v9632_v10  ;;  %v6694_v56 = vrot.slane %v6672_v22, %v9632_v10  ;;  %v11944_v13 = vpop.f32.mrb[40].mxu0  ;;  %v9482_v11 = vpop.f32.mrb[51].mxu1 }
 0x1e1   : > { %v6701_v61 = vrot.slane %v6673_v59, %v9632_v10  ;;  %v11949_v48 = vadd.f32 %v5987_v6, %v11645_v8  ;;  %v5995_v3 = vrot.slane %v11812_v63, %v9632_v10  ;;  %v6002_v31 = vrot.slane %v5988_v45, %v9632_v10  ;;  %v9474_v12 = vpop.f32.mrb[41].mxu0 }
 0x1e2   : > { %v6706_v62 = vcombine.high %v11819_v43, %v11819_v43  ;;  %v6702_v50 = vcombine.high %v6680_v38, %v6680_v38  ;;  %v6703_v30 = vcombine.high %v6687_v52, %v6687_v52  ;;  %v6704_v49 = vcombine.high %v6694_v56, %v6694_v56 }
 0x1e3   : > { %v6705_v22 = vcombine.high %v6701_v61, %v6701_v61  ;;  %v11957_v59 = vadd.f32 %v6680_v38, %v11854_v26  ;;  %v11960_v8 = vadd.f32 %v6694_v56, %v11860_v57  ;;  %v11963_v6 = vadd.f32 %v6687_v52, %v11857_v54  ;;  %v11982_v38 = vpop.f32.mrb[52].mxu1 }
 0x1e4   : > { %v11966_v63 = vadd.f32 %v6701_v61, %v11866_v40  ;;  %v11969_v45 = vadd.f32 %v6702_v50, %v11863_v18  ;;  %v11972_v12 = vadd.f32 %v6704_v49, %v11876_v35  ;;  %v11975_v11 = vadd.f32 %v6703_v30, %v11869_v19  ;;  %v11980_v57 = vpop.f32.mrb[42].mxu0  ;;  %v9485_v61 = vpop.f32.mrb[53].mxu1 }
 0x1e5   : > { %12825 = vst [vmem:[#allocation26_spill] sm:$0xff] %v11963_v6  ;;  %v11978_v26 = vadd.f32 %v6705_v22, %v11879_v16  ;;  %v6003_v54 = vcombine.high %v5995_v3, %v5995_v3  ;;  %v6004_v52 = vcombine.high %v6002_v31, %v6002_v31  ;;  %v6011_v40 = vrot.slane %v5995_v3, %v9632_v10  ;;  %v9502_v56 = vpop.f32.mrb[43].mxu0 }
 0x1e6   : > { %12826 = vst [vmem:[#allocation29_spill] sm:$0xff] %v11966_v63  ;;  %12827 = vst [vmem:[#allocation30_spill] sm:$0xff] %v11975_v11  ;;  %v6018_v18 = vrot.slane %v6002_v31, %v9632_v10  ;;  %v6713_v35 = vrot.slane %v11819_v43, %v9632_v10  ;;  %v6720_v19 = vrot.slane %v6706_v62, %v9632_v10 }
 0x1e7   : > { %12828 = vst [vmem:[#allocation32_spill] sm:$0xff] %v11978_v26  ;;  %v6037_v16 = vcombine.high %v11847_v44, %v11847_v44  ;;  %v6044_v50 = vrot.slane %v11847_v44, %v9632_v10  ;;  %v6025_v30 = vrot.slane %v6003_v54, %v9632_v10  ;;  %v6032_v49 = vrot.slane %v6004_v52, %v9632_v10 }
 0x1e8   : > { %v6033_v3 = vcombine.high %v6011_v40, %v6011_v40  ;;  %v6034_v22 = vcombine.high %v6018_v18, %v6018_v18  ;;  %v11996_v31 = vadd.f32 %v6011_v40, %v11689_v32  ;;  %v11999_v56 = vadd.f32 %v6018_v18, %v11692_v42  ;;  %v12001_v61 = vpop.f32.mrb[44].mxu0  ;;  %v12003_v26 = vpop.f32.mrb[54].mxu1 }
 0x1e9   : > { %v6721_v43 = vcombine.high %v6713_v35, %v6713_v35  ;;  %v6722_v62 = vcombine.high %v6720_v19, %v6720_v19  ;;  %12829 = vst [vmem:[#allocation31_spill] sm:$0xff] %v12001_v61  ;;  %12830 = vst [vmem:[#allocation6_spill] sm:$0xff] %v12003_v26  ;;  %v6035_v11 = vcombine.high %v6025_v30, %v6025_v30  ;;  %v9505_v63 = vpop.f32.mrb[45].mxu0  ;;  %v9488_v32 = vpop.f32.mrb[55].mxu1  ;;  %v12831_v61 = vld [vmem:[#allocation57_spill] sm:$0xff] }
 0x1ea   : > { %v6036_v44 = vcombine.high %v6032_v49, %v6032_v49  ;;  %v12006_v54 = vadd.f32 %v6025_v30, %v11701_v39  ;;  %v12009_v52 = vadd.f32 %v6033_v3, %v11704_v60  ;;  %v12012_v40 = vadd.f32 %v6032_v49, %v11707_v34  ;;  %v12832_v39 = vld [vmem:[#allocation50_spill] sm:$0xff] }
 0x1eb   : > { %v12015_v42 = vadd.f32 %v6034_v22, %v11710_v0  ;;  %v6729_v18 = vrot.slane %v6713_v35, %v9632_v10  ;;  %v6736_v26 = vrot.slane %v6720_v19, %v9632_v10  ;;  %v12020_v6 = vadd.f32 %v6035_v11, %v12831_v61 }
 0x1ec   : > { %v12023_v30 = vadd.f32 %v6036_v44, %v12832_v39  ;;  %v6743_v60 = vrot.slane %v6721_v43, %v9632_v10  ;;  %v6750_v63 = vrot.slane %v6722_v62, %v9632_v10  ;;  %v12033_v35 = vpop.f32.mrb[46].mxu0 }
 0x1ed   : > { %v6751_v3 = vcombine.high %v6729_v18, %v6729_v18  ;;  %v6752_v34 = vcombine.high %v6736_v26, %v6736_v26  ;;  %v12028_v49 = vadd.f32 %v6729_v18, %v11914_v24  ;;  %v12031_v0 = vadd.f32 %v6736_v26, %v11929_v55  ;;  %v9508_v43 = vpop.f32.mrb[47].mxu0  ;;  %v12048_v44 = vpop.f32.mrb[56].mxu1 }
 0x1ee   : > { %v6753_v19 = vcombine.high %v6743_v60, %v6743_v60  ;;  %v6754_v11 = vcombine.high %v6750_v63, %v6750_v63  ;;  %v12036_v22 = vadd.f32 %v6743_v60, %v11923_v9  ;;  %v12039_v61 = vadd.f32 %v6750_v63, %v11935_v29  ;;  %12836 = vst [vmem:[#allocation4_spill] sm:$0xff] %v12048_v44  ;;  %v9491_v18 = vpop.f32.mrb[57].mxu1 }
 0x1ef   : > { %12833 = vst [vmem:[#allocation5_spill] sm:$0xff] %v12031_v0  ;;  %v12042_v62 = vadd.f32 %v6751_v3, %v11926_v41  ;;  %v12045_v24 = vadd.f32 %v6752_v34, %v11938_v2  ;;  %v6051_v55 = vrot.slane %v6037_v16, %v9632_v10  ;;  %v6052_v26 = vcombine.high %v6044_v50, %v6044_v50  ;;  %v12839_v3 = vld [vmem:[#allocation10_spill] sm:$0xff] }
 0x1f0   : > { %12834 = vst [vmem:[#allocation34_spill] sm:$0xff] %v12039_v61  ;;  %v12051_v32 = vadd.f32 %v6753_v19, %v11932_v51  ;;  %v12054_v9 = vadd.f32 %v6754_v11, %v11949_v48  ;;  %v6060_v29 = vrot.slane %v6044_v50, %v9632_v10  ;;  %v6755_v41 = vcombine.high %v11849_v37, %v11849_v37  ;;  %v12063_v63 = vpop.f32.mrb[48].mxu0  ;;  %v12842_v61 = vld [vmem:[#allocation22_spill] sm:$0xff] }
 0x1f1   : > { %12835 = vst [vmem:[#allocation8_spill] sm:$0xff] %v12045_v24  ;;  %v6053_v39 = vcombine.high %v6051_v55, %v6051_v55  ;;  %v6067_v2 = vrot.slane %v6051_v55, %v9632_v10  ;;  %v6074_v16 = vrot.slane %v6052_v26, %v9632_v10  ;;  %v6762_v60 = vrot.slane %v11849_v37, %v9632_v10  ;;  %v9511_v19 = vpop.f32.mrb[49].mxu0  ;;  %v12840_v37 = vld [vmem:[#allocation13_spill] sm:$0xff] }
 0x1f2   : > { %12837 = vst [vmem:[#allocation3_spill] sm:$0xff] %v12054_v9  ;;  %12838 = vst [vmem:[#allocation35_spill] sm:$0xff] %v12063_v63  ;;  %v6082_v51 = vcombine.high %v6060_v29, %v6060_v29  ;;  %v6189_v48 = vadd.f32 %v6060_v29, %v12839_v3  ;;  %v6769_v34 = vrot.slane %v6755_v41, %v9632_v10  ;;  %v12841_v41 = vld [vmem:[#allocation59_spill] sm:$0xff] }
 0x1f3   : > { %v6092_v50 = vrot.slane %v11873_v7, %v9632_v10  ;;  %v6081_v11 = vrot.slane %v6053_v39, %v9632_v10  ;;  %v6083_v43 = vcombine.high %v6067_v2, %v6067_v2  ;;  %v6084_v55 = vcombine.high %v6074_v16, %v6074_v16 }
 0x1f4   : > { %v6190_v26 = vadd.f32 %v6074_v16, %v11753_v21  ;;  %v6191_v18 = vadd.f32 %v6082_v51, %v11756_v33  ;;  %v6193_v44 = vadd.f32 %v6067_v2, %v12840_v37  ;;  %v6770_v63 = vcombine.high %v6762_v60, %v6762_v60  ;;  %v12843_v33 = vld [vmem:[#allocation24_spill] sm:$0xff] }
 0x1f5   : > { %v6771_v9 = vcombine.high %v6769_v34, %v6769_v34  ;;  %v6085_v24 = vcombine.high %v6081_v11, %v6081_v11  ;;  %v6192_v29 = vadd.f32 %v6084_v55, %v11763_v28  ;;  %v6194_v3 = vadd.f32 %v6081_v11, %v12841_v41 }
 0x1f6   : > { %v6195_v7 = vadd.f32 %v6083_v43, %v12842_v61  ;;  %v6778_v19 = vrot.slane %v6762_v60, %v9632_v10  ;;  %v6785_v39 = vrot.slane %v6769_v34, %v9632_v10  ;;  %v6792_v0 = vrot.slane %v6770_v63, %v9632_v10 }
 0x1f7   : > { %v6799_v21 = vrot.slane %v6771_v9, %v9632_v10  ;;  %v6196_v16 = vadd.f32 %v6085_v24, %v12843_v33  ;;  %v6099_v2 = vrot.slane %v6092_v50, %v9632_v10  ;;  %v6804_v51 = vcombine.high %v11919_v58, %v11919_v58  ;;  %v12086_v55 = vpop.f32.mrb[50].mxu0 }
 0x1f8   : > { %v6811_v28 = vrot.slane %v11919_v58, %v9632_v10  ;;  %v6800_v11 = vcombine.high %v6778_v19, %v6778_v19  ;;  %v6801_v61 = vcombine.high %v6785_v39, %v6785_v39  ;;  %v6802_v43 = vcombine.high %v6792_v0, %v6792_v0  ;;  %12844 = vst [vmem:[#allocation16_spill] sm:$0xff] %v12086_v55  ;;  %v9514_v50 = vpop.f32.mrb[51].mxu0 }
 0x1f9   : > { %v6803_v60 = vcombine.high %v6799_v21, %v6799_v21  ;;  %v12089_v63 = vadd.f32 %v6778_v19, %v11996_v31  ;;  %v12092_v9 = vadd.f32 %v6792_v0, %v12006_v54  ;;  %v12095_v24 = vadd.f32 %v6785_v39, %v11999_v56  ;;  %v12845_v54 = vld [vmem:[#allocation21_spill] sm:$0xff] }
 0x1fa   : > { %v12098_v34 = vadd.f32 %v6799_v21, %v12012_v40  ;;  %v12101_v58 = vadd.f32 %v6800_v11, %v12009_v52  ;;  %v12104_v37 = vadd.f32 %v6802_v43, %v12020_v6  ;;  %v12107_v41 = vadd.f32 %v6801_v61, %v12015_v42  ;;  %v12115_v39 = vpop.f32.mrb[58].mxu1 }
 0x1fb   : > { %v12110_v31 = vadd.f32 %v6803_v60, %v12023_v30  ;;  %v6197_v0 = vadd.f32 %v6099_v2, %v12845_v54  ;;  %v6818_v56 = vrot.slane %v6804_v51, %v9632_v10  ;;  %v6819_v19 = vcombine.high %v6811_v28, %v6811_v28  ;;  %12846 = vst [vmem:[#allocation38_spill] sm:$0xff] %v12115_v39  ;;  %v9494_v21 = vpop.f32.mrb[59].mxu1  ;;  %v12125_v33 = vpop.f32.mrb[52].mxu0 }
 0x1fc   : > { %v6827_v40 = vrot.slane %v6811_v28, %v9632_v10  ;;  %v6859_v52 = vrot.slane %v11944_v13, %v9632_v10  ;;  %v7446_v6 = vcombine.high %v11899_v14, %v11899_v14  ;;  %v7453_v42 = vrot.slane %v11899_v14, %v9632_v10  ;;  %12847 = vst [vmem:[#allocation37_spill] sm:$0xff] %v12125_v33  ;;  %v9517_v61 = vpop.f32.mrb[53].mxu0 }
 0x1fd   : > { %v7495_v30 = vcombine.high %v11946_v1, %v11946_v1  ;;  %v6820_v2 = vcombine.high %v6818_v56, %v6818_v56  ;;  %v6834_v51 = vrot.slane %v6818_v56, %v9632_v10  ;;  %v6841_v28 = vrot.slane %v6819_v19, %v9632_v10 }
 0x1fe   : > { %v6849_v11 = vcombine.high %v6827_v40, %v6827_v40  ;;  %v12129_v13 = vadd.f32 %v6827_v40, %v6189_v48  ;;  %v6866_v43 = vrot.slane %v6859_v52, %v9632_v10  ;;  %v7460_v60 = vrot.slane %v7446_v6, %v9632_v10  ;;  %v12136_v33 = vpop.f32.mrb[60].mxu1 }
 0x1ff   : > { %v7461_v14 = vcombine.high %v7453_v42, %v7453_v42  ;;  %v6848_v50 = vrot.slane %v6820_v2, %v9632_v10  ;;  %v6850_v54 = vcombine.high %v6834_v51, %v6834_v51  ;;  %v6851_v21 = vcombine.high %v6841_v28, %v6841_v28  ;;  %12849 = vst [vmem:[#allocation12_spill] sm:$0xff] %v12136_v33  ;;  %v12144_v40 = vpop.f32.mrb[54].mxu0  ;;  %v9497_v52 = vpop.f32.mrb[61].mxu1  ;;  %v12861_v33 = vld [vmem:[#allocation51_spill] sm:$0xff] }
 0x200   : > { %12848 = vst [vmem:[#allocation18_spill] sm:$0xff] %v12129_v13  ;;  %v12134_v55 = vadd.f32 %v6841_v28, %v6190_v26  ;;  %v12138_v56 = vadd.f32 %v6849_v11, %v6191_v18  ;;  %v12140_v19 = vadd.f32 %v6834_v51, %v6193_v44  ;;  %v12142_v61 = vadd.f32 %v6866_v43, %v6197_v0  ;;  %v9520_v26 = vpop.f32.mrb[55].mxu0 }
 0x201   : > { %v7462_v48 = vcombine.high %v7460_v60, %v7460_v60  ;;  %12852 = vst [vmem:[#allocation42_spill] sm:$0xff] %v12144_v40  ;;  %v6852_v6 = vcombine.high %v6848_v50, %v6848_v50  ;;  %v12146_v13 = vadd.f32 %v6851_v21, %v6192_v29  ;;  %v12148_v2 = vadd.f32 %v6848_v50, %v6194_v3 }
 0x202   : > { %12850 = vst [vmem:[#allocation7_spill] sm:$0xff] %v12140_v19  ;;  %12851 = vst [vmem:[#allocation14_spill] sm:$0xff] %v12142_v61  ;;  %v12150_v39 = vadd.f32 %v6850_v54, %v6195_v7  ;;  %v7469_v28 = vrot.slane %v7453_v42, %v9632_v10  ;;  %v7476_v18 = vrot.slane %v7460_v60, %v9632_v10  ;;  %v12865_v19 = vld [vmem:[#allocation2_spill] sm:$0xff] }
 0x203   : > { %12853 = vst [vmem:[#allocation36_spill] sm:$0xff] %v12146_v13  ;;  %12854 = vst [vmem:[#allocation33_spill] sm:$0xff] %v12148_v2  ;;  %v7483_v44 = vrot.slane %v7461_v14, %v9632_v10  ;;  %v7490_v0 = vrot.slane %v7462_v48, %v9632_v10  ;;  %v12156_v51 = vadd.f32 %v6852_v6, %v6196_v16  ;;  %v12864_v2 = vld [vmem:[#allocation9_spill] sm:$0xff] }
 0x204   : > { %12855 = vst [vmem:[#allocation17_spill] sm:$0xff] %v12150_v39  ;;  %v7502_v11 = vrot.slane %v11946_v1, %v9632_v10  ;;  %v7509_v29 = vrot.slane %v7495_v30, %v9632_v10  ;;  %v8125_v3 = vcombine.high %v11980_v57, %v11980_v57  ;;  %v7491_v7 = vcombine.high %v7469_v28, %v7469_v28  ;;  %v12863_v39 = vld [vmem:[#allocation58_spill] sm:$0xff] }
 0x205   : > { %12856 = vst [vmem:[#allocation41_spill] sm:$0xff] %v12156_v51  ;;  %v7492_v43 = vcombine.high %v7476_v18, %v7476_v18  ;;  %v7493_v50 = vcombine.high %v7483_v44, %v7483_v44  ;;  %v7494_v42 = vcombine.high %v7490_v0, %v7490_v0  ;;  %v7803_v60 = vadd.f32 %v7469_v28, %v11822_v46 }
 0x206   : > { %v7804_v14 = vadd.f32 %v7483_v44, %v11825_v4  ;;  %v7807_v54 = vadd.f32 %v7476_v18, %v11829_v36  ;;  %v7808_v16 = vadd.f32 %v7490_v0, %v11833_v5  ;;  %v7805_v21 = vadd.f32 %v7491_v7, %v11827_v27  ;;  %v12857_v7 = vld [vmem:[#allocation23_spill] sm:$0xff] }
 0x207   : > { %v7806_v1 = vadd.f32 %v7493_v50, %v11831_v15  ;;  %v7809_v30 = vadd.f32 %v7492_v43, %v11835_v17  ;;  %v7810_v48 = vadd.f32 %v7494_v42, %v11837_v25  ;;  %v7510_v52 = vcombine.high %v7502_v11, %v7502_v11  ;;  %v12858_v50 = vld [vmem:[#allocation19_spill] sm:$0xff] }
 0x208   : > { %v7511_v6 = vcombine.high %v7509_v29, %v7509_v29  ;;  %v7518_v26 = vrot.slane %v7502_v11, %v9632_v10  ;;  %v7525_v46 = vrot.slane %v7509_v29, %v9632_v10  ;;  %v8132_v4 = vrot.slane %v11980_v57, %v9632_v10 }
 0x209   : > { %v8139_v36 = vrot.slane %v8125_v3, %v9632_v10  ;;  %v7544_v27 = vcombine.high %v11982_v38, %v11982_v38  ;;  %v7551_v15 = vrot.slane %v11982_v38, %v9632_v10  ;;  %v7532_v5 = vrot.slane %v7510_v52, %v9632_v10  ;;  %v12859_v52 = vld [vmem:[#allocation27_spill] sm:$0xff] }
 0x20a   : > { %v7539_v17 = vrot.slane %v7511_v6, %v9632_v10  ;;  %v7540_v25 = vcombine.high %v7518_v26, %v7518_v26  ;;  %v7541_v28 = vcombine.high %v7525_v46, %v7525_v46  ;;  %v12183_v18 = vadd.f32 %v7518_v26, %v11884_v53  ;;  %v12860_v26 = vld [vmem:[#allocation28_spill] sm:$0xff] }
 0x20b   : > { %v12186_v44 = vadd.f32 %v7525_v46, %v11886_v47  ;;  %v8140_v57 = vcombine.high %v8132_v4, %v8132_v4  ;;  %v8141_v0 = vcombine.high %v8139_v36, %v8139_v36  ;;  %v7542_v11 = vcombine.high %v7532_v5, %v7532_v5 }
 0x20c   : > { %v7543_v29 = vcombine.high %v7539_v17, %v7539_v17  ;;  %v12189_v3 = vadd.f32 %v7532_v5, %v11889_v23  ;;  %v12192_v38 = vadd.f32 %v7540_v25, %v11894_v20  ;;  %v12195_v43 = vadd.f32 %v7539_v17, %v12857_v7 }
 0x20d   : > { %v12198_v42 = vadd.f32 %v7541_v28, %v12858_v50  ;;  %v8148_v53 = vrot.slane %v8132_v4, %v9632_v10  ;;  %v8155_v47 = vrot.slane %v8139_v36, %v9632_v10  ;;  %v12203_v6 = vadd.f32 %v7542_v11, %v12859_v52  ;;  %v12862_v52 = vld [vmem:[#allocation56_spill] sm:$0xff] }
 0x20e   : > { %v12206_v46 = vadd.f32 %v7543_v29, %v12860_v26  ;;  %v8162_v23 = vrot.slane %v8140_v57, %v9632_v10  ;;  %v8169_v20 = vrot.slane %v8141_v0, %v9632_v10 }
 0x20f   : > { %v8170_v5 = vcombine.high %v8148_v53, %v8148_v53  ;;  %v8171_v17 = vcombine.high %v8155_v47, %v8155_v47  ;;  %v8482_v25 = vadd.f32 %v8148_v53, %v7803_v60  ;;  %v8486_v7 = vadd.f32 %v8155_v47, %v7807_v54  ;;  %v12866_v60 = vld [vmem:[#allocation15_spill] sm:$0xff] }
 0x210   : > { %v8172_v28 = vcombine.high %v8162_v23, %v8162_v23  ;;  %v8173_v50 = vcombine.high %v8169_v20, %v8169_v20  ;;  %v8483_v40 = vadd.f32 %v8162_v23, %v7804_v14  ;;  %v8487_v4 = vadd.f32 %v8169_v20, %v7808_v16  ;;  %v12867_v16 = vld [vmem:[#allocation11_spill] sm:$0xff] }
 0x211   : > { %v8484_v61 = vadd.f32 %v8170_v5, %v7805_v21  ;;  %v8488_v36 = vadd.f32 %v8171_v17, %v7809_v30  ;;  %v8592_v11 = vadd.f32 %v12861_v33, %v8482_v25  ;;  %v8596_v51 = vadd.f32 %v12862_v52, %v8486_v7 }
 0x212   : > { %v8485_v29 = vadd.f32 %v8172_v28, %v7806_v1  ;;  %v8489_v26 = vadd.f32 %v8173_v50, %v7810_v48  ;;  %v8593_v57 = vadd.f32 %v12863_v39, %v8483_v40  ;;  %v8597_v0 = vadd.f32 %v12864_v2, %v8487_v4 }
 0x213   : > { %v8594_v13 = vadd.f32 %v12865_v19, %v8484_v61  ;;  %v8598_v54 = vadd.f32 %v12866_v60, %v8488_v36  ;;  %v7558_v53 = vrot.slane %v7544_v27, %v9632_v10  ;;  %v7559_v14 = vcombine.high %v7551_v15, %v7551_v15 }
 0x214   : > { %v8595_v21 = vadd.f32 %v12867_v16, %v8485_v29  ;;  %v8699_v30 = vcombine.low %v8592_v11, %v8593_v57  ;;  %v8701_v47 = vcombine.low %v8596_v51, %v8597_v0  ;;  %v7567_v23 = vrot.slane %v7551_v15, %v9632_v10  ;;  %v12868_v29 = vld [vmem:[#allocation26_spill] sm:$0xff]  ;;  %v12869_v0 = vld [vmem:[#allocation29_spill] sm:$0xff] }
 0x215   : > { %v8729_v1 = vrot.slane %v8598_v54, %v9632_v10  ;;  %v7560_v48 = vcombine.high %v7558_v53, %v7558_v53  ;;  %v7574_v40 = vrot.slane %v7558_v53, %v9632_v10  ;;  %v7581_v20 = vrot.slane %v7559_v14, %v9632_v10  ;;  %v12870_v14 = vld [vmem:[#allocation30_spill] sm:$0xff] }
 0x216   : > { %v8700_v61 = vcombine.low %v8594_v13, %v8595_v21  ;;  %v8708_v5 = vrot.slane %v8699_v30, %v9632_v10  ;;  %v8722_v27 = vrot.slane %v8701_v47, %v9632_v10  ;;  %v7589_v17 = vcombine.high %v7567_v23, %v7567_v23  ;;  %v12872_v30 = vld [vmem:[#allocation32_spill] sm:$0xff] }
 0x217   : > { %v7588_v25 = vrot.slane %v7560_v48, %v9632_v10  ;;  %v7590_v7 = vcombine.high %v7574_v40, %v7574_v40  ;;  %v7591_v51 = vcombine.high %v7581_v20, %v7581_v20  ;;  %v12226_v15 = vadd.f32 %v7567_v23, %v11957_v59 }
 0x218   : > { %v8715_v28 = vrot.slane %v8700_v61, %v9632_v10  ;;  %v8731_v50 = vcombine.low %v8722_v27, %v8729_v1  ;;  %v12230_v4 = vadd.f32 %v7581_v20, %v11960_v8  ;;  %v12233_v13 = vadd.f32 %v7589_v17, %v11969_v45  ;;  %v12871_v8 = vld [vmem:[#allocation31_spill] sm:$0xff]  ;;  %v12873_v1 = vld [vmem:[#allocation6_spill] sm:$0xff] }
 0x219   : > { %v7592_v36 = vcombine.high %v7588_v25, %v7588_v25  ;;  %v12236_v11 = vadd.f32 %v7591_v51, %v11972_v12  ;;  %v12239_v57 = vadd.f32 %v7574_v40, %v12868_v29  ;;  %v12242_v54 = vadd.f32 %v7588_v25, %v12869_v0 }
 0x21a   : > { %v8730_v59 = vcombine.low %v8708_v5, %v8715_v28  ;;  %v8745_v53 = vrot.slane %v8731_v50, %v9632_v10  ;;  %v12246_v21 = vadd.f32 %v7590_v7, %v12870_v14  ;;  %v8174_v45 = vcombine.high %v12871_v8, %v12871_v8 }
 0x21b   : > { %v12251_v47 = vadd.f32 %v7592_v36, %v12872_v30  ;;  %v8181_v12 = vrot.slane %v12871_v8, %v9632_v10  ;;  %v8599_v23 = vadd.f32 %v12861_v33, %v8489_v26  ;;  %v7593_v48 = vcombine.high %v12873_v1, %v12873_v1 }
 0x21c   : > { %v8738_v40 = vrot.slane %v8730_v59, %v9632_v10  ;;  %v8188_v20 = vrot.slane %v8174_v45, %v9632_v10  ;;  %v7600_v61 = vrot.slane %v12873_v1, %v9632_v10  ;;  %v8223_v5 = vcombine.high %v12033_v35, %v12033_v35 }
 0x21d   : > { %v8189_v27 = vcombine.high %v8181_v12, %v8181_v12  ;;  %v8197_v17 = vrot.slane %v8181_v12, %v9632_v10  ;;  %v7607_v25 = vrot.slane %v7593_v48, %v9632_v10  ;;  %v12268_v26 = vrot.slane %v12033_v35, %v9632_v10 }
 0x21e   : > { %v8746_v7 = vcombine.low %v8738_v40, %v8745_v53  ;;  %v8190_v51 = vcombine.high %v8188_v20, %v8188_v20  ;;  %v8204_v28 = vrot.slane %v8188_v20, %v9632_v10  ;;  %v7608_v50 = vcombine.high %v7600_v61, %v7600_v61 }
 0x21f   : > { %v8211_v36 = vrot.slane %v8189_v27, %v9632_v10  ;;  %v8219_v29 = vcombine.high %v8197_v17, %v8197_v17  ;;  %v8490_v0 = vadd.f32 %v8197_v17, %v12183_v18  ;;  %v7609_v59 = vcombine.high %v7607_v25, %v7607_v25 }
 0x220   : > { %9231 = vst.msk [vmem:[%s9625_s23 + $0x40] sm:$0x7f] %vm9042_vm3, %v8746_v7  ;;  %v8218_v14 = vrot.slane %v8190_v51, %v9632_v10  ;;  %v8220_v8 = vcombine.high %v8204_v28, %v8204_v28  ;;  %v8494_v45 = vadd.f32 %v8204_v28, %v12186_v44  ;;  %v7616_v35 = vrot.slane %v7600_v61, %v9632_v10 }
 0x221   : > { %v8221_v53 = vcombine.high %v8211_v36, %v8211_v36  ;;  %v8491_v30 = vadd.f32 %v8211_v36, %v12189_v3  ;;  %v8492_v12 = vadd.f32 %v8219_v29, %v12192_v38  ;;  %v8600_v1 = vadd.f32 %v12863_v39, %v8490_v0 }
 0x222   : > { %v8222_v48 = vcombine.high %v8218_v14, %v8218_v14  ;;  %v8495_v18 = vadd.f32 %v8218_v14, %v12195_v43  ;;  %v8496_v40 = vadd.f32 %v8220_v8, %v12198_v42  ;;  %v8604_v20 = vadd.f32 %v12864_v2, %v8494_v45 }
 0x223   : > { %v8493_v27 = vadd.f32 %v8221_v53, %v12203_v6  ;;  %v8601_v44 = vadd.f32 %v12865_v19, %v8491_v30  ;;  %v8602_v61 = vadd.f32 %v12867_v16, %v8492_v12  ;;  %v8747_v17 = vcombine.low %v8599_v23, %v8600_v1 }
 0x224   : > { %v8497_v3 = vadd.f32 %v8222_v48, %v12206_v46  ;;  %v8605_v38 = vadd.f32 %v12866_v60, %v8495_v18  ;;  %v8606_v7 = vadd.f32 %v12861_v33, %v8496_v40  ;;  %v7623_v51 = vrot.slane %v7607_v25, %v9632_v10  ;;  %v12874_v18 = vld [vmem:[#allocation5_spill] sm:$0xff] }
 0x225   : > { %v8603_v43 = vadd.f32 %v12862_v52, %v8493_v27  ;;  %v8748_v42 = vcombine.low %v8601_v44, %v8602_v61  ;;  %v8756_v28 = vrot.slane %v8747_v17, %v9632_v10  ;;  %v7630_v6 = vrot.slane %v7608_v50, %v9632_v10 }
 0x226   : > { %v8607_v36 = vadd.f32 %v12863_v39, %v8497_v3  ;;  %v8777_v29 = vrot.slane %v8605_v38, %v9632_v10  ;;  %v7637_v23 = vrot.slane %v7609_v59, %v9632_v10  ;;  %v7638_v46 = vcombine.high %v7616_v35, %v7616_v35 }
 0x227   : > { %v8749_v0 = vcombine.low %v8603_v43, %v8604_v20  ;;  %v8763_v14 = vrot.slane %v8748_v42, %v9632_v10  ;;  %v7639_v8 = vcombine.high %v7623_v51, %v7623_v51  ;;  %v7640_v45 = vcombine.high %v7630_v6, %v7630_v6  ;;  %v12875_v20 = vld [vmem:[#allocation34_spill] sm:$0xff] }
 0x228   : > { %v8795_v25 = vcombine.low %v8606_v7, %v8607_v36  ;;  %v7641_v53 = vcombine.high %v7637_v23, %v7637_v23  ;;  %v12299_v30 = vadd.f32 %v7616_v35, %v12028_v49  ;;  %v12302_v12 = vadd.f32 %v7630_v6, %v12036_v22  ;;  %v12876_v49 = vld [vmem:[#allocation8_spill] sm:$0xff]  ;;  %v12877_v22 = vld [vmem:[#allocation3_spill] sm:$0xff] }
 0x229   : > { %v8770_v50 = vrot.slane %v8749_v0, %v9632_v10  ;;  %v8778_v1 = vcombine.low %v8756_v28, %v8763_v14  ;;  %v12306_v48 = vadd.f32 %v7638_v46, %v12042_v62  ;;  %v12309_v59 = vadd.f32 %v7640_v45, %v12051_v32  ;;  %v12878_v7 = vld [vmem:[#allocation4_spill] sm:$0xff] }
 0x22a   : > { %v12312_v40 = vadd.f32 %v7623_v51, %v12874_v18  ;;  %v12315_v27 = vadd.f32 %v7637_v23, %v12875_v20  ;;  %v12318_v35 = vadd.f32 %v7639_v8, %v12876_v49  ;;  %v12321_v44 = vadd.f32 %v7641_v53, %v12877_v22 }
 0x22b   : > { %v8779_v61 = vcombine.low %v8770_v50, %v8777_v29  ;;  %v8786_v17 = vrot.slane %v8778_v1, %v9632_v10  ;;  %v8237_v62 = vrot.slane %v8223_v5, %v9632_v10  ;;  %v8238_v32 = vcombine.high %v12268_v26, %v12268_v26 }
 0x22c   : > { %v8246_v3 = vrot.slane %v12268_v26, %v9632_v10  ;;  %v8804_v38 = vrot.slane %v8795_v25, %v9632_v10  ;;  %v7642_v51 = vcombine.high %v12878_v7, %v12878_v7  ;;  %v7649_v43 = vrot.slane %v12878_v7, %v9632_v10 }
 0x22d   : > { %v8793_v42 = vrot.slane %v8779_v61, %v9632_v10  ;;  %v8239_v28 = vcombine.high %v8237_v62, %v8237_v62  ;;  %v8253_v5 = vrot.slane %v8237_v62, %v9632_v10  ;;  %v8260_v6 = vrot.slane %v8238_v32, %v9632_v10 }
 0x22e   : > { %v8268_v36 = vcombine.high %v8246_v3, %v8246_v3  ;;  %v8498_v29 = vadd.f32 %v8246_v3, %v12226_v15  ;;  %v7656_v26 = vrot.slane %v7642_v51, %v9632_v10  ;;  %v7657_v23 = vcombine.high %v7649_v43, %v7649_v43 }
 0x22f   : > { %v8794_v46 = vcombine.low %v8786_v17, %v8793_v42  ;;  %v8267_v0 = vrot.slane %v8239_v28, %v9632_v10  ;;  %v8269_v14 = vcombine.high %v8253_v5, %v8253_v5  ;;  %v8270_v8 = vcombine.high %v8260_v6, %v8260_v6 }
 0x230   : > { %v8499_v45 = vadd.f32 %v8260_v6, %v12230_v4  ;;  %v8500_v25 = vadd.f32 %v8268_v36, %v12233_v13  ;;  %v8502_v53 = vadd.f32 %v8253_v5, %v12239_v57  ;;  %v8608_v50 = vadd.f32 %v12865_v19, %v8498_v29 }
 0x231   : > { %9232 = vst.msk [vmem:[%s9625_s23 + $0x48] sm:$0x7f] %vm9042_vm3, %v8794_v46  ;;  %v8271_v1 = vcombine.high %v8267_v0, %v8267_v0  ;;  %v8501_v15 = vadd.f32 %v8270_v8, %v12236_v11  ;;  %v8503_v18 = vadd.f32 %v8267_v0, %v12242_v54  ;;  %v8504_v20 = vadd.f32 %v8269_v14, %v12246_v21 }
 0x232   : > { %v8609_v49 = vadd.f32 %v12867_v16, %v8499_v45  ;;  %v8610_v22 = vadd.f32 %v12862_v52, %v8500_v25  ;;  %v8612_v4 = vadd.f32 %v12866_v60, %v8502_v53  ;;  %v7658_v13 = vcombine.high %v7656_v26, %v7656_v26 }
 0x233   : > { %v8505_v57 = vadd.f32 %v8271_v1, %v12251_v47  ;;  %v8611_v61 = vadd.f32 %v12864_v2, %v8501_v15  ;;  %v8613_v17 = vadd.f32 %v12861_v33, %v8503_v18  ;;  %v8614_v62 = vadd.f32 %v12863_v39, %v8504_v20  ;;  %v12881_v20 = vld [vmem:[#allocation16_spill] sm:$0xff] }
 0x234   : > { %v8796_v11 = vcombine.low %v8608_v50, %v8609_v49  ;;  %v8825_v54 = vrot.slane %v8612_v4, %v9632_v10  ;;  %v7665_v21 = vrot.slane %v7649_v43, %v9632_v10  ;;  %v7672_v32 = vrot.slane %v7656_v26, %v9632_v10 }
 0x235   : > { %v8797_v3 = vcombine.low %v8610_v22, %v8611_v61  ;;  %v8843_v7 = vcombine.low %v8613_v17, %v8614_v62  ;;  %v7679_v51 = vrot.slane %v7657_v23, %v9632_v10  ;;  %v7686_v42 = vrot.slane %v7658_v13, %v9632_v10 }
 0x236   : > { %v8811_v47 = vrot.slane %v8796_v11, %v9632_v10  ;;  %v7687_v28 = vcombine.high %v7665_v21, %v7665_v21  ;;  %v7688_v5 = vcombine.high %v7672_v32, %v7672_v32  ;;  %v12363_v6 = vadd.f32 %v7665_v21, %v12089_v63 }
 0x237   : > { %v8818_v36 = vrot.slane %v8797_v3, %v9632_v10  ;;  %v7689_v29 = vcombine.high %v7679_v51, %v7679_v51  ;;  %v7690_v46 = vcombine.high %v7686_v42, %v7686_v42  ;;  %v12367_v43 = vadd.f32 %v7679_v51, %v12092_v9 }
 0x238   : > { %v8826_v26 = vcombine.low %v8804_v38, %v8811_v47  ;;  %v12370_v0 = vadd.f32 %v7687_v28, %v12101_v58  ;;  %v12373_v23 = vadd.f32 %v7672_v32, %v12095_v24  ;;  %v12376_v14 = vadd.f32 %v7686_v42, %v12098_v34  ;;  %v12879_v58 = vld [vmem:[#allocation35_spill] sm:$0xff] }
 0x239   : > { %v8827_v8 = vcombine.low %v8818_v36, %v8825_v54  ;;  %v12379_v63 = vadd.f32 %v7689_v29, %v12104_v37  ;;  %v12382_v45 = vadd.f32 %v7688_v5, %v12107_v41  ;;  %v12385_v9 = vadd.f32 %v7690_v46, %v12110_v31  ;;  %v12880_v41 = vld [vmem:[#allocation38_spill] sm:$0xff] }
 0x23a   : > { %v8834_v38 = vrot.slane %v8826_v26, %v9632_v10  ;;  %v8272_v25 = vcombine.high %v12879_v58, %v12879_v58  ;;  %v8279_v24 = vrot.slane %v12879_v58, %v9632_v10  ;;  %v8615_v34 = vadd.f32 %v12865_v19, %v8505_v57 }
 0x23b   : > { %v8841_v53 = vrot.slane %v8827_v8, %v9632_v10  ;;  %v8852_v37 = vrot.slane %v8843_v7, %v9632_v10  ;;  %v7691_v50 = vcombine.high %v12880_v41, %v12880_v41  ;;  %v7698_v31 = vrot.slane %v12880_v41, %v9632_v10 }
 0x23c   : > { %v8286_v1 = vrot.slane %v8272_v25, %v9632_v10  ;;  %v8287_v15 = vcombine.high %v8279_v24, %v8279_v24  ;;  %v8295_v18 = vrot.slane %v8279_v24, %v9632_v10  ;;  %v8321_v49 = vcombine.high %v12881_v20, %v12881_v20 }
 0x23d   : > { %v8842_v22 = vcombine.low %v8834_v38, %v8841_v53  ;;  %v7705_v4 = vrot.slane %v7691_v50, %v9632_v10  ;;  %v7706_v13 = vcombine.high %v7698_v31, %v7698_v31  ;;  %v7714_v57 = vrot.slane %v7698_v31, %v9632_v10 }
 0x23e   : > { %v8288_v61 = vcombine.high %v8286_v1, %v8286_v1  ;;  %v8302_v17 = vrot.slane %v8286_v1, %v9632_v10  ;;  %v8309_v62 = vrot.slane %v8287_v15, %v9632_v10  ;;  %v8317_v11 = vcombine.high %v8295_v18, %v8295_v18 }
 0x23f   : > { %9233 = vst.msk [vmem:[%s9625_s23 + $0x50] sm:$0x7f] %vm9042_vm3, %v8842_v22  ;;  %v8506_v54 = vadd.f32 %v8295_v18, %v12299_v30  ;;  %v7707_v21 = vcombine.high %v7705_v4, %v7705_v4  ;;  %v7721_v32 = vrot.slane %v7705_v4, %v9632_v10  ;;  %v7728_v3 = vrot.slane %v7706_v13, %v9632_v10  ;;  %v12882_v22 = vld [vmem:[#allocation18_spill] sm:$0xff] }
 0x240   : > { %v8316_v7 = vrot.slane %v8288_v61, %v9632_v10  ;;  %v8318_v51 = vcombine.high %v8302_v17, %v8302_v17  ;;  %v8319_v42 = vcombine.high %v8309_v62, %v8309_v62  ;;  %v8507_v47 = vadd.f32 %v8309_v62, %v12302_v12 }
 0x241   : > { %v8508_v28 = vadd.f32 %v8317_v11, %v12306_v48  ;;  %v8510_v5 = vadd.f32 %v8302_v17, %v12312_v40  ;;  %v8616_v36 = vadd.f32 %v12867_v16, %v8506_v54  ;;  %v7735_v29 = vrot.slane %v7707_v21, %v9632_v10  ;;  %v12883_v21 = vld [vmem:[#allocation36_spill] sm:$0xff] }
 0x242   : > { %v8320_v30 = vcombine.high %v8316_v7, %v8316_v7  ;;  %v8509_v46 = vadd.f32 %v8319_v42, %v12309_v59  ;;  %v8511_v26 = vadd.f32 %v8316_v7, %v12315_v27  ;;  %v8512_v8 = vadd.f32 %v8318_v51, %v12318_v35  ;;  %v12885_v42 = vld [vmem:[#allocation33_spill] sm:$0xff] }
 0x243   : > { %v8617_v38 = vadd.f32 %v12862_v52, %v8507_v47  ;;  %v8618_v58 = vadd.f32 %v12864_v2, %v8508_v28  ;;  %v8620_v12 = vadd.f32 %v12861_v33, %v8510_v5  ;;  %v8844_v48 = vcombine.low %v8615_v34, %v8616_v36  ;;  %v12886_v28 = vld [vmem:[#allocation17_spill] sm:$0xff] }
 0x244   : > { %v8513_v40 = vadd.f32 %v8320_v30, %v12321_v44  ;;  %v8619_v25 = vadd.f32 %v12866_v60, %v8509_v46  ;;  %v8621_v24 = vadd.f32 %v12863_v39, %v8511_v26  ;;  %v8622_v53 = vadd.f32 %v12865_v19, %v8512_v8  ;;  %v12888_v30 = vld [vmem:[#allocation12_spill] sm:$0xff] }
 0x245   : > { %v8845_v59 = vcombine.low %v8617_v38, %v8618_v58  ;;  %v8859_v27 = vrot.slane %v8844_v48, %v9632_v10  ;;  %v7736_v41 = vcombine.high %v7714_v57, %v7714_v57  ;;  %v7737_v35 = vcombine.high %v7721_v32, %v7721_v32 }
 0x246   : > { %v8623_v50 = vadd.f32 %v12867_v16, %v8513_v40  ;;  %v8873_v31 = vrot.slane %v8619_v25, %v9632_v10  ;;  %v8891_v1 = vcombine.low %v8620_v12, %v8621_v24  ;;  %v7738_v15 = vcombine.high %v7728_v3, %v7728_v3 }
 0x247   : > { %v8866_v34 = vrot.slane %v8845_v59, %v9632_v10  ;;  %v8874_v44 = vcombine.low %v8852_v37, %v8859_v27  ;;  %v7739_v18 = vcombine.high %v7735_v29, %v7735_v29  ;;  %v12433_v4 = vadd.f32 %v7714_v57, %v12882_v22  ;;  %v12884_v37 = vld [vmem:[#allocation7_spill] sm:$0xff] }
 0x248   : > { %v8892_v13 = vcombine.low %v8622_v53, %v8623_v50  ;;  %v8900_v61 = vrot.slane %v8891_v1, %v9632_v10  ;;  %v12437_v17 = vadd.f32 %v7728_v3, %v12134_v55  ;;  %v12440_v62 = vadd.f32 %v7736_v41, %v12138_v56  ;;  %v12887_v3 = vld [vmem:[#allocation41_spill] sm:$0xff] }
 0x249   : > { %v8875_v11 = vcombine.low %v8866_v34, %v8873_v31  ;;  %v8882_v54 = vrot.slane %v8874_v44, %v9632_v10  ;;  %v12444_v7 = vadd.f32 %v7738_v15, %v12883_v21  ;;  %v12447_v51 = vadd.f32 %v7721_v32, %v12884_v37  ;;  %v12890_v31 = vld [vmem:[#allocation14_spill] sm:$0xff] }
 0x24a   : > { %v8907_v57 = vrot.slane %v8892_v13, %v9632_v10  ;;  %v12451_v47 = vadd.f32 %v7735_v29, %v12885_v42  ;;  %v12454_v55 = vadd.f32 %v7737_v35, %v12886_v28  ;;  %v12457_v56 = vadd.f32 %v7739_v18, %v12887_v3  ;;  %v12889_v29 = vld [vmem:[#allocation37_spill] sm:$0xff] }
 0x24b   : > { %v8889_v5 = vrot.slane %v8875_v11, %v9632_v10  ;;  %v8328_v36 = vrot.slane %v12881_v20, %v9632_v10  ;;  %v8335_v32 = vrot.slane %v8321_v49, %v9632_v10  ;;  %v7746_v46 = vrot.slane %v12888_v30, %v9632_v10 }
 0x24c   : > { %v8922_v26 = vcombine.low %v8900_v61, %v8907_v57  ;;  %v8370_v8 = vcombine.high %v12889_v29, %v12889_v29  ;;  %v8377_v38 = vrot.slane %v12889_v29, %v9632_v10 }
 0x24d   : > { %v8890_v58 = vcombine.low %v8882_v54, %v8889_v5  ;;  %v8336_v12 = vcombine.high %v8328_v36, %v8328_v36  ;;  %v8337_v48 = vcombine.high %v8335_v32, %v8335_v32  ;;  %v8344_v40 = vrot.slane %v8328_v36, %v9632_v10 }
 0x24e   : > { %v8930_v25 = vrot.slane %v8922_v26, %v9632_v10  ;;  %v8351_v20 = vrot.slane %v8335_v32, %v9632_v10  ;;  %v7753_v49 = vrot.slane %v7746_v46, %v9632_v10  ;;  %v8384_v24 = vrot.slane %v8370_v8, %v9632_v10 }
 0x24f   : > { %9234 = vst.msk [vmem:[%s9625_s23 + $0x58] sm:$0x7f] %vm9042_vm3, %v8890_v58  ;;  %v8358_v53 = vrot.slane %v8336_v12, %v9632_v10  ;;  %v8365_v59 = vrot.slane %v8337_v48, %v9632_v10  ;;  %v8366_v27 = vcombine.high %v8344_v40, %v8344_v40  ;;  %v8514_v41 = vadd.f32 %v8344_v40, %v12363_v6 }
 0x250   : > { %v8367_v35 = vcombine.high %v8351_v20, %v8351_v20  ;;  %v8518_v50 = vadd.f32 %v8351_v20, %v12373_v23  ;;  %v12481_v1 = vadd.f32 %v7753_v49, %v12890_v31  ;;  %v8385_v15 = vcombine.high %v8377_v38, %v8377_v38 }
 0x251   : > { %v8368_v34 = vcombine.high %v8358_v53, %v8358_v53  ;;  %v8369_v44 = vcombine.high %v8365_v59, %v8365_v59  ;;  %v8515_v18 = vadd.f32 %v8358_v53, %v12367_v43  ;;  %v8516_v22 = vadd.f32 %v8366_v27, %v12370_v0 }
 0x252   : > { %v8519_v13 = vadd.f32 %v8365_v59, %v12376_v14  ;;  %v8520_v61 = vadd.f32 %v8367_v35, %v12382_v45  ;;  %v8624_v11 = vadd.f32 %v12862_v52, %v8514_v41  ;;  %v8628_v6 = vadd.f32 %v12863_v39, %v8518_v50  ;;  %v12891_v41 = vld [vmem:[#allocation42_spill] sm:$0xff] }
 0x253   : > { %v8517_v23 = vadd.f32 %v8368_v34, %v12379_v63  ;;  %v8521_v54 = vadd.f32 %v8369_v44, %v12385_v9  ;;  %v8625_v21 = vadd.f32 %v12864_v2, %v8515_v18  ;;  %v8626_v37 = vadd.f32 %v12866_v60, %v8516_v22 }
 0x254   : > { %v8629_v43 = vadd.f32 %v12865_v19, %v8519_v13  ;;  %v8630_v0 = vadd.f32 %v12867_v16, %v8520_v61  ;;  %v8386_v57 = vcombine.high %v8384_v24, %v8384_v24  ;;  %v8393_v14 = vrot.slane %v8377_v38, %v9632_v10 }
 0x255   : > { %v8627_v45 = vadd.f32 %v12861_v33, %v8517_v23  ;;  %v8893_v42 = vcombine.low %v8624_v11, %v8625_v21  ;;  %v8921_v28 = vrot.slane %v8626_v37, %v9632_v10  ;;  %v8400_v63 = vrot.slane %v8384_v24, %v9632_v10 }
 0x256   : > { %v8940_v3 = vcombine.low %v8629_v43, %v8630_v0  ;;  %v8407_v9 = vrot.slane %v8385_v15, %v9632_v10  ;;  %v8414_v5 = vrot.slane %v8386_v57, %v9632_v10  ;;  %v8415_v36 = vcombine.high %v8393_v14, %v8393_v14 }
 0x257   : > { %v8914_v32 = vrot.slane %v8893_v42, %v9632_v10  ;;  %v8939_v30 = vcombine.low %v8627_v45, %v8628_v6  ;;  %v8416_v46 = vcombine.high %v8400_v63, %v8400_v63  ;;  %v8522_v26 = vadd.f32 %v8393_v14, %v12433_v4 }
 0x258   : > { %v8955_v29 = vrot.slane %v8940_v3, %v9632_v10  ;;  %v8417_v8 = vcombine.high %v8407_v9, %v8407_v9  ;;  %v8418_v38 = vcombine.high %v8414_v5, %v8414_v5  ;;  %v8523_v58 = vadd.f32 %v8407_v9, %v12437_v17 }
 0x259   : > { %v8923_v12 = vcombine.low %v8914_v32, %v8921_v28  ;;  %v8948_v48 = vrot.slane %v8939_v30, %v9632_v10  ;;  %v8524_v40 = vadd.f32 %v8415_v36, %v12440_v62  ;;  %v8526_v20 = vadd.f32 %v8400_v63, %v12447_v51 }
 0x25a   : > { %v8525_v49 = vadd.f32 %v8417_v8, %v12444_v7  ;;  %v8527_v24 = vadd.f32 %v8414_v5, %v12451_v47  ;;  %v8528_v53 = vadd.f32 %v8416_v46, %v12454_v55  ;;  %v8529_v4 = vadd.f32 %v8418_v38, %v12457_v56 }
 0x25b   : > { %v8937_v59 = vrot.slane %v8923_v12, %v9632_v10  ;;  %v8970_v27 = vcombine.low %v8948_v48, %v8955_v29  ;;  %v8631_v17 = vadd.f32 %v12862_v52, %v8521_v54  ;;  %v8425_v35 = vrot.slane %v12891_v41, %v9632_v10 }
 0x25c   : > { %v8632_v62 = vadd.f32 %v12864_v2, %v8522_v26  ;;  %v8633_v51 = vadd.f32 %v12866_v60, %v8523_v58  ;;  %v8634_v7 = vadd.f32 %v12861_v33, %v8524_v40  ;;  %v8635_v47 = vadd.f32 %v12863_v39, %v8525_v49 }
 0x25d   : > { %v8938_v55 = vcombine.low %v8930_v25, %v8937_v59  ;;  %v8636_v56 = vadd.f32 %v12865_v19, %v8526_v20  ;;  %v8637_v50 = vadd.f32 %v12867_v16, %v8527_v24  ;;  %v8638_v31 = vadd.f32 %v12862_v52, %v8528_v53 }
 0x25e   : > { %v8639_v15 = vadd.f32 %v12864_v2, %v8529_v4  ;;  %v8941_v34 = vcombine.low %v8631_v17, %v8632_v62  ;;  %v8987_v44 = vcombine.low %v8634_v7, %v8635_v47  ;;  %v8432_v22 = vrot.slane %v8425_v35, %v9632_v10 }
 0x25f   : > { %9235 = vst.msk [vmem:[%s9625_s23 + $0x60] sm:$0x7f] %vm9042_vm3, %v8938_v55  ;;  %v8988_v18 = vcombine.low %v8636_v56, %v8637_v50  ;;  %v8969_v39 = vrot.slane %v8633_v51, %v9632_v10  ;;  %v8978_v6 = vrot.slane %v8970_v27, %v9632_v10 }
 0x260   : > { %v8962_v33 = vrot.slane %v8941_v34, %v9632_v10  ;;  %v8989_v25 = vcombine.low %v8638_v31, %v8639_v15  ;;  %v8996_v19 = vrot.slane %v8987_v44, %v9632_v10  ;;  %v8530_v2 = vadd.f32 %v8432_v22, %v12481_v1 }
 0x261   : > { %v9003_v52 = vrot.slane %v8988_v18, %v9632_v10 }
 0x262   : > { %v8971_v16 = vcombine.low %v8962_v33, %v8969_v39  ;;  %v8640_v61 = vadd.f32 %v12866_v60, %v8530_v2  ;;  %v9010_v11 = vrot.slane %v8989_v25, %v9632_v10 }
 0x263   : > { %v9018_v13 = vcombine.low %v8996_v19, %v9003_v52 }
 0x264   : > { %v8985_v23 = vrot.slane %v8971_v16, %v9632_v10  ;;  %v9017_v54 = vrot.slane %v8640_v61, %v9632_v10 }
 0x265   : > { %v9026_v43 = vrot.slane %v9018_v13, %v9632_v10 }
 0x266   : > { %v8986_v21 = vcombine.low %v8978_v6, %v8985_v23  ;;  %v9019_v37 = vcombine.low %v9010_v11, %v9017_v54 }
 0x268   : > { %9236 = vst.msk [vmem:[%s9625_s23 + $0x68] sm:$0x7f] %vm9042_vm3, %v8986_v21  ;;  %v9033_v1 = vrot.slane %v9019_v37, %v9632_v10 }
 0x26a   : > { %v9034_v0 = vcombine.low %v9026_v43, %v9033_v1 }
 0x26c   : > { %9237 = vst.msk [vmem:[%s9625_s23 + $0x70] sm:$0x7f] %vm9042_vm3, %v9034_v0 }
 0x26d PF: > { %s13_s12 = sadd.s32 1, %s9571_s12  }
 0x26e   : > { %p10_p4 = scmp.ge.s32.totalorder %s13_s12, 4  }
 0x270   :  { %12 = sbr.rel (!%p10_p4) target bundleno = 1 (0x1), region = 63 }

</bundles_post_ra>
